<compile_context>
chip_gen: v7x
topology: tpu7x:2x2x1
jax: 0.10.0
libtpu: 0.0.40
codegen_flags: <defaults>
</compile_context>

<pallas_src>
import functools

import jax
import jax.numpy as jnp
from jax.experimental import pallas as pl
from jax.experimental.pallas import tpu as pltpu

EPS = 1e-5

# MXU operand dtype. bfloat16 roughly doubles MXU rate and halves activation HBM
# bytes on v6e/v7x, but does not reliably hold the 1e-3 max-abs tolerance vs. the
# f32 reference below, so float32 stays the default.
# TODO(synk): flip to jnp.bfloat16 (keep f32 accumulation / residual / stats) after
# re-measuring tolerance at real WRN widths.
MXU_INPUT_DTYPE = jnp.float32

_TILE_CANDIDATES = (2048, 1024, 512, 256, 128, 64, 32, 16, 8)
_TAPS = tuple((kh, kw) for kh in range(3) for kw in range(3))


@functools.lru_cache(maxsize=None)
def _vmem_limit_bytes():
    """Generation-aware scoped-VMEM limit (v5e/v6e: 128 MiB physical, v7x: 64 MiB)."""
    cap = 64 * 1024 * 1024                    # conservative default if the query fails
    try:
        cap = int(getattr(pltpu.get_tpu_info(), "vmem_capacity_bytes", cap))
    except Exception:
        pass
    return min(cap * 3 // 4, 100 * 1024 * 1024)


@functools.lru_cache(maxsize=None)
def _tile_budget_bytes():
    return max(8 * 1024 * 1024, _vmem_limit_bytes() // 2)


def _cparams():
    return pltpu.CompilerParams(dimension_semantics=("parallel",),
                                vmem_limit_bytes=_vmem_limit_bytes())


def _pick_tile_m(m, bytes_per_row, resident_bytes=0):
    """Largest tile (multiple of 8 dividing m) whose working set fits the budget.
    Falls back to the largest divisor <= cap (never exceeds the budget silently)
    and keeps >= 2 grid steps when possible so the 'parallel' axis can shard
    across v7x's two TensorCores."""
    cap = max(8, (_tile_budget_bytes() - resident_bytes) // max(1, bytes_per_row))
    tile = None
    for t in _TILE_CANDIDATES:
        if t <= cap and m % t == 0:
            tile = t
            break
    if tile is None:
        t = min(cap, m) // 8 * 8
        while t >= 8 and m % t:
            t -= 8
        tile = t if t >= 8 else m
    if tile == m and m % 16 == 0 and (m // 2) % 8 == 0:
        tile = m // 2
    return tile


# ---------------- shared in-kernel helpers --------------------------------------
def _stat_rows(x):
    """(1, 2, C) block: row 0 = per-channel sum, row 1 = per-channel sum of squares."""
    c = x.shape[-1]
    s = jnp.sum(x, axis=0, keepdims=True)
    q = jnp.sum(x * x, axis=0, keepdims=True)
    ridx = jax.lax.broadcasted_iota(jnp.int32, (2, c), 0)
    return jnp.where(ridx == 0, s, q).reshape(1, 2, c)


def _split_stats(stats):
    """Host-side reduce of per-tile (g, 2, C) partials -> (sum, ssq) vectors."""
    return stats[:, 0, :].sum(axis=0), stats[:, 1, :].sum(axis=0)


def _finalize_bn(ch_sum, ch_ssq, count, gamma, beta):
    """Training-mode BN: fold mean/var/gamma/beta into per-channel scale/shift."""
    mean = ch_sum / count
    var = jnp.maximum(ch_ssq / count - mean * mean, 0.0)   # biased variance
    scale = gamma * jax.lax.rsqrt(var + EPS)
    shift = beta - mean * scale
    return (scale.reshape(1, -1).astype(jnp.float32),
            shift.reshape(1, -1).astype(jnp.float32))


# ---------------- kernel 1: lane-dense per-channel stats (network input only) ---
def _stats_kernel(x_ref, stats_ref):
    stats_ref[...] = _stat_rows(x_ref[...])


def _lane_dense_shape(m, c):
    if c < 128 and 128 % c == 0 and (m * c) % 128 == 0 and ((m * c) // 128) % 8 == 0:
        return (m * c) // 128, 128
    return m, c


def channel_stats(x2d):
    """Per-channel (sum, sum-of-squares) of an (M, C) f32 array.  Only used for the
    network input; every conv kernel emits its own output stats as a fused epilogue."""
    m, c = x2d.shape
    rows, lane = _lane_dense_shape(m, c)
    xl = x2d.reshape(rows, lane)
    tm = _pick_tile_m(rows, lane * 4 * 2)
    g = rows // tm
    stats = pl.pallas_call(
        _stats_kernel,
        out_shape=jax.ShapeDtypeStruct((g, 2, lane), jnp.float32),
        grid=(g,),
        in_specs=[pl.BlockSpec((tm, lane), lambda i: (i, 0))],
        out_specs=pl.BlockSpec((1, 2, lane), lambda i: (i, 0, 0)),
        compiler_params=_cparams(),
    )(xl)
    lane_sum, lane_ssq = _split_stats(stats)
    if lane != c:                                  # fold lane groups back to channels
        lane_sum = lane_sum.reshape(lane // c, c).sum(axis=0)
        lane_ssq = lane_ssq.reshape(lane // c, c).sum(axis=0)
    return lane_sum, lane_ssq


# ---------------- kernel 2: fused BN+ReLU + 3x3 conv (stride 1) per image -------
def _make_image_conv_kernel(ih, iw, cin, cout, res_mode):
    hp, wp, m = ih + 2, iw + 2, ih * iw

    def activate_into_scratch(xpad_ref, scale_ref, shift_ref, a_scr):
        # BN + ReLU prologue on the zero-padded raw image; the padded border must
        # stay exactly zero *after* the affine+relu, so mask it back out.
        xb = xpad_ref[0]                                     # (hp, wp, cin)
        row = jax.lax.broadcasted_iota(jnp.int32, (hp, wp, cin), 0)
        col = jax.lax.broadcasted_iota(jnp.int32, (hp, wp, cin), 1)
        inside = (row >= 1) & (row <= ih) & (col >= 1) & (col <= iw)
        a = jnp.maximum(xb * scale_ref[...] + shift_ref[...], 0.0)
        a_scr[...] = jnp.where(inside, a, 0.0)

    def conv3x3(a_scr, w_ref):
        # In-VMEM im2col: 9 shifted (ih, iw, cin) windows of the activated image,
        # accumulated as 9 MXU dots into one f32 accumulator (no HBM patch slab).
        acc = jnp.zeros((m, cout), jnp.float32)
        for t, (kh, kw) in enumerate(_TAPS):
            tap = a_scr[kh:kh + ih, kw:kw + iw, :].reshape(m, cin)
            acc = acc + jnp.dot(tap.astype(MXU_INPUT_DTYPE), w_ref[t],
                                preferred_element_type=jnp.float32)
        return acc

    def epilogue(acc, o_ref, stats_ref):
        o_ref[...] = acc.reshape(1, m, cout).astype(o_ref.dtype)
        stats_ref[...] = _stat_rows(acc)      # feeds the *next* BatchNorm

    if res_mode == "identity":
        def kernel(xpad_ref, scale_ref, shift_ref, w_ref, xres_ref,
                   o_ref, stats_ref, a_scr):
            activate_into_scratch(xpad_ref, scale_ref, shift_ref, a_scr)
            acc = conv3x3(a_scr, w_ref)
            acc = acc + xres_ref[0].reshape(m, cout).astype(jnp.float32)
            epilogue(acc, o_ref, stats_ref)
    elif res_mode == "shortcut":
        def kernel(xpad_ref, scale_ref, shift_ref, w_ref,
                   xsc_ref, ssc_ref, bsc_ref, wsc_ref,
                   o_ref, stats_ref, a_scr):
            activate_into_scratch(xpad_ref, scale_ref, shift_ref, a_scr)
            acc = conv3x3(a_scr, w_ref)
            # 1x1 shortcut on relu(bn1(x)) recomputed from the raw decimated input
            # (unpadded -> no border mask needed).
            a_sc = jnp.maximum(xsc_ref[0] * ssc_ref[...] + bsc_ref[...], 0.0)
            cin0 = a_sc.shape[-1]
            acc = acc + jnp.dot(a_sc.reshape(m, cin0).astype(MXU_INPUT_DTYPE),
                                wsc_ref[...], preferred_element_type=jnp.float32)
            epilogue(acc, o_ref, stats_ref)
    else:
        def kernel(xpad_ref, scale_ref, shift_ref, w_ref,
                   o_ref, stats_ref, a_scr):
            activate_into_scratch(xpad_ref, scale_ref, shift_ref, a_scr)
            epilogue(conv3x3(a_scr, w_ref), o_ref, stats_ref)
    return kernel


def image_conv(x_img, scale, shift, w9, residual=None, shortcut=None):
    """y = conv3x3_s1(relu(x*scale+shift)) [+ identity residual | + 1x1 shortcut],
    one grid step per NHWC image, with the next BN's sum/ssq fused as an epilogue.
    TODO(synk): batch several small images per grid step and K-tile the weight for
    v7x at Cin/Cout >= 512 to bound the resident working set under 64 MiB VMEM."""
    n, ih, iw, cin = x_img.shape
    cout = w9.shape[-1]
    m = ih * iw
    xpad = jnp.pad(x_img, ((0, 0), (1, 1), (1, 1), (0, 0)))

    res_mode = None
    in_specs = [pl.BlockSpec((1, ih + 2, iw + 2, cin), lambda i: (i, 0, 0, 0)),
                pl.BlockSpec((1, cin), lambda i: (0, 0)),
                pl.BlockSpec((1, cin), lambda i: (0, 0)),
                pl.BlockSpec((9, cin, cout), lambda i: (0, 0, 0))]
    args = [xpad, scale, shift, w9.astype(MXU_INPUT_DTYPE)]
    if residual is not None:
        res_mode = "identity"
        in_specs.append(pl.BlockSpec((1, ih, iw, cout), lambda i: (i, 0, 0, 0)))
        args.append(residual.astype(jnp.float32))
    elif shortcut is not None:
        res_mode = "shortcut"
        x_sc, s_sc, b_sc, w_sc = shortcut
        cin0 = x_sc.shape[-1]
        in_specs += [pl.BlockSpec((1, ih, iw, cin0), lambda i: (i, 0, 0, 0)),
                     pl.BlockSpec((1, cin0), lambda i: (0, 0)),
                     pl.BlockSpec((1, cin0), lambda i: (0, 0)),
                     pl.BlockSpec((cin0, cout), lambda i: (0, 0))]
        args += [x_sc.astype(jnp.float32), s_sc, b_sc, w_sc.astype(MXU_INPUT_DTYPE)]

    out, stats = pl.pallas_call(
        _make_image_conv_kernel(ih, iw, cin, cout, res_mode),
        out_shape=(jax.ShapeDtypeStruct((n, m, cout), jnp.float32),
                   jax.ShapeDtypeStruct((n, 2, cout), jnp.float32)),
        grid=(n,),
        in_specs=in_specs,
        out_specs=(pl.BlockSpec((1, m, cout), lambda i: (i, 0, 0)),
                   pl.BlockSpec((1, 2, cout), lambda i: (i, 0, 0))),
        scratch_shapes=[pltpu.VMEM((ih + 2, iw + 2, cin), jnp.float32)],
        compiler_params=_cparams(),
    )(*args)
    y_sum, y_ssq = _split_stats(stats)
    return out.reshape(n, ih, iw, cout), y_sum, y_ssq


# ---------------- kernel 3: folded patches matmul (stride>1 conv1 fallback) -----
def _patches_conv_kernel(p_ref, w_ref, o_ref, stats_ref):
    acc = jnp.dot(p_ref[...].astype(MXU_INPUT_DTYPE), w_ref[...],
                  preferred_element_type=jnp.float32)
    o_ref[...] = acc.astype(o_ref.dtype)
    stats_ref[...] = _stat_rows(acc)


def patches_conv(patches, w2d):
    """(M, 9*Cin) @ (9*Cin, Cout) with fused per-channel stats epilogue."""
    m, k = patches.shape
    cout = w2d.shape[-1]
    eb = jnp.dtype(MXU_INPUT_DTYPE).itemsize
    row_bytes = 2 * k * eb + 2 * cout * 4      # double-buffered patch tile + output tile
    resident = k * cout * eb                   # constant-index weight: counted once
    tm = _pick_tile_m(m, row_bytes, resident)
    g = m // tm
    out, stats = pl.pallas_call(
        _patches_conv_kernel,
        out_shape=(jax.ShapeDtypeStruct((m, cout), jnp.float32),
                   jax.ShapeDtypeStruct((g, 2, cout), jnp.float32)),
        grid=(g,),
        in_specs=[pl.BlockSpec((tm, k), lambda i: (i, 0)),
                  pl.BlockSpec((k, cout), lambda i: (0, 0))],
        out_specs=(pl.BlockSpec((tm, cout), lambda i: (i, 0)),
                   pl.BlockSpec((1, 2, cout), lambda i: (i, 0, 0))),
        compiler_params=_cparams(),
    )(patches.astype(MXU_INPUT_DTYPE), w2d.astype(MXU_INPUT_DTYPE))
    s, q = _split_stats(stats)
    return out, s, q


# ---------------- glue: im2col (fallback only), BasicBlock, NetworkBlock --------
def _im2col3x3(a, stride):
    """(N,H,W,C) -> patches (N*Ho*Wo, 9*C), (kh,kw,c)-major to match HWIO weights."""
    n, h, w, c = a.shape
    ho = (h + 2 - 3) // stride + 1
    wo = (w + 2 - 3) // stride + 1
    ap = jnp.pad(a, ((0, 0), (1, 1), (1, 1), (0, 0)))
    cols = []
    for kh in range(3):
        for kw in range(3):
            cols.append(ap[:, kh:kh + (ho - 1) * stride + 1:stride,
                           kw:kw + (wo - 1) * stride + 1:stride, :])
    return jnp.concatenate(cols, axis=-1).reshape(n * ho * wo, 9 * c), ho, wo


def basic_block_forward(x, x_sum, x_ssq, params, stride):
    # x: (N, H, W, Cin) f32; x_sum/x_ssq: per-channel stats of x from its producer.
    n, h, w, cin = x.shape
    cout = params["conv1_w"].shape[-1]
    equal_in_out = (cin == cout)

    scale1, shift1 = _finalize_bn(x_sum, x_ssq, n * h * w,
                                  params["bn1_gamma"], params["bn1_beta"])

    if stride == 1:
        h1, h1_sum, h1_ssq = image_conv(x, scale1, shift1,
                                        params["conv1_w"].reshape(9, cin, cout))
        ho, wo = h, w
    else:
        # Fallback for the strided conv1 (first block of a group): XLA-side
        # activation + im2col feeding the folded Pallas matmul.
        a = jnp.maximum(x * scale1 + shift1, 0.0)
        p1, ho, wo = _im2col3x3(a, stride)
        h1_flat, h1_sum, h1_ssq = patches_conv(p1,
                                               params["conv1_w"].reshape(9 * cin, cout))
        h1 = h1_flat.reshape(n, ho, wo, cout)

    # TODO(synk): F.dropout for dropRate > 0 not implemented (module default 0.0).
    scale2, shift2 = _finalize_bn(h1_sum, h1_ssq, n * ho * wo,
                                  params["bn2_gamma"], params["bn2_beta"])
    w2 = params["conv2_w"].reshape(9, cout, cout)

    if equal_in_out:
        assert stride == 1, "identity residual requires stride 1 (as in PyTorch)"
        y, y_sum, y_ssq = image_conv(h1, scale2, shift2, w2, residual=x)
    else:
        x_dec = x[:, ::stride, ::stride, :]
        y, y_sum, y_ssq = image_conv(
            h1, scale2, shift2, w2,
            shortcut=(x_dec, scale1, shift1,
                      params["shortcut_w"].reshape(cin, cout)))
    return y, y_sum, y_ssq


def init_network_block_params(key, nb_layers, in_planes, out_planes, stride):
    params, strides = [], []
    for i in range(int(nb_layers)):
        cin = in_planes if i == 0 else out_planes
        s = stride if i == 0 else 1
        key, k1, k2, k3 = jax.random.split(key, 4)
        p = {
            "bn1_gamma": jnp.ones((cin,), jnp.float32),
            "bn1_beta": jnp.zeros((cin,), jnp.float32),
            "conv1_w": jax.random.normal(k1, (3, 3, cin, out_planes), jnp.float32)
                       * (2.0 / (9 * out_planes)) ** 0.5,
            "bn2_gamma": jnp.ones((out_planes,), jnp.float32),
            "bn2_beta": jnp.zeros((out_planes,), jnp.float32),
            "conv2_w": jax.random.normal(k2, (3, 3, out_planes, out_planes), jnp.float32)
                       * (2.0 / (9 * out_planes)) ** 0.5,
        }
        if cin != out_planes:
            p["shortcut_w"] = jax.random.normal(k3, (1, 1, cin, out_planes), jnp.float32) \
                              * (2.0 / out_planes) ** 0.5
        params.append(p)
        strides.append(s)
    return params, tuple(strides)


@functools.partial(jax.jit, static_argnums=(2,))
def network_block_forward(x_nchw, params, strides):
    x = jnp.transpose(x_nchw, (0, 2, 3, 1)).astype(jnp.float32)    # NCHW -> NHWC
    n, h, w, c = x.shape
    ch_sum, ch_ssq = channel_stats(x.reshape(n * h * w, c))        # first input only
    for p, s in zip(params, strides):
        x, ch_sum, ch_ssq = basic_block_forward(x, ch_sum, ch_ssq, p, s)
    return jnp.transpose(x, (0, 3, 1, 2))                          # NHWC -> NCHW


# ---------------- pure-JAX reference for validation -----------------------------
def _ref_bn_relu(x, gamma, beta):
    mean = jnp.mean(x, axis=(0, 1, 2))
    var = jnp.mean((x - mean) ** 2, axis=(0, 1, 2))
    return jnp.maximum((x - mean) / jnp.sqrt(var + EPS) * gamma + beta, 0.0)


def _ref_conv(x, w, stride, pad):
    return jax.lax.conv_general_dilated(
        x, w, window_strides=(stride, stride), padding=[(pad, pad), (pad, pad)],
        dimension_numbers=("NHWC", "HWIO", "NHWC"))


def ref_network_block(x_nchw, params, strides):
    x = jnp.transpose(x_nchw, (0, 2, 3, 1)).astype(jnp.float32)
    for p, s in zip(params, strides):
        cin, cout = x.shape[-1], p["conv1_w"].shape[-1]
        a = _ref_bn_relu(x, p["bn1_gamma"], p["bn1_beta"])
        h = _ref_conv(a, p["conv1_w"], s, 1)
        h = _ref_bn_relu(h, p["bn2_gamma"], p["bn2_beta"])
        h = _ref_conv(h, p["conv2_w"], 1, 1)
        res = x if cin == cout else _ref_conv(a, p["shortcut_w"], s, 0)
        x = res + h
    return jnp.transpose(x, (0, 3, 1, 2))


if __name__ == "__main__":
    key = jax.random.PRNGKey(0)
    kx, kp = jax.random.split(key)

    # NetworkBlock(nb_layers=2, in_planes=4, out_planes=8, block=BasicBlock, stride=2)
    N, C, H, W = 2, 4, 16, 16
    x = jax.random.normal(kx, (N, C, H, W), jnp.float32)
    params, strides = init_network_block_params(kp, nb_layers=2, in_planes=4,
                                                out_planes=8, stride=2)

    out = jax.block_until_ready(network_block_forward(x, params, strides))
    ref = jax.block_until_ready(ref_network_block(x, params, strides))

    assert out.shape == (N, 8, H // 2, W // 2), out.shape
    err = float(jnp.max(jnp.abs(out - ref)))
    assert err < 1e-3, f"mismatch vs JAX reference: {err}"
    print("KERNEL_OK")
</pallas_src>

<mosaic_0001>
module attributes {stable_mosaic.version = 11 : i64} {
  func.func @_stats_kernel(%arg0: i32, %arg1: memref<8x128xf32, #tpu.memory_space<vmem>>, %arg2: memref<1x2x128xf32, #tpu.memory_space<vmem>>) attributes {dimension_semantics = [#tpu.dimension_semantics<parallel>], iteration_bounds = array<i64: 2>, scalar_prefetch = 0 : i64, scratch_operands = 0 : i64, tpu.core_type = #tpu.core_type<tc>, window_params = [{transform_indices = @transform_0, window_bounds = array<i64: 8, 128>}, {transform_indices = @transform_1, window_bounds = array<i64: 1, 2, 128>}]} {
    %c0 = arith.constant 0 : index
    %c0_0 = arith.constant 0 : index
    %0 = vector.load %arg1[%c0, %c0_0] : memref<8x128xf32, #tpu.memory_space<vmem>>, vector<8x128xf32>
    %cst = arith.constant dense<0.000000e+00> : vector<128xf32>
    %1 = vector.multi_reduction <add>, %0, %cst [0] : vector<8x128xf32> to vector<128xf32>
    %2 = vector.shape_cast %1 : vector<128xf32> to vector<1x128xf32>
    %3 = arith.mulf %0, %0 : vector<8x128xf32>
    %cst_1 = arith.constant dense<0.000000e+00> : vector<128xf32>
    %4 = vector.multi_reduction <add>, %3, %cst_1 [0] : vector<8x128xf32> to vector<128xf32>
    %5 = vector.shape_cast %4 : vector<128xf32> to vector<1x128xf32>
    %6 = tpu.iota {dimensions = array<i32: 0>} : vector<2x128xi32>
    %c0_i32 = arith.constant 0 : i32
    %7 = vector.broadcast %c0_i32 : i32 to vector<2x128xi32>
    %8 = arith.cmpi eq, %6, %7 : vector<2x128xi32>
    %9 = vector.shape_cast %2 : vector<1x128xf32> to vector<1x128xf32>
    %10 = vector.broadcast %9 : vector<1x128xf32> to vector<2x128xf32>
    %11 = vector.shape_cast %5 : vector<1x128xf32> to vector<1x128xf32>
    %12 = vector.broadcast %11 : vector<1x128xf32> to vector<2x128xf32>
    %13 = arith.select %8, %10, %12 : vector<2x128xi1>, vector<2x128xf32>
    %14 = vector.shape_cast %13 : vector<2x128xf32> to vector<1x2x128xf32>
    %c0_2 = arith.constant 0 : index
    %c0_3 = arith.constant 0 : index
    %c0_4 = arith.constant 0 : index
    %15 = vector.load %arg2[%c0_2, %c0_3, %c0_4] : memref<1x2x128xf32, #tpu.memory_space<vmem>>, vector<1x2x128xf32>
    tpu.vector_store %arg2[%c0_2, %c0_3, %c0_4], %14 {strides = array<i32>} : memref<1x2x128xf32, #tpu.memory_space<vmem>>, vector<1x2x128xf32>,
    return
  }
  func.func @transform_0(%arg0: i32) -> (i32, i32) {
    %c0_i32 = arith.constant 0 : i32
    %c0_i32_0 = arith.constant 0 : i32
    return %arg0, %c0_i32 : i32, i32
  }
  func.func @transform_1(%arg0: i32) -> (i32, i32, i32) {
    %c0_i32 = arith.constant 0 : i32
    %c0_i32_0 = arith.constant 0 : i32
    %c0_i32_1 = arith.constant 0 : i32
    return %arg0, %c0_i32, %c0_i32_0 : i32, i32, i32
  }
}

module attributes {stable_mosaic.version = 11 : i64} {
  func.func @_patches_conv_kernel(%arg0: i32, %arg1: memref<64x36xf32, #tpu.memory_space<vmem>>, %arg2: memref<36x8xf32, #tpu.memory_space<vmem>>, %arg3: memref<64x8xf32, #tpu.memory_space<vmem>>, %arg4: memref<1x2x8xf32, #tpu.memory_space<vmem>>) attributes {dimension_semantics = [#tpu.dimension_semantics<parallel>], iteration_bounds = array<i64: 2>, scalar_prefetch = 0 : i64, scratch_operands = 0 : i64, tpu.core_type = #tpu.core_type<tc>, window_params = [{transform_indices = @transform_0, window_bounds = array<i64: 64, 36>}, {pipeline_mode = #tpu.pipeline_mode<synchronous>, transform_indices = @transform_1, window_bounds = array<i64: 36, 8>}, {transform_indices = @transform_2, window_bounds = array<i64: 64, 8>}, {transform_indices = @transform_3, window_bounds = array<i64: 1, 2, 8>}]} {
    %c0 = arith.constant 0 : index
    %c0_0 = arith.constant 0 : index
    %0 = vector.load %arg1[%c0, %c0_0] : memref<64x36xf32, #tpu.memory_space<vmem>>, vector<64x36xf32>
    %c0_1 = arith.constant 0 : index
    %c0_2 = arith.constant 0 : index
    %1 = vector.load %arg2[%c0_1, %c0_2] : memref<36x8xf32, #tpu.memory_space<vmem>>, vector<36x8xf32>
    %cst = arith.constant dense<0.000000e+00> : vector<64x8xf32>
    %2 = tpu.matmul %0, %1, %cst {dimension_numbers = #tpu.dot_dimension_numbers<[1], [0], [0], [1], [0, 0, 1, 1], [], []>} : vector<64x36xf32>, vector<36x8xf32>, vector<64x8xf32> -> vector<64x8xf32>
    %c0_3 = arith.constant 0 : index
    %c0_4 = arith.constant 0 : index
    %3 = vector.load %arg3[%c0_3, %c0_4] : memref<64x8xf32, #tpu.memory_space<vmem>>, vector<64x8xf32>
    tpu.vector_store %arg3[%c0_3, %c0_4], %2 {strides = array<i32>} : memref<64x8xf32, #tpu.memory_space<vmem>>, vector<64x8xf32>,
    %cst_5 = arith.constant dense<0.000000e+00> : vector<8xf32>
    %4 = vector.multi_reduction <add>, %2, %cst_5 [0] : vector<64x8xf32> to vector<8xf32>
    %5 = vector.shape_cast %4 : vector<8xf32> to vector<1x8xf32>
    %6 = arith.mulf %2, %2 : vector<64x8xf32>
    %cst_6 = arith.constant dense<0.000000e+00> : vector<8xf32>
    %7 = vector.multi_reduction <add>, %6, %cst_6 [0] : vector<64x8xf32> to vector<8xf32>
    %8 = vector.shape_cast %7 : vector<8xf32> to vector<1x8xf32>
    %9 = tpu.iota {dimensions = array<i32: 0>} : vector<2x8xi32>
    %c0_i32 = arith.constant 0 : i32
    %10 = vector.broadcast %c0_i32 : i32 to vector<2x8xi32>
    %11 = arith.cmpi eq, %9, %10 : vector<2x8xi32>
    %12 = vector.shape_cast %5 : vector<1x8xf32> to vector<1x8xf32>
    %13 = vector.broadcast %12 : vector<1x8xf32> to vector<2x8xf32>
    %14 = vector.shape_cast %8 : vector<1x8xf32> to vector<1x8xf32>
    %15 = vector.broadcast %14 : vector<1x8xf32> to vector<2x8xf32>
    %16 = arith.select %11, %13, %15 : vector<2x8xi1>, vector<2x8xf32>
    %17 = vector.shape_cast %16 : vector<2x8xf32> to vector<1x2x8xf32>
    %c0_7 = arith.constant 0 : index
    %c0_8 = arith.constant 0 : index
    %c0_9 = arith.constant 0 : index
    %18 = vector.load %arg4[%c0_7, %c0_8, %c0_9] : memref<1x2x8xf32, #tpu.memory_space<vmem>>, vector<1x2x8xf32>
    tpu.vector_store %arg4[%c0_7, %c0_8, %c0_9], %17 {strides = array<i32>} : memref<1x2x8xf32, #tpu.memory_space<vmem>>, vector<1x2x8xf32>,
    return
  }
  func.func @transform_0(%arg0: i32) -> (i32, i32) {
    %c0_i32 = arith.constant 0 : i32
    %c0_i32_0 = arith.constant 0 : i32
    return %arg0, %c0_i32 : i32, i32
  }
  func.func @transform_1(%arg0: i32) -> (i32, i32) {
    %c0_i32 = arith.constant 0 : i32
    %c0_i32_0 = arith.constant 0 : i32
    %c0_i32_1 = arith.constant 0 : i32
    return %c0_i32, %c0_i32_0 : i32, i32
  }
  func.func @transform_2(%arg0: i32) -> (i32, i32) {
    %c0_i32 = arith.constant 0 : i32
    %c0_i32_0 = arith.constant 0 : i32
    return %arg0, %c0_i32 : i32, i32
  }
  func.func @transform_3(%arg0: i32) -> (i32, i32, i32) {
    %c0_i32 = arith.constant 0 : i32
    %c0_i32_0 = arith.constant 0 : i32
    %c0_i32_1 = arith.constant 0 : i32
    return %arg0, %c0_i32, %c0_i32_0 : i32, i32, i32
  }
}

module attributes {stable_mosaic.version = 11 : i64} {
  func.func @kernel(%arg0: i32, %arg1: memref<1x10x10x8xf32, #tpu.memory_space<vmem>>, %arg2: memref<1x8xf32, #tpu.memory_space<vmem>>, %arg3: memref<1x8xf32, #tpu.memory_space<vmem>>, %arg4: memref<9x8x8xf32, #tpu.memory_space<vmem>>, %arg5: memref<1x8x8x4xf32, #tpu.memory_space<vmem>>, %arg6: memref<1x4xf32, #tpu.memory_space<vmem>>, %arg7: memref<1x4xf32, #tpu.memory_space<vmem>>, %arg8: memref<4x8xf32, #tpu.memory_space<vmem>>, %arg9: memref<1x64x8xf32, #tpu.memory_space<vmem>>, %arg10: memref<1x2x8xf32, #tpu.memory_space<vmem>>, %arg11: memref<10x10x8xf32, #tpu.memory_space<vmem>>) attributes {dimension_semantics = [#tpu.dimension_semantics<parallel>], iteration_bounds = array<i64: 2>, scalar_prefetch = 0 : i64, scratch_operands = 1 : i64, tpu.core_type = #tpu.core_type<tc>, window_params = [{transform_indices = @transform_0, window_bounds = array<i64: 1, 10, 10, 8>}, {pipeline_mode = #tpu.pipeline_mode<synchronous>, transform_indices = @transform_1, window_bounds = array<i64: 1, 8>}, {pipeline_mode = #tpu.pipeline_mode<synchronous>, transform_indices = @transform_2, window_bounds = array<i64: 1, 8>}, {pipeline_mode = #tpu.pipeline_mode<synchronous>, transform_indices = @transform_3, window_bounds = array<i64: 9, 8, 8>}, {transform_indices = @transform_4, window_bounds = array<i64: 1, 8, 8, 4>}, {pipeline_mode = #tpu.pipeline_mode<synchronous>, transform_indices = @transform_5, window_bounds = array<i64: 1, 4>}, {pipeline_mode = #tpu.pipeline_mode<synchronous>, transform_indices = @transform_6, window_bounds = array<i64: 1, 4>}, {pipeline_mode = #tpu.pipeline_mode<synchronous>, transform_indices = @transform_7, window_bounds = array<i64: 4, 8>}, {transform_indices = @transform_8, window_bounds = array<i64: 1, 64, 8>}, {transform_indices = @transform_9, window_bounds = array<i64: 1, 2, 8>}]} {
    %c0 = arith.constant 0 : index
    %c0_0 = arith.constant 0 : index
    %c0_1 = arith.constant 0 : index
    %c0_2 = arith.constant 0 : index
    %0 = vector.load %arg1[%c0, %c0_0, %c0_1, %c0_2] : memref<1x10x10x8xf32, #tpu.memory_space<vmem>>, vector<1x10x10x8xf32>
    %1 = vector.shape_cast %0 : vector<1x10x10x8xf32> to vector<10x10x8xf32>
    %2 = tpu.iota {dimensions = array<i32: 0>} : vector<10x10x8xi32>
    %3 = tpu.iota {dimensions = array<i32: 1>} : vector<10x10x8xi32>
    %c1_i32 = arith.constant 1 : i32
    %4 = vector.broadcast %c1_i32 : i32 to vector<10x10x8xi32>
    %5 = arith.cmpi sge, %2, %4 : vector<10x10x8xi32>
    %c8_i32 = arith.constant 8 : i32
    %6 = vector.broadcast %c8_i32 : i32 to vector<10x10x8xi32>
    %7 = arith.cmpi sle, %2, %6 : vector<10x10x8xi32>
    %8 = arith.andi %5, %7 : vector<10x10x8xi1>
    %c1_i32_3 = arith.constant 1 : i32
    %9 = vector.broadcast %c1_i32_3 : i32 to vector<10x10x8xi32>
    %10 = arith.cmpi sge, %3, %9 : vector<10x10x8xi32>
    %11 = arith.andi %8, %10 : vector<10x10x8xi1>
    %c8_i32_4 = arith.constant 8 : i32
    %12 = vector.broadcast %c8_i32_4 : i32 to vector<10x10x8xi32>
    %13 = arith.cmpi sle, %3, %12 : vector<10x10x8xi32>
    %14 = arith.andi %11, %13 : vector<10x10x8xi1>
    %c0_5 = arith.constant 0 : index
    %c0_6 = arith.constant 0 : index
    %15 = vector.load %arg2[%c0_5, %c0_6] : memref<1x8xf32, #tpu.memory_space<vmem>>, vector<1x8xf32>
    %16 = vector.shape_cast %15 : vector<1x8xf32> to vector<1x1x8xf32>
    %17 = vector.broadcast %16 : vector<1x1x8xf32> to vector<10x10x8xf32>
    %18 = arith.mulf %1, %17 : vector<10x10x8xf32>
    %c0_7 = arith.constant 0 : index
    %c0_8 = arith.constant 0 : index
    %19 = vector.load %arg3[%c0_7, %c0_8] : memref<1x8xf32, #tpu.memory_space<vmem>>, vector<1x8xf32>
    %20 = vector.shape_cast %19 : vector<1x8xf32> to vector<1x1x8xf32>
    %21 = vector.broadcast %20 : vector<1x1x8xf32> to vector<10x10x8xf32>
    %22 = arith.addf %18, %21 : vector<10x10x8xf32>
    %cst = arith.constant 0.000000e+00 : f32
    %23 = vector.broadcast %cst : f32 to vector<10x10x8xf32>
    %24 = arith.maximumf %22, %23 : vector<10x10x8xf32>
    %cst_9 = arith.constant 0.000000e+00 : f32
    %25 = vector.broadcast %cst_9 : f32 to vector<10x10x8xf32>
    %26 = arith.select %14, %24, %25 : vector<10x10x8xi1>, vector<10x10x8xf32>
    %c0_10 = arith.constant 0 : index
    %c0_11 = arith.constant 0 : index
    %c0_12 = arith.constant 0 : index
    %27 = vector.load %arg11[%c0_10, %c0_11, %c0_12] : memref<10x10x8xf32, #tpu.memory_space<vmem>>, vector<10x10x8xf32>
    tpu.vector_store %arg11[%c0_10, %c0_11, %c0_12], %26 {strides = array<i32>} : memref<10x10x8xf32, #tpu.memory_space<vmem>>, vector<10x10x8xf32>,
    %cst_13 = arith.constant 0.000000e+00 : f32
    %28 = vector.broadcast %cst_13 : f32 to vector<64x8xf32>
    %c0_14 = arith.constant 0 : index
    %c0_15 = arith.constant 0 : index
    %c0_16 = arith.constant 0 : index
    %29 = vector.load %arg11[%c0_14, %c0_15, %c0_16] : memref<10x10x8xf32, #tpu.memory_space<vmem>>, vector<8x8x8xf32>
    %30 = vector.shape_cast %29 : vector<8x8x8xf32> to vector<64x8xf32>
    %c0_17 = arith.constant 0 : index
    %c0_18 = arith.constant 0 : index
    %c0_19 = arith.constant 0 : index
    %31 = vector.load %arg4[%c0_17, %c0_18, %c0_19] : memref<9x8x8xf32, #tpu.memory_space<vmem>>, vector<1x8x8xf32>
    %32 = vector.shape_cast %31 : vector<1x8x8xf32> to vector<8x8xf32>
    %cst_20 = arith.constant dense<0.000000e+00> : vector<64x8xf32>
    %33 = tpu.matmul %30, %32, %cst_20 {dimension_numbers = #tpu.dot_dimension_numbers<[1], [0], [0], [1], [0, 0, 1, 1], [], []>} : vector<64x8xf32>, vector<8x8xf32>, vector<64x8xf32> -> vector<64x8xf32>
    %34 = arith.addf %28, %33 : vector<64x8xf32>
    %c0_21 = arith.constant 0 : index
    %c1 = arith.constant 1 : index
    %c0_22 = arith.constant 0 : index
    %35 = vector.load %arg11[%c0_21, %c1, %c0_22] : memref<10x10x8xf32, #tpu.memory_space<vmem>>, vector<8x8x8xf32>
    %36 = vector.shape_cast %35 : vector<8x8x8xf32> to vector<64x8xf32>
    %c1_23 = arith.constant 1 : index
    %c0_24 = arith.constant 0 : index
    %c0_25 = arith.constant 0 : index
    %37 = vector.load %arg4[%c1_23, %c0_24, %c0_25] : memref<9x8x8xf32, #tpu.memory_space<vmem>>, vector<1x8x8xf32>
    %38 = vector.shape_cast %37 : vector<1x8x8xf32> to vector<8x8xf32>
    %cst_26 = arith.constant dense<0.000000e+00> : vector<64x8xf32>
    %39 = tpu.matmul %36, %38, %cst_26 {dimension_numbers = #tpu.dot_dimension_numbers<[1], [0], [0], [1], [0, 0, 1, 1], [], []>} : vector<64x8xf32>, vector<8x8xf32>, vector<64x8xf32> -> vector<64x8xf32>
    %40 = arith.addf %34, %39 : vector<64x8xf32>
    %c0_27 = arith.constant 0 : index
    %c2 = arith.constant 2 : index
    %c0_28 = arith.constant 0 : index
    %41 = vector.load %arg11[%c0_27, %c2, %c0_28] : memref<10x10x8xf32, #tpu.memory_space<vmem>>, vector<8x8x8xf32>
    %42 = vector.shape_cast %41 : vector<8x8x8xf32> to vector<64x8xf32>
    %c2_29 = arith.constant 2 : index
    %c0_30 = arith.constant 0 : index
    %c0_31 = arith.constant 0 : index
    %43 = vector.load %arg4[%c2_29, %c0_30, %c0_31] : memref<9x8x8xf32, #tpu.memory_space<vmem>>, vector<1x8x8xf32>
    %44 = vector.shape_cast %43 : vector<1x8x8xf32> to vector<8x8xf32>
    %cst_32 = arith.constant dense<0.000000e+00> : vector<64x8xf32>
    %45 = tpu.matmul %42, %44, %cst_32 {dimension_numbers = #tpu.dot_dimension_numbers<[1], [0], [0], [1], [0, 0, 1, 1], [], []>} : vector<64x8xf32>, vector<8x8xf32>, vector<64x8xf32> -> vector<64x8xf32>
    %46 = arith.addf %40, %45 : vector<64x8xf32>
    %c1_33 = arith.constant 1 : index
    %c0_34 = arith.constant 0 : index
    %c0_35 = arith.constant 0 : index
    %47 = vector.load %arg11[%c1_33, %c0_34, %c0_35] : memref<10x10x8xf32, #tpu.memory_space<vmem>>, vector<8x8x8xf32>
    %48 = vector.shape_cast %47 : vector<8x8x8xf32> to vector<64x8xf32>
    %c3 = arith.constant 3 : index
    %c0_36 = arith.constant 0 : index
    %c0_37 = arith.constant 0 : index
    %49 = vector.load %arg4[%c3, %c0_36, %c0_37] : memref<9x8x8xf32, #tpu.memory_space<vmem>>, vector<1x8x8xf32>
    %50 = vector.shape_cast %49 : vector<1x8x8xf32> to vector<8x8xf32>
    %cst_38 = arith.constant dense<0.000000e+00> : vector<64x8xf32>
    %51 = tpu.matmul %48, %50, %cst_38 {dimension_numbers = #tpu.dot_dimension_numbers<[1], [0], [0], [1], [0, 0, 1, 1], [], []>} : vector<64x8xf32>, vector<8x8xf32>, vector<64x8xf32> -> vector<64x8xf32>
    %52 = arith.addf %46, %51 : vector<64x8xf32>
    %c1_39 = arith.constant 1 : index
    %c1_40 = arith.constant 1 : index
    %c0_41 = arith.constant 0 : index
    %53 = vector.load %arg11[%c1_39, %c1_40, %c0_41] : memref<10x10x8xf32, #tpu.memory_space<vmem>>, vector<8x8x8xf32>
    %54 = vector.shape_cast %53 : vector<8x8x8xf32> to vector<64x8xf32>
    %c4 = arith.constant 4 : index
    %c0_42 = arith.constant 0 : index
    %c0_43 = arith.constant 0 : index
    %55 = vector.load %arg4[%c4, %c0_42, %c0_43] : memref<9x8x8xf32, #tpu.memory_space<vmem>>, vector<1x8x8xf32>
    %56 = vector.shape_cast %55 : vector<1x8x8xf32> to vector<8x8xf32>
    %cst_44 = arith.constant dense<0.000000e+00> : vector<64x8xf32>
    %57 = tpu.matmul %54, %56, %cst_44 {dimension_numbers = #tpu.dot_dimension_numbers<[1], [0], [0], [1], [0, 0, 1, 1], [], []>} : vector<64x8xf32>, vector<8x8xf32>, vector<64x8xf32> -> vector<64x8xf32>
    %58 = arith.addf %52, %57 : vector<64x8xf32>
    %c1_45 = arith.constant 1 : index
    %c2_46 = arith.constant 2 : index
    %c0_47 = arith.constant 0 : index
    %59 = vector.load %arg11[%c1_45, %c2_46, %c0_47] : memref<10x10x8xf32, #tpu.memory_space<vmem>>, vector<8x8x8xf32>
    %60 = vector.shape_cast %59 : vector<8x8x8xf32> to vector<64x8xf32>
    %c5 = arith.constant 5 : index
    %c0_48 = arith.constant 0 : index
    %c0_49 = arith.constant 0 : index
    %61 = vector.load %arg4[%c5, %c0_48, %c0_49] : memref<9x8x8xf32, #tpu.memory_space<vmem>>, vector<1x8x8xf32>
    %62 = vector.shape_cast %61 : vector<1x8x8xf32> to vector<8x8xf32>
    %cst_50 = arith.constant dense<0.000000e+00> : vector<64x8xf32>
    %63 = tpu.matmul %60, %62, %cst_50 {dimension_numbers = #tpu.dot_dimension_numbers<[1], [0], [0], [1], [0, 0, 1, 1], [], []>} : vector<64x8xf32>, vector<8x8xf32>, vector<64x8xf32> -> vector<64x8xf32>
    %64 = arith.addf %58, %63 : vector<64x8xf32>
    %c2_51 = arith.constant 2 : index
    %c0_52 = arith.constant 0 : index
    %c0_53 = arith.constant 0 : index
    %65 = vector.load %arg11[%c2_51, %c0_52, %c0_53] : memref<10x10x8xf32, #tpu.memory_space<vmem>>, vector<8x8x8xf32>
    %66 = vector.shape_cast %65 : vector<8x8x8xf32> to vector<64x8xf32>
    %c6 = arith.constant 6 : index
    %c0_54 = arith.constant 0 : index
    %c0_55 = arith.constant 0 : index
    %67 = vector.load %arg4[%c6, %c0_54, %c0_55] : memref<9x8x8xf32, #tpu.memory_space<vmem>>, vector<1x8x8xf32>
    %68 = vector.shape_cast %67 : vector<1x8x8xf32> to vector<8x8xf32>
    %cst_56 = arith.constant dense<0.000000e+00> : vector<64x8xf32>
    %69 = tpu.matmul %66, %68, %cst_56 {dimension_numbers = #tpu.dot_dimension_numbers<[1], [0], [0], [1], [0, 0, 1, 1], [], []>} : vector<64x8xf32>, vector<8x8xf32>, vector<64x8xf32> -> vector<64x8xf32>
    %70 = arith.addf %64, %69 : vector<64x8xf32>
    %c2_57 = arith.constant 2 : index
    %c1_58 = arith.constant 1 : index
    %c0_59 = arith.constant 0 : index
    %71 = vector.load %arg11[%c2_57, %c1_58, %c0_59] : memref<10x10x8xf32, #tpu.memory_space<vmem>>, vector<8x8x8xf32>
    %72 = vector.shape_cast %71 : vector<8x8x8xf32> to vector<64x8xf32>
    %c7 = arith.constant 7 : index
    %c0_60 = arith.constant 0 : index
    %c0_61 = arith.constant 0 : index
    %73 = vector.load %arg4[%c7, %c0_60, %c0_61] : memref<9x8x8xf32, #tpu.memory_space<vmem>>, vector<1x8x8xf32>
    %74 = vector.shape_cast %73 : vector<1x8x8xf32> to vector<8x8xf32>
    %cst_62 = arith.constant dense<0.000000e+00> : vector<64x8xf32>
    %75 = tpu.matmul %72, %74, %cst_62 {dimension_numbers = #tpu.dot_dimension_numbers<[1], [0], [0], [1], [0, 0, 1, 1], [], []>} : vector<64x8xf32>, vector<8x8xf32>, vector<64x8xf32> -> vector<64x8xf32>
    %76 = arith.addf %70, %75 : vector<64x8xf32>
    %c2_63 = arith.constant 2 : index
    %c2_64 = arith.constant 2 : index
    %c0_65 = arith.constant 0 : index
    %77 = vector.load %arg11[%c2_63, %c2_64, %c0_65] : memref<10x10x8xf32, #tpu.memory_space<vmem>>, vector<8x8x8xf32>
    %78 = vector.shape_cast %77 : vector<8x8x8xf32> to vector<64x8xf32>
    %c8 = arith.constant 8 : index
    %c0_66 = arith.constant 0 : index
    %c0_67 = arith.constant 0 : index
    %79 = vector.load %arg4[%c8, %c0_66, %c0_67] : memref<9x8x8xf32, #tpu.memory_space<vmem>>, vector<1x8x8xf32>
    %80 = vector.shape_cast %79 : vector<1x8x8xf32> to vector<8x8xf32>
    %cst_68 = arith.constant dense<0.000000e+00> : vector<64x8xf32>
    %81 = tpu.matmul %78, %80, %cst_68 {dimension_numbers = #tpu.dot_dimension_numbers<[1], [0], [0], [1], [0, 0, 1, 1], [], []>} : vector<64x8xf32>, vector<8x8xf32>, vector<64x8xf32> -> vector<64x8xf32>
    %82 = arith.addf %76, %81 : vector<64x8xf32>
    %c0_69 = arith.constant 0 : index
    %c0_70 = arith.constant 0 : index
    %c0_71 = arith.constant 0 : index
    %c0_72 = arith.constant 0 : index
    %83 = vector.load %arg5[%c0_69, %c0_70, %c0_71, %c0_72] : memref<1x8x8x4xf32, #tpu.memory_space<vmem>>, vector<1x8x8x4xf32>
    %84 = vector.shape_cast %83 : vector<1x8x8x4xf32> to vector<8x8x4xf32>
    %c0_73 = arith.constant 0 : index
    %c0_74 = arith.constant 0 : index
    %85 = vector.load %arg6[%c0_73, %c0_74] : memref<1x4xf32, #tpu.memory_space<vmem>>, vector<1x4xf32>
    %86 = vector.shape_cast %85 : vector<1x4xf32> to vector<1x1x4xf32>
    %87 = vector.broadcast %86 : vector<1x1x4xf32> to vector<8x8x4xf32>
    %88 = arith.mulf %84, %87 : vector<8x8x4xf32>
    %c0_75 = arith.constant 0 : index
    %c0_76 = arith.constant 0 : index
    %89 = vector.load %arg7[%c0_75, %c0_76] : memref<1x4xf32, #tpu.memory_space<vmem>>, vector<1x4xf32>
    %90 = vector.shape_cast %89 : vector<1x4xf32> to vector<1x1x4xf32>
    %91 = vector.broadcast %90 : vector<1x1x4xf32> to vector<8x8x4xf32>
    %92 = arith.addf %88, %91 : vector<8x8x4xf32>
    %cst_77 = arith.constant 0.000000e+00 : f32
    %93 = vector.broadcast %cst_77 : f32 to vector<8x8x4xf32>
    %94 = arith.maximumf %92, %93 : vector<8x8x4xf32>
    %95 = vector.shape_cast %94 : vector<8x8x4xf32> to vector<64x4xf32>
    %c0_78 = arith.constant 0 : index
    %c0_79 = arith.constant 0 : index
    %96 = vector.load %arg8[%c0_78, %c0_79] : memref<4x8xf32, #tpu.memory_space<vmem>>, vector<4x8xf32>
    %cst_80 = arith.constant dense<0.000000e+00> : vector<64x8xf32>
    %97 = tpu.matmul %95, %96, %cst_80 {dimension_numbers = #tpu.dot_dimension_numbers<[1], [0], [0], [1], [0, 0, 1, 1], [], []>} : vector<64x4xf32>, vector<4x8xf32>, vector<64x8xf32> -> vector<64x8xf32>
    %98 = arith.addf %82, %97 : vector<64x8xf32>
    %99 = vector.shape_cast %98 : vector<64x8xf32> to vector<1x64x8xf32>
    %c0_81 = arith.constant 0 : index
    %c0_82 = arith.constant 0 : index
    %c0_83 = arith.constant 0 : index
    %100 = vector.load %arg9[%c0_81, %c0_82, %c0_83] : memref<1x64x8xf32, #tpu.memory_space<vmem>>, vector<1x64x8xf32>
    tpu.vector_store %arg9[%c0_81, %c0_82, %c0_83], %99 {strides = array<i32>} : memref<1x64x8xf32, #tpu.memory_space<vmem>>, vector<1x64x8xf32>,
    %cst_84 = arith.constant dense<0.000000e+00> : vector<8xf32>
    %101 = vector.multi_reduction <add>, %98, %cst_84 [0] : vector<64x8xf32> to vector<8xf32>
    %102 = vector.shape_cast %101 : vector<8xf32> to vector<1x8xf32>
    %103 = arith.mulf %98, %98 : vector<64x8xf32>
    %cst_85 = arith.constant dense<0.000000e+00> : vector<8xf32>
    %104 = vector.multi_reduction <add>, %103, %cst_85 [0] : vector<64x8xf32> to vector<8xf32>
    %105 = vector.shape_cast %104 : vector<8xf32> to vector<1x8xf32>
    %106 = tpu.iota {dimensions = array<i32: 0>} : vector<2x8xi32>
    %c0_i32 = arith.constant 0 : i32
    %107 = vector.broadcast %c0_i32 : i32 to vector<2x8xi32>
    %108 = arith.cmpi eq, %106, %107 : vector<2x8xi32>
    %109 = vector.shape_cast %102 : vector<1x8xf32> to vector<1x8xf32>
    %110 = vector.broadcast %109 : vector<1x8xf32> to vector<2x8xf32>
    %111 = vector.shape_cast %105 : vector<1x8xf32> to vector<1x8xf32>
    %112 = vector.broadcast %111 : vector<1x8xf32> to vector<2x8xf32>
    %113 = arith.select %108, %110, %112 : vector<2x8xi1>, vector<2x8xf32>
    %114 = vector.shape_cast %113 : vector<2x8xf32> to vector<1x2x8xf32>
    %c0_86 = arith.constant 0 : index
    %c0_87 = arith.constant 0 : index
    %c0_88 = arith.constant 0 : index
    %115 = vector.load %arg10[%c0_86, %c0_87, %c0_88] : memref<1x2x8xf32, #tpu.memory_space<vmem>>, vector<1x2x8xf32>
    tpu.vector_store %arg10[%c0_86, %c0_87, %c0_88], %114 {strides = array<i32>} : memref<1x2x8xf32, #tpu.memory_space<vmem>>, vector<1x2x8xf32>,
    return
  }
  func.func @transform_0(%arg0: i32) -> (i32, i32, i32, i32) {
    %c0_i32 = arith.constant 0 : i32
    %c0_i32_0 = arith.constant 0 : i32
    %c0_i32_1 = arith.constant 0 : i32
    %c0_i32_2 = arith.constant 0 : i32
    return %arg0, %c0_i32, %c0_i32_0, %c0_i32_1 : i32, i32, i32, i32
  }
  func.func @transform_1(%arg0: i32) -> (i32, i32) {
    %c0_i32 = arith.constant 0 : i32
    %c0_i32_0 = arith.constant 0 : i32
    %c0_i32_1 = arith.constant 0 : i32
    return %c0_i32, %c0_i32_0 : i32, i32
  }
  func.func @transform_2(%arg0: i32) -> (i32, i32) {
    %c0_i32 = arith.constant 0 : i32
    %c0_i32_0 = arith.constant 0 : i32
    %c0_i32_1 = arith.constant 0 : i32
    return %c0_i32, %c0_i32_0 : i32, i32
  }
  func.func @transform_3(%arg0: i32) -> (i32, i32, i32) {
    %c0_i32 = arith.constant 0 : i32
    %c0_i32_0 = arith.constant 0 : i32
    %c0_i32_1 = arith.constant 0 : i32
    %c0_i32_2 = arith.constant 0 : i32
    return %c0_i32, %c0_i32_0, %c0_i32_1 : i32, i32, i32
  }
  func.func @transform_4(%arg0: i32) -> (i32, i32, i32, i32) {
    %c0_i32 = arith.constant 0 : i32
    %c0_i32_0 = arith.constant 0 : i32
    %c0_i32_1 = arith.constant 0 : i32
    %c0_i32_2 = arith.constant 0 : i32
    return %arg0, %c0_i32, %c0_i32_0, %c0_i32_1 : i32, i32, i32, i32
  }
  func.func @transform_5(%arg0: i32) -> (i32, i32) {
    %c0_i32 = arith.constant 0 : i32
    %c0_i32_0 = arith.constant 0 : i32
    %c0_i32_1 = arith.constant 0 : i32
    return %c0_i32, %c0_i32_0 : i32, i32
  }
  func.func @transform_6(%arg0: i32) -> (i32, i32) {
    %c0_i32 = arith.constant 0 : i32
    %c0_i32_0 = arith.constant 0 : i32
    %c0_i32_1 = arith.constant 0 : i32
    return %c0_i32, %c0_i32_0 : i32, i32
  }
  func.func @transform_7(%arg0: i32) -> (i32, i32) {
    %c0_i32 = arith.constant 0 : i32
    %c0_i32_0 = arith.constant 0 : i32
    %c0_i32_1 = arith.constant 0 : i32
    return %c0_i32, %c0_i32_0 : i32, i32
  }
  func.func @transform_8(%arg0: i32) -> (i32, i32, i32) {
    %c0_i32 = arith.constant 0 : i32
    %c0_i32_0 = arith.constant 0 : i32
    %c0_i32_1 = arith.constant 0 : i32
    return %arg0, %c0_i32, %c0_i32_0 : i32, i32, i32
  }
  func.func @transform_9(%arg0: i32) -> (i32, i32, i32) {
    %c0_i32 = arith.constant 0 : i32
    %c0_i32_0 = arith.constant 0 : i32
    %c0_i32_1 = arith.constant 0 : i32
    return %arg0, %c0_i32, %c0_i32_0 : i32, i32, i32
  }
}

module attributes {stable_mosaic.version = 11 : i64} {
  func.func @kernel(%arg0: i32, %arg1: memref<1x10x10x8xf32, #tpu.memory_space<vmem>>, %arg2: memref<1x8xf32, #tpu.memory_space<vmem>>, %arg3: memref<1x8xf32, #tpu.memory_space<vmem>>, %arg4: memref<9x8x8xf32, #tpu.memory_space<vmem>>, %arg5: memref<1x64x8xf32, #tpu.memory_space<vmem>>, %arg6: memref<1x2x8xf32, #tpu.memory_space<vmem>>, %arg7: memref<10x10x8xf32, #tpu.memory_space<vmem>>) attributes {dimension_semantics = [#tpu.dimension_semantics<parallel>], iteration_bounds = array<i64: 2>, scalar_prefetch = 0 : i64, scratch_operands = 1 : i64, tpu.core_type = #tpu.core_type<tc>, window_params = [{transform_indices = @transform_0, window_bounds = array<i64: 1, 10, 10, 8>}, {pipeline_mode = #tpu.pipeline_mode<synchronous>, transform_indices = @transform_1, window_bounds = array<i64: 1, 8>}, {pipeline_mode = #tpu.pipeline_mode<synchronous>, transform_indices = @transform_2, window_bounds = array<i64: 1, 8>}, {pipeline_mode = #tpu.pipeline_mode<synchronous>, transform_indices = @transform_3, window_bounds = array<i64: 9, 8, 8>}, {transform_indices = @transform_4, window_bounds = array<i64: 1, 64, 8>}, {transform_indices = @transform_5, window_bounds = array<i64: 1, 2, 8>}]} {
    %c0 = arith.constant 0 : index
    %c0_0 = arith.constant 0 : index
    %c0_1 = arith.constant 0 : index
    %c0_2 = arith.constant 0 : index
    %0 = vector.load %arg1[%c0, %c0_0, %c0_1, %c0_2] : memref<1x10x10x8xf32, #tpu.memory_space<vmem>>, vector<1x10x10x8xf32>
    %1 = vector.shape_cast %0 : vector<1x10x10x8xf32> to vector<10x10x8xf32>
    %2 = tpu.iota {dimensions = array<i32: 0>} : vector<10x10x8xi32>
    %3 = tpu.iota {dimensions = array<i32: 1>} : vector<10x10x8xi32>
    %c1_i32 = arith.constant 1 : i32
    %4 = vector.broadcast %c1_i32 : i32 to vector<10x10x8xi32>
    %5 = arith.cmpi sge, %2, %4 : vector<10x10x8xi32>
    %c8_i32 = arith.constant 8 : i32
    %6 = vector.broadcast %c8_i32 : i32 to vector<10x10x8xi32>
    %7 = arith.cmpi sle, %2, %6 : vector<10x10x8xi32>
    %8 = arith.andi %5, %7 : vector<10x10x8xi1>
    %c1_i32_3 = arith.constant 1 : i32
    %9 = vector.broadcast %c1_i32_3 : i32 to vector<10x10x8xi32>
    %10 = arith.cmpi sge, %3, %9 : vector<10x10x8xi32>
    %11 = arith.andi %8, %10 : vector<10x10x8xi1>
    %c8_i32_4 = arith.constant 8 : i32
    %12 = vector.broadcast %c8_i32_4 : i32 to vector<10x10x8xi32>
    %13 = arith.cmpi sle, %3, %12 : vector<10x10x8xi32>
    %14 = arith.andi %11, %13 : vector<10x10x8xi1>
    %c0_5 = arith.constant 0 : index
    %c0_6 = arith.constant 0 : index
    %15 = vector.load %arg2[%c0_5, %c0_6] : memref<1x8xf32, #tpu.memory_space<vmem>>, vector<1x8xf32>
    %16 = vector.shape_cast %15 : vector<1x8xf32> to vector<1x1x8xf32>
    %17 = vector.broadcast %16 : vector<1x1x8xf32> to vector<10x10x8xf32>
    %18 = arith.mulf %1, %17 : vector<10x10x8xf32>
    %c0_7 = arith.constant 0 : index
    %c0_8 = arith.constant 0 : index
    %19 = vector.load %arg3[%c0_7, %c0_8] : memref<1x8xf32, #tpu.memory_space<vmem>>, vector<1x8xf32>
    %20 = vector.shape_cast %19 : vector<1x8xf32> to vector<1x1x8xf32>
    %21 = vector.broadcast %20 : vector<1x1x8xf32> to vector<10x10x8xf32>
    %22 = arith.addf %18, %21 : vector<10x10x8xf32>
    %cst = arith.constant 0.000000e+00 : f32
    %23 = vector.broadcast %cst : f32 to vector<10x10x8xf32>
    %24 = arith.maximumf %22, %23 : vector<10x10x8xf32>
    %cst_9 = arith.constant 0.000000e+00 : f32
    %25 = vector.broadcast %cst_9 : f32 to vector<10x10x8xf32>
    %26 = arith.select %14, %24, %25 : vector<10x10x8xi1>, vector<10x10x8xf32>
    %c0_10 = arith.constant 0 : index
    %c0_11 = arith.constant 0 : index
    %c0_12 = arith.constant 0 : index
    %27 = vector.load %arg7[%c0_10, %c0_11, %c0_12] : memref<10x10x8xf32, #tpu.memory_space<vmem>>, vector<10x10x8xf32>
    tpu.vector_store %arg7[%c0_10, %c0_11, %c0_12], %26 {strides = array<i32>} : memref<10x10x8xf32, #tpu.memory_space<vmem>>, vector<10x10x8xf32>,
    %cst_13 = arith.constant 0.000000e+00 : f32
    %28 = vector.broadcast %cst_13 : f32 to vector<64x8xf32>
    %c0_14 = arith.constant 0 : index
    %c0_15 = arith.constant 0 : index
    %c0_16 = arith.constant 0 : index
    %29 = vector.load %arg7[%c0_14, %c0_15, %c0_16] : memref<10x10x8xf32, #tpu.memory_space<vmem>>, vector<8x8x8xf32>
    %30 = vector.shape_cast %29 : vector<8x8x8xf32> to vector<64x8xf32>
    %c0_17 = arith.constant 0 : index
    %c0_18 = arith.constant 0 : index
    %c0_19 = arith.constant 0 : index
    %31 = vector.load %arg4[%c0_17, %c0_18, %c0_19] : memref<9x8x8xf32, #tpu.memory_space<vmem>>, vector<1x8x8xf32>
    %32 = vector.shape_cast %31 : vector<1x8x8xf32> to vector<8x8xf32>
    %cst_20 = arith.constant dense<0.000000e+00> : vector<64x8xf32>
    %33 = tpu.matmul %30, %32, %cst_20 {dimension_numbers = #tpu.dot_dimension_numbers<[1], [0], [0], [1], [0, 0, 1, 1], [], []>} : vector<64x8xf32>, vector<8x8xf32>, vector<64x8xf32> -> vector<64x8xf32>
    %34 = arith.addf %28, %33 : vector<64x8xf32>
    %c0_21 = arith.constant 0 : index
    %c1 = arith.constant 1 : index
    %c0_22 = arith.constant 0 : index
    %35 = vector.load %arg7[%c0_21, %c1, %c0_22] : memref<10x10x8xf32, #tpu.memory_space<vmem>>, vector<8x8x8xf32>
    %36 = vector.shape_cast %35 : vector<8x8x8xf32> to vector<64x8xf32>
    %c1_23 = arith.constant 1 : index
    %c0_24 = arith.constant 0 : index
    %c0_25 = arith.constant 0 : index
    %37 = vector.load %arg4[%c1_23, %c0_24, %c0_25] : memref<9x8x8xf32, #tpu.memory_space<vmem>>, vector<1x8x8xf32>
    %38 = vector.shape_cast %37 : vector<1x8x8xf32> to vector<8x8xf32>
    %cst_26 = arith.constant dense<0.000000e+00> : vector<64x8xf32>
    %39 = tpu.matmul %36, %38, %cst_26 {dimension_numbers = #tpu.dot_dimension_numbers<[1], [0], [0], [1], [0, 0, 1, 1], [], []>} : vector<64x8xf32>, vector<8x8xf32>, vector<64x8xf32> -> vector<64x8xf32>
    %40 = arith.addf %34, %39 : vector<64x8xf32>
    %c0_27 = arith.constant 0 : index
    %c2 = arith.constant 2 : index
    %c0_28 = arith.constant 0 : index
    %41 = vector.load %arg7[%c0_27, %c2, %c0_28] : memref<10x10x8xf32, #tpu.memory_space<vmem>>, vector<8x8x8xf32>
    %42 = vector.shape_cast %41 : vector<8x8x8xf32> to vector<64x8xf32>
    %c2_29 = arith.constant 2 : index
    %c0_30 = arith.constant 0 : index
    %c0_31 = arith.constant 0 : index
    %43 = vector.load %arg4[%c2_29, %c0_30, %c0_31] : memref<9x8x8xf32, #tpu.memory_space<vmem>>, vector<1x8x8xf32>
    %44 = vector.shape_cast %43 : vector<1x8x8xf32> to vector<8x8xf32>
    %cst_32 = arith.constant dense<0.000000e+00> : vector<64x8xf32>
    %45 = tpu.matmul %42, %44, %cst_32 {dimension_numbers = #tpu.dot_dimension_numbers<[1], [0], [0], [1], [0, 0, 1, 1], [], []>} : vector<64x8xf32>, vector<8x8xf32>, vector<64x8xf32> -> vector<64x8xf32>
    %46 = arith.addf %40, %45 : vector<64x8xf32>
    %c1_33 = arith.constant 1 : index
    %c0_34 = arith.constant 0 : index
    %c0_35 = arith.constant 0 : index
    %47 = vector.load %arg7[%c1_33, %c0_34, %c0_35] : memref<10x10x8xf32, #tpu.memory_space<vmem>>, vector<8x8x8xf32>
    %48 = vector.shape_cast %47 : vector<8x8x8xf32> to vector<64x8xf32>
    %c3 = arith.constant 3 : index
    %c0_36 = arith.constant 0 : index
    %c0_37 = arith.constant 0 : index
    %49 = vector.load %arg4[%c3, %c0_36, %c0_37] : memref<9x8x8xf32, #tpu.memory_space<vmem>>, vector<1x8x8xf32>
    %50 = vector.shape_cast %49 : vector<1x8x8xf32> to vector<8x8xf32>
    %cst_38 = arith.constant dense<0.000000e+00> : vector<64x8xf32>
    %51 = tpu.matmul %48, %50, %cst_38 {dimension_numbers = #tpu.dot_dimension_numbers<[1], [0], [0], [1], [0, 0, 1, 1], [], []>} : vector<64x8xf32>, vector<8x8xf32>, vector<64x8xf32> -> vector<64x8xf32>
    %52 = arith.addf %46, %51 : vector<64x8xf32>
    %c1_39 = arith.constant 1 : index
    %c1_40 = arith.constant 1 : index
    %c0_41 = arith.constant 0 : index
    %53 = vector.load %arg7[%c1_39, %c1_40, %c0_41] : memref<10x10x8xf32, #tpu.memory_space<vmem>>, vector<8x8x8xf32>
    %54 = vector.shape_cast %53 : vector<8x8x8xf32> to vector<64x8xf32>
    %c4 = arith.constant 4 : index
    %c0_42 = arith.constant 0 : index
    %c0_43 = arith.constant 0 : index
    %55 = vector.load %arg4[%c4, %c0_42, %c0_43] : memref<9x8x8xf32, #tpu.memory_space<vmem>>, vector<1x8x8xf32>
    %56 = vector.shape_cast %55 : vector<1x8x8xf32> to vector<8x8xf32>
    %cst_44 = arith.constant dense<0.000000e+00> : vector<64x8xf32>
    %57 = tpu.matmul %54, %56, %cst_44 {dimension_numbers = #tpu.dot_dimension_numbers<[1], [0], [0], [1], [0, 0, 1, 1], [], []>} : vector<64x8xf32>, vector<8x8xf32>, vector<64x8xf32> -> vector<64x8xf32>
    %58 = arith.addf %52, %57 : vector<64x8xf32>
    %c1_45 = arith.constant 1 : index
    %c2_46 = arith.constant 2 : index
    %c0_47 = arith.constant 0 : index
    %59 = vector.load %arg7[%c1_45, %c2_46, %c0_47] : memref<10x10x8xf32, #tpu.memory_space<vmem>>, vector<8x8x8xf32>
    %60 = vector.shape_cast %59 : vector<8x8x8xf32> to vector<64x8xf32>
    %c5 = arith.constant 5 : index
    %c0_48 = arith.constant 0 : index
    %c0_49 = arith.constant 0 : index
    %61 = vector.load %arg4[%c5, %c0_48, %c0_49] : memref<9x8x8xf32, #tpu.memory_space<vmem>>, vector<1x8x8xf32>
    %62 = vector.shape_cast %61 : vector<1x8x8xf32> to vector<8x8xf32>
    %cst_50 = arith.constant dense<0.000000e+00> : vector<64x8xf32>
    %63 = tpu.matmul %60, %62, %cst_50 {dimension_numbers = #tpu.dot_dimension_numbers<[1], [0], [0], [1], [0, 0, 1, 1], [], []>} : vector<64x8xf32>, vector<8x8xf32>, vector<64x8xf32> -> vector<64x8xf32>
    %64 = arith.addf %58, %63 : vector<64x8xf32>
    %c2_51 = arith.constant 2 : index
    %c0_52 = arith.constant 0 : index
    %c0_53 = arith.constant 0 : index
    %65 = vector.load %arg7[%c2_51, %c0_52, %c0_53] : memref<10x10x8xf32, #tpu.memory_space<vmem>>, vector<8x8x8xf32>
    %66 = vector.shape_cast %65 : vector<8x8x8xf32> to vector<64x8xf32>
    %c6 = arith.constant 6 : index
    %c0_54 = arith.constant 0 : index
    %c0_55 = arith.constant 0 : index
    %67 = vector.load %arg4[%c6, %c0_54, %c0_55] : memref<9x8x8xf32, #tpu.memory_space<vmem>>, vector<1x8x8xf32>
    %68 = vector.shape_cast %67 : vector<1x8x8xf32> to vector<8x8xf32>
    %cst_56 = arith.constant dense<0.000000e+00> : vector<64x8xf32>
    %69 = tpu.matmul %66, %68, %cst_56 {dimension_numbers = #tpu.dot_dimension_numbers<[1], [0], [0], [1], [0, 0, 1, 1], [], []>} : vector<64x8xf32>, vector<8x8xf32>, vector<64x8xf32> -> vector<64x8xf32>
    %70 = arith.addf %64, %69 : vector<64x8xf32>
    %c2_57 = arith.constant 2 : index
    %c1_58 = arith.constant 1 : index
    %c0_59 = arith.constant 0 : index
    %71 = vector.load %arg7[%c2_57, %c1_58, %c0_59] : memref<10x10x8xf32, #tpu.memory_space<vmem>>, vector<8x8x8xf32>
    %72 = vector.shape_cast %71 : vector<8x8x8xf32> to vector<64x8xf32>
    %c7 = arith.constant 7 : index
    %c0_60 = arith.constant 0 : index
    %c0_61 = arith.constant 0 : index
    %73 = vector.load %arg4[%c7, %c0_60, %c0_61] : memref<9x8x8xf32, #tpu.memory_space<vmem>>, vector<1x8x8xf32>
    %74 = vector.shape_cast %73 : vector<1x8x8xf32> to vector<8x8xf32>
    %cst_62 = arith.constant dense<0.000000e+00> : vector<64x8xf32>
    %75 = tpu.matmul %72, %74, %cst_62 {dimension_numbers = #tpu.dot_dimension_numbers<[1], [0], [0], [1], [0, 0, 1, 1], [], []>} : vector<64x8xf32>, vector<8x8xf32>, vector<64x8xf32> -> vector<64x8xf32>
    %76 = arith.addf %70, %75 : vector<64x8xf32>
    %c2_63 = arith.constant 2 : index
    %c2_64 = arith.constant 2 : index
    %c0_65 = arith.constant 0 : index
    %77 = vector.load %arg7[%c2_63, %c2_64, %c0_65] : memref<10x10x8xf32, #tpu.memory_space<vmem>>, vector<8x8x8xf32>
    %78 = vector.shape_cast %77 : vector<8x8x8xf32> to vector<64x8xf32>
    %c8 = arith.constant 8 : index
    %c0_66 = arith.constant 0 : index
    %c0_67 = arith.constant 0 : index
    %79 = vector.load %arg4[%c8, %c0_66, %c0_67] : memref<9x8x8xf32, #tpu.memory_space<vmem>>, vector<1x8x8xf32>
    %80 = vector.shape_cast %79 : vector<1x8x8xf32> to vector<8x8xf32>
    %cst_68 = arith.constant dense<0.000000e+00> : vector<64x8xf32>
    %81 = tpu.matmul %78, %80, %cst_68 {dimension_numbers = #tpu.dot_dimension_numbers<[1], [0], [0], [1], [0, 0, 1, 1], [], []>} : vector<64x8xf32>, vector<8x8xf32>, vector<64x8xf32> -> vector<64x8xf32>
    %82 = arith.addf %76, %81 : vector<64x8xf32>
    %83 = vector.shape_cast %82 : vector<64x8xf32> to vector<1x64x8xf32>
    %c0_69 = arith.constant 0 : index
    %c0_70 = arith.constant 0 : index
    %c0_71 = arith.constant 0 : index
    %84 = vector.load %arg5[%c0_69, %c0_70, %c0_71] : memref<1x64x8xf32, #tpu.memory_space<vmem>>, vector<1x64x8xf32>
    tpu.vector_store %arg5[%c0_69, %c0_70, %c0_71], %83 {strides = array<i32>} : memref<1x64x8xf32, #tpu.memory_space<vmem>>, vector<1x64x8xf32>,
    %cst_72 = arith.constant dense<0.000000e+00> : vector<8xf32>
    %85 = vector.multi_reduction <add>, %82, %cst_72 [0] : vector<64x8xf32> to vector<8xf32>
    %86 = vector.shape_cast %85 : vector<8xf32> to vector<1x8xf32>
    %87 = arith.mulf %82, %82 : vector<64x8xf32>
    %cst_73 = arith.constant dense<0.000000e+00> : vector<8xf32>
    %88 = vector.multi_reduction <add>, %87, %cst_73 [0] : vector<64x8xf32> to vector<8xf32>
    %89 = vector.shape_cast %88 : vector<8xf32> to vector<1x8xf32>
    %90 = tpu.iota {dimensions = array<i32: 0>} : vector<2x8xi32>
    %c0_i32 = arith.constant 0 : i32
    %91 = vector.broadcast %c0_i32 : i32 to vector<2x8xi32>
    %92 = arith.cmpi eq, %90, %91 : vector<2x8xi32>
    %93 = vector.shape_cast %86 : vector<1x8xf32> to vector<1x8xf32>
    %94 = vector.broadcast %93 : vector<1x8xf32> to vector<2x8xf32>
    %95 = vector.shape_cast %89 : vector<1x8xf32> to vector<1x8xf32>
    %96 = vector.broadcast %95 : vector<1x8xf32> to vector<2x8xf32>
    %97 = arith.select %92, %94, %96 : vector<2x8xi1>, vector<2x8xf32>
    %98 = vector.shape_cast %97 : vector<2x8xf32> to vector<1x2x8xf32>
    %c0_74 = arith.constant 0 : index
    %c0_75 = arith.constant 0 : index
    %c0_76 = arith.constant 0 : index
    %99 = vector.load %arg6[%c0_74, %c0_75, %c0_76] : memref<1x2x8xf32, #tpu.memory_space<vmem>>, vector<1x2x8xf32>
    tpu.vector_store %arg6[%c0_74, %c0_75, %c0_76], %98 {strides = array<i32>} : memref<1x2x8xf32, #tpu.memory_space<vmem>>, vector<1x2x8xf32>,
    return
  }
  func.func @transform_0(%arg0: i32) -> (i32, i32, i32, i32) {
    %c0_i32 = arith.constant 0 : i32
    %c0_i32_0 = arith.constant 0 : i32
    %c0_i32_1 = arith.constant 0 : i32
    %c0_i32_2 = arith.constant 0 : i32
    return %arg0, %c0_i32, %c0_i32_0, %c0_i32_1 : i32, i32, i32, i32
  }
  func.func @transform_1(%arg0: i32) -> (i32, i32) {
    %c0_i32 = arith.constant 0 : i32
    %c0_i32_0 = arith.constant 0 : i32
    %c0_i32_1 = arith.constant 0 : i32
    return %c0_i32, %c0_i32_0 : i32, i32
  }
  func.func @transform_2(%arg0: i32) -> (i32, i32) {
    %c0_i32 = arith.constant 0 : i32
    %c0_i32_0 = arith.constant 0 : i32
    %c0_i32_1 = arith.constant 0 : i32
    return %c0_i32, %c0_i32_0 : i32, i32
  }
  func.func @transform_3(%arg0: i32) -> (i32, i32, i32) {
    %c0_i32 = arith.constant 0 : i32
    %c0_i32_0 = arith.constant 0 : i32
    %c0_i32_1 = arith.constant 0 : i32
    %c0_i32_2 = arith.constant 0 : i32
    return %c0_i32, %c0_i32_0, %c0_i32_1 : i32, i32, i32
  }
  func.func @transform_4(%arg0: i32) -> (i32, i32, i32) {
    %c0_i32 = arith.constant 0 : i32
    %c0_i32_0 = arith.constant 0 : i32
    %c0_i32_1 = arith.constant 0 : i32
    return %arg0, %c0_i32, %c0_i32_0 : i32, i32, i32
  }
  func.func @transform_5(%arg0: i32) -> (i32, i32, i32) {
    %c0_i32 = arith.constant 0 : i32
    %c0_i32_0 = arith.constant 0 : i32
    %c0_i32_1 = arith.constant 0 : i32
    return %arg0, %c0_i32, %c0_i32_0 : i32, i32, i32
  }
}

module attributes {stable_mosaic.version = 11 : i64} {
  func.func @kernel(%arg0: i32, %arg1: memref<1x10x10x8xf32, #tpu.memory_space<vmem>>, %arg2: memref<1x8xf32, #tpu.memory_space<vmem>>, %arg3: memref<1x8xf32, #tpu.memory_space<vmem>>, %arg4: memref<9x8x8xf32, #tpu.memory_space<vmem>>, %arg5: memref<1x8x8x8xf32, #tpu.memory_space<vmem>>, %arg6: memref<1x64x8xf32, #tpu.memory_space<vmem>>, %arg7: memref<1x2x8xf32, #tpu.memory_space<vmem>>, %arg8: memref<10x10x8xf32, #tpu.memory_space<vmem>>) attributes {dimension_semantics = [#tpu.dimension_semantics<parallel>], iteration_bounds = array<i64: 2>, scalar_prefetch = 0 : i64, scratch_operands = 1 : i64, tpu.core_type = #tpu.core_type<tc>, window_params = [{transform_indices = @transform_0, window_bounds = array<i64: 1, 10, 10, 8>}, {pipeline_mode = #tpu.pipeline_mode<synchronous>, transform_indices = @transform_1, window_bounds = array<i64: 1, 8>}, {pipeline_mode = #tpu.pipeline_mode<synchronous>, transform_indices = @transform_2, window_bounds = array<i64: 1, 8>}, {pipeline_mode = #tpu.pipeline_mode<synchronous>, transform_indices = @transform_3, window_bounds = array<i64: 9, 8, 8>}, {transform_indices = @transform_4, window_bounds = array<i64: 1, 8, 8, 8>}, {transform_indices = @transform_5, window_bounds = array<i64: 1, 64, 8>}, {transform_indices = @transform_6, window_bounds = array<i64: 1, 2, 8>}]} {
    %c0 = arith.constant 0 : index
    %c0_0 = arith.constant 0 : index
    %c0_1 = arith.constant 0 : index
    %c0_2 = arith.constant 0 : index
    %0 = vector.load %arg1[%c0, %c0_0, %c0_1, %c0_2] : memref<1x10x10x8xf32, #tpu.memory_space<vmem>>, vector<1x10x10x8xf32>
    %1 = vector.shape_cast %0 : vector<1x10x10x8xf32> to vector<10x10x8xf32>
    %2 = tpu.iota {dimensions = array<i32: 0>} : vector<10x10x8xi32>
    %3 = tpu.iota {dimensions = array<i32: 1>} : vector<10x10x8xi32>
    %c1_i32 = arith.constant 1 : i32
    %4 = vector.broadcast %c1_i32 : i32 to vector<10x10x8xi32>
    %5 = arith.cmpi sge, %2, %4 : vector<10x10x8xi32>
    %c8_i32 = arith.constant 8 : i32
    %6 = vector.broadcast %c8_i32 : i32 to vector<10x10x8xi32>
    %7 = arith.cmpi sle, %2, %6 : vector<10x10x8xi32>
    %8 = arith.andi %5, %7 : vector<10x10x8xi1>
    %c1_i32_3 = arith.constant 1 : i32
    %9 = vector.broadcast %c1_i32_3 : i32 to vector<10x10x8xi32>
    %10 = arith.cmpi sge, %3, %9 : vector<10x10x8xi32>
    %11 = arith.andi %8, %10 : vector<10x10x8xi1>
    %c8_i32_4 = arith.constant 8 : i32
    %12 = vector.broadcast %c8_i32_4 : i32 to vector<10x10x8xi32>
    %13 = arith.cmpi sle, %3, %12 : vector<10x10x8xi32>
    %14 = arith.andi %11, %13 : vector<10x10x8xi1>
    %c0_5 = arith.constant 0 : index
    %c0_6 = arith.constant 0 : index
    %15 = vector.load %arg2[%c0_5, %c0_6] : memref<1x8xf32, #tpu.memory_space<vmem>>, vector<1x8xf32>
    %16 = vector.shape_cast %15 : vector<1x8xf32> to vector<1x1x8xf32>
    %17 = vector.broadcast %16 : vector<1x1x8xf32> to vector<10x10x8xf32>
    %18 = arith.mulf %1, %17 : vector<10x10x8xf32>
    %c0_7 = arith.constant 0 : index
    %c0_8 = arith.constant 0 : index
    %19 = vector.load %arg3[%c0_7, %c0_8] : memref<1x8xf32, #tpu.memory_space<vmem>>, vector<1x8xf32>
    %20 = vector.shape_cast %19 : vector<1x8xf32> to vector<1x1x8xf32>
    %21 = vector.broadcast %20 : vector<1x1x8xf32> to vector<10x10x8xf32>
    %22 = arith.addf %18, %21 : vector<10x10x8xf32>
    %cst = arith.constant 0.000000e+00 : f32
    %23 = vector.broadcast %cst : f32 to vector<10x10x8xf32>
    %24 = arith.maximumf %22, %23 : vector<10x10x8xf32>
    %cst_9 = arith.constant 0.000000e+00 : f32
    %25 = vector.broadcast %cst_9 : f32 to vector<10x10x8xf32>
    %26 = arith.select %14, %24, %25 : vector<10x10x8xi1>, vector<10x10x8xf32>
    %c0_10 = arith.constant 0 : index
    %c0_11 = arith.constant 0 : index
    %c0_12 = arith.constant 0 : index
    %27 = vector.load %arg8[%c0_10, %c0_11, %c0_12] : memref<10x10x8xf32, #tpu.memory_space<vmem>>, vector<10x10x8xf32>
    tpu.vector_store %arg8[%c0_10, %c0_11, %c0_12], %26 {strides = array<i32>} : memref<10x10x8xf32, #tpu.memory_space<vmem>>, vector<10x10x8xf32>,
    %cst_13 = arith.constant 0.000000e+00 : f32
    %28 = vector.broadcast %cst_13 : f32 to vector<64x8xf32>
    %c0_14 = arith.constant 0 : index
    %c0_15 = arith.constant 0 : index
    %c0_16 = arith.constant 0 : index
    %29 = vector.load %arg8[%c0_14, %c0_15, %c0_16] : memref<10x10x8xf32, #tpu.memory_space<vmem>>, vector<8x8x8xf32>
    %30 = vector.shape_cast %29 : vector<8x8x8xf32> to vector<64x8xf32>
    %c0_17 = arith.constant 0 : index
    %c0_18 = arith.constant 0 : index
    %c0_19 = arith.constant 0 : index
    %31 = vector.load %arg4[%c0_17, %c0_18, %c0_19] : memref<9x8x8xf32, #tpu.memory_space<vmem>>, vector<1x8x8xf32>
    %32 = vector.shape_cast %31 : vector<1x8x8xf32> to vector<8x8xf32>
    %cst_20 = arith.constant dense<0.000000e+00> : vector<64x8xf32>
    %33 = tpu.matmul %30, %32, %cst_20 {dimension_numbers = #tpu.dot_dimension_numbers<[1], [0], [0], [1], [0, 0, 1, 1], [], []>} : vector<64x8xf32>, vector<8x8xf32>, vector<64x8xf32> -> vector<64x8xf32>
    %34 = arith.addf %28, %33 : vector<64x8xf32>
    %c0_21 = arith.constant 0 : index
    %c1 = arith.constant 1 : index
    %c0_22 = arith.constant 0 : index
    %35 = vector.load %arg8[%c0_21, %c1, %c0_22] : memref<10x10x8xf32, #tpu.memory_space<vmem>>, vector<8x8x8xf32>
    %36 = vector.shape_cast %35 : vector<8x8x8xf32> to vector<64x8xf32>
    %c1_23 = arith.constant 1 : index
    %c0_24 = arith.constant 0 : index
    %c0_25 = arith.constant 0 : index
    %37 = vector.load %arg4[%c1_23, %c0_24, %c0_25] : memref<9x8x8xf32, #tpu.memory_space<vmem>>, vector<1x8x8xf32>
    %38 = vector.shape_cast %37 : vector<1x8x8xf32> to vector<8x8xf32>
    %cst_26 = arith.constant dense<0.000000e+00> : vector<64x8xf32>
    %39 = tpu.matmul %36, %38, %cst_26 {dimension_numbers = #tpu.dot_dimension_numbers<[1], [0], [0], [1], [0, 0, 1, 1], [], []>} : vector<64x8xf32>, vector<8x8xf32>, vector<64x8xf32> -> vector<64x8xf32>
    %40 = arith.addf %34, %39 : vector<64x8xf32>
    %c0_27 = arith.constant 0 : index
    %c2 = arith.constant 2 : index
    %c0_28 = arith.constant 0 : index
    %41 = vector.load %arg8[%c0_27, %c2, %c0_28] : memref<10x10x8xf32, #tpu.memory_space<vmem>>, vector<8x8x8xf32>
    %42 = vector.shape_cast %41 : vector<8x8x8xf32> to vector<64x8xf32>
    %c2_29 = arith.constant 2 : index
    %c0_30 = arith.constant 0 : index
    %c0_31 = arith.constant 0 : index
    %43 = vector.load %arg4[%c2_29, %c0_30, %c0_31] : memref<9x8x8xf32, #tpu.memory_space<vmem>>, vector<1x8x8xf32>
    %44 = vector.shape_cast %43 : vector<1x8x8xf32> to vector<8x8xf32>
    %cst_32 = arith.constant dense<0.000000e+00> : vector<64x8xf32>
    %45 = tpu.matmul %42, %44, %cst_32 {dimension_numbers = #tpu.dot_dimension_numbers<[1], [0], [0], [1], [0, 0, 1, 1], [], []>} : vector<64x8xf32>, vector<8x8xf32>, vector<64x8xf32> -> vector<64x8xf32>
    %46 = arith.addf %40, %45 : vector<64x8xf32>
    %c1_33 = arith.constant 1 : index
    %c0_34 = arith.constant 0 : index
    %c0_35 = arith.constant 0 : index
    %47 = vector.load %arg8[%c1_33, %c0_34, %c0_35] : memref<10x10x8xf32, #tpu.memory_space<vmem>>, vector<8x8x8xf32>
    %48 = vector.shape_cast %47 : vector<8x8x8xf32> to vector<64x8xf32>
    %c3 = arith.constant 3 : index
    %c0_36 = arith.constant 0 : index
    %c0_37 = arith.constant 0 : index
    %49 = vector.load %arg4[%c3, %c0_36, %c0_37] : memref<9x8x8xf32, #tpu.memory_space<vmem>>, vector<1x8x8xf32>
    %50 = vector.shape_cast %49 : vector<1x8x8xf32> to vector<8x8xf32>
    %cst_38 = arith.constant dense<0.000000e+00> : vector<64x8xf32>
    %51 = tpu.matmul %48, %50, %cst_38 {dimension_numbers = #tpu.dot_dimension_numbers<[1], [0], [0], [1], [0, 0, 1, 1], [], []>} : vector<64x8xf32>, vector<8x8xf32>, vector<64x8xf32> -> vector<64x8xf32>
    %52 = arith.addf %46, %51 : vector<64x8xf32>
    %c1_39 = arith.constant 1 : index
    %c1_40 = arith.constant 1 : index
    %c0_41 = arith.constant 0 : index
    %53 = vector.load %arg8[%c1_39, %c1_40, %c0_41] : memref<10x10x8xf32, #tpu.memory_space<vmem>>, vector<8x8x8xf32>
    %54 = vector.shape_cast %53 : vector<8x8x8xf32> to vector<64x8xf32>
    %c4 = arith.constant 4 : index
    %c0_42 = arith.constant 0 : index
    %c0_43 = arith.constant 0 : index
    %55 = vector.load %arg4[%c4, %c0_42, %c0_43] : memref<9x8x8xf32, #tpu.memory_space<vmem>>, vector<1x8x8xf32>
    %56 = vector.shape_cast %55 : vector<1x8x8xf32> to vector<8x8xf32>
    %cst_44 = arith.constant dense<0.000000e+00> : vector<64x8xf32>
    %57 = tpu.matmul %54, %56, %cst_44 {dimension_numbers = #tpu.dot_dimension_numbers<[1], [0], [0], [1], [0, 0, 1, 1], [], []>} : vector<64x8xf32>, vector<8x8xf32>, vector<64x8xf32> -> vector<64x8xf32>
    %58 = arith.addf %52, %57 : vector<64x8xf32>
    %c1_45 = arith.constant 1 : index
    %c2_46 = arith.constant 2 : index
    %c0_47 = arith.constant 0 : index
    %59 = vector.load %arg8[%c1_45, %c2_46, %c0_47] : memref<10x10x8xf32, #tpu.memory_space<vmem>>, vector<8x8x8xf32>
    %60 = vector.shape_cast %59 : vector<8x8x8xf32> to vector<64x8xf32>
    %c5 = arith.constant 5 : index
    %c0_48 = arith.constant 0 : index
    %c0_49 = arith.constant 0 : index
    %61 = vector.load %arg4[%c5, %c0_48, %c0_49] : memref<9x8x8xf32, #tpu.memory_space<vmem>>, vector<1x8x8xf32>
    %62 = vector.shape_cast %61 : vector<1x8x8xf32> to vector<8x8xf32>
    %cst_50 = arith.constant dense<0.000000e+00> : vector<64x8xf32>
    %63 = tpu.matmul %60, %62, %cst_50 {dimension_numbers = #tpu.dot_dimension_numbers<[1], [0], [0], [1], [0, 0, 1, 1], [], []>} : vector<64x8xf32>, vector<8x8xf32>, vector<64x8xf32> -> vector<64x8xf32>
    %64 = arith.addf %58, %63 : vector<64x8xf32>
    %c2_51 = arith.constant 2 : index
    %c0_52 = arith.constant 0 : index
    %c0_53 = arith.constant 0 : index
    %65 = vector.load %arg8[%c2_51, %c0_52, %c0_53] : memref<10x10x8xf32, #tpu.memory_space<vmem>>, vector<8x8x8xf32>
    %66 = vector.shape_cast %65 : vector<8x8x8xf32> to vector<64x8xf32>
    %c6 = arith.constant 6 : index
    %c0_54 = arith.constant 0 : index
    %c0_55 = arith.constant 0 : index
    %67 = vector.load %arg4[%c6, %c0_54, %c0_55] : memref<9x8x8xf32, #tpu.memory_space<vmem>>, vector<1x8x8xf32>
    %68 = vector.shape_cast %67 : vector<1x8x8xf32> to vector<8x8xf32>
    %cst_56 = arith.constant dense<0.000000e+00> : vector<64x8xf32>
    %69 = tpu.matmul %66, %68, %cst_56 {dimension_numbers = #tpu.dot_dimension_numbers<[1], [0], [0], [1], [0, 0, 1, 1], [], []>} : vector<64x8xf32>, vector<8x8xf32>, vector<64x8xf32> -> vector<64x8xf32>
    %70 = arith.addf %64, %69 : vector<64x8xf32>
    %c2_57 = arith.constant 2 : index
    %c1_58 = arith.constant 1 : index
    %c0_59 = arith.constant 0 : index
    %71 = vector.load %arg8[%c2_57, %c1_58, %c0_59] : memref<10x10x8xf32, #tpu.memory_space<vmem>>, vector<8x8x8xf32>
    %72 = vector.shape_cast %71 : vector<8x8x8xf32> to vector<64x8xf32>
    %c7 = arith.constant 7 : index
    %c0_60 = arith.constant 0 : index
    %c0_61 = arith.constant 0 : index
    %73 = vector.load %arg4[%c7, %c0_60, %c0_61] : memref<9x8x8xf32, #tpu.memory_space<vmem>>, vector<1x8x8xf32>
    %74 = vector.shape_cast %73 : vector<1x8x8xf32> to vector<8x8xf32>
    %cst_62 = arith.constant dense<0.000000e+00> : vector<64x8xf32>
    %75 = tpu.matmul %72, %74, %cst_62 {dimension_numbers = #tpu.dot_dimension_numbers<[1], [0], [0], [1], [0, 0, 1, 1], [], []>} : vector<64x8xf32>, vector<8x8xf32>, vector<64x8xf32> -> vector<64x8xf32>
    %76 = arith.addf %70, %75 : vector<64x8xf32>
    %c2_63 = arith.constant 2 : index
    %c2_64 = arith.constant 2 : index
    %c0_65 = arith.constant 0 : index
    %77 = vector.load %arg8[%c2_63, %c2_64, %c0_65] : memref<10x10x8xf32, #tpu.memory_space<vmem>>, vector<8x8x8xf32>
    %78 = vector.shape_cast %77 : vector<8x8x8xf32> to vector<64x8xf32>
    %c8 = arith.constant 8 : index
    %c0_66 = arith.constant 0 : index
    %c0_67 = arith.constant 0 : index
    %79 = vector.load %arg4[%c8, %c0_66, %c0_67] : memref<9x8x8xf32, #tpu.memory_space<vmem>>, vector<1x8x8xf32>
    %80 = vector.shape_cast %79 : vector<1x8x8xf32> to vector<8x8xf32>
    %cst_68 = arith.constant dense<0.000000e+00> : vector<64x8xf32>
    %81 = tpu.matmul %78, %80, %cst_68 {dimension_numbers = #tpu.dot_dimension_numbers<[1], [0], [0], [1], [0, 0, 1, 1], [], []>} : vector<64x8xf32>, vector<8x8xf32>, vector<64x8xf32> -> vector<64x8xf32>
    %82 = arith.addf %76, %81 : vector<64x8xf32>
    %c0_69 = arith.constant 0 : index
    %c0_70 = arith.constant 0 : index
    %c0_71 = arith.constant 0 : index
    %c0_72 = arith.constant 0 : index
    %83 = vector.load %arg5[%c0_69, %c0_70, %c0_71, %c0_72] : memref<1x8x8x8xf32, #tpu.memory_space<vmem>>, vector<1x8x8x8xf32>
    %84 = vector.shape_cast %83 : vector<1x8x8x8xf32> to vector<8x8x8xf32>
    %85 = vector.shape_cast %84 : vector<8x8x8xf32> to vector<64x8xf32>
    %86 = arith.addf %82, %85 : vector<64x8xf32>
    %87 = vector.shape_cast %86 : vector<64x8xf32> to vector<1x64x8xf32>
    %c0_73 = arith.constant 0 : index
    %c0_74 = arith.constant 0 : index
    %c0_75 = arith.constant 0 : index
    %88 = vector.load %arg6[%c0_73, %c0_74, %c0_75] : memref<1x64x8xf32, #tpu.memory_space<vmem>>, vector<1x64x8xf32>
    tpu.vector_store %arg6[%c0_73, %c0_74, %c0_75], %87 {strides = array<i32>} : memref<1x64x8xf32, #tpu.memory_space<vmem>>, vector<1x64x8xf32>,
    %cst_76 = arith.constant dense<0.000000e+00> : vector<8xf32>
    %89 = vector.multi_reduction <add>, %86, %cst_76 [0] : vector<64x8xf32> to vector<8xf32>
    %90 = vector.shape_cast %89 : vector<8xf32> to vector<1x8xf32>
    %91 = arith.mulf %86, %86 : vector<64x8xf32>
    %cst_77 = arith.constant dense<0.000000e+00> : vector<8xf32>
    %92 = vector.multi_reduction <add>, %91, %cst_77 [0] : vector<64x8xf32> to vector<8xf32>
    %93 = vector.shape_cast %92 : vector<8xf32> to vector<1x8xf32>
    %94 = tpu.iota {dimensions = array<i32: 0>} : vector<2x8xi32>
    %c0_i32 = arith.constant 0 : i32
    %95 = vector.broadcast %c0_i32 : i32 to vector<2x8xi32>
    %96 = arith.cmpi eq, %94, %95 : vector<2x8xi32>
    %97 = vector.shape_cast %90 : vector<1x8xf32> to vector<1x8xf32>
    %98 = vector.broadcast %97 : vector<1x8xf32> to vector<2x8xf32>
    %99 = vector.shape_cast %93 : vector<1x8xf32> to vector<1x8xf32>
    %100 = vector.broadcast %99 : vector<1x8xf32> to vector<2x8xf32>
    %101 = arith.select %96, %98, %100 : vector<2x8xi1>, vector<2x8xf32>
    %102 = vector.shape_cast %101 : vector<2x8xf32> to vector<1x2x8xf32>
    %c0_78 = arith.constant 0 : index
    %c0_79 = arith.constant 0 : index
    %c0_80 = arith.constant 0 : index
    %103 = vector.load %arg7[%c0_78, %c0_79, %c0_80] : memref<1x2x8xf32, #tpu.memory_space<vmem>>, vector<1x2x8xf32>
    tpu.vector_store %arg7[%c0_78, %c0_79, %c0_80], %102 {strides = array<i32>} : memref<1x2x8xf32, #tpu.memory_space<vmem>>, vector<1x2x8xf32>,
    return
  }
  func.func @transform_0(%arg0: i32) -> (i32, i32, i32, i32) {
    %c0_i32 = arith.constant 0 : i32
    %c0_i32_0 = arith.constant 0 : i32
    %c0_i32_1 = arith.constant 0 : i32
    %c0_i32_2 = arith.constant 0 : i32
    return %arg0, %c0_i32, %c0_i32_0, %c0_i32_1 : i32, i32, i32, i32
  }
  func.func @transform_1(%arg0: i32) -> (i32, i32) {
    %c0_i32 = arith.constant 0 : i32
    %c0_i32_0 = arith.constant 0 : i32
    %c0_i32_1 = arith.constant 0 : i32
    return %c0_i32, %c0_i32_0 : i32, i32
  }
  func.func @transform_2(%arg0: i32) -> (i32, i32) {
    %c0_i32 = arith.constant 0 : i32
    %c0_i32_0 = arith.constant 0 : i32
    %c0_i32_1 = arith.constant 0 : i32
    return %c0_i32, %c0_i32_0 : i32, i32
  }
  func.func @transform_3(%arg0: i32) -> (i32, i32, i32) {
    %c0_i32 = arith.constant 0 : i32
    %c0_i32_0 = arith.constant 0 : i32
    %c0_i32_1 = arith.constant 0 : i32
    %c0_i32_2 = arith.constant 0 : i32
    return %c0_i32, %c0_i32_0, %c0_i32_1 : i32, i32, i32
  }
  func.func @transform_4(%arg0: i32) -> (i32, i32, i32, i32) {
    %c0_i32 = arith.constant 0 : i32
    %c0_i32_0 = arith.constant 0 : i32
    %c0_i32_1 = arith.constant 0 : i32
    %c0_i32_2 = arith.constant 0 : i32
    return %arg0, %c0_i32, %c0_i32_0, %c0_i32_1 : i32, i32, i32, i32
  }
  func.func @transform_5(%arg0: i32) -> (i32, i32, i32) {
    %c0_i32 = arith.constant 0 : i32
    %c0_i32_0 = arith.constant 0 : i32
    %c0_i32_1 = arith.constant 0 : i32
    return %arg0, %c0_i32, %c0_i32_0 : i32, i32, i32
  }
  func.func @transform_6(%arg0: i32) -> (i32, i32, i32) {
    %c0_i32 = arith.constant 0 : i32
    %c0_i32_0 = arith.constant 0 : i32
    %c0_i32_1 = arith.constant 0 : i32
    return %arg0, %c0_i32, %c0_i32_0 : i32, i32, i32
  }
}

</mosaic_0001>

<bundles_post_ra>
// kernel: network_block_forward.5
= control target key start
LH: loop header
LB: loop body
LE: loop exit
PB: predicated region body
PF: predicated region fallthrough
CT: control target
= control target key end

     0   :  { %s219_s6 = smov 0   ;;  %s236_s0 = inlined_call_operand.vmem [shape: f32[16,128], index: 0, kind: input, shape index: {}]   ;;  %s237_s1 = inlined_call_operand.vmem [shape: f32[2,2,128], index: 1, kind: output, shape index: {}]  }
   0x1 LB: > { %s184_s7 = sadd.s32 4294967295, %s207_s6   ;;  %p188_p0 = scmp.ge.s32.totalorder %s207_s6, 1  ;;  %s207_s6 = sphi %s219_s6, %s11_s6  }
   0x2   : > { %p86_p1 = scmp.lt.s32.totalorder %s207_s6, 3 }
   0x4   : > { %p87_p2 = pnand %p188_p0, %p86_p1 }
   0x5   : > { %p104_p3 = scmp.lt.s32.totalorder (!%p87_p2), %s184_s7, 1  ;;  %v126_v5 = vlaneseq (!%p87_p2) }
   0x6   : > { %90 = sbr.rel (%p87_p2) target bundleno = 33 (0x21), region = 24 }
   0x7   : > { %v127_v10 = vshrl.u32 (!%p87_p2), %v126_v5, 7 }
   0x9   : > { %vm128_vm0 = vcmp.eq.s32.totalorder (!%p87_p2), %v127_v10, 0 }
   0xd   : > { %s239_s7 = smov (!%p104_p3, %s184_s7), 1 }
   0xe   : > { %s189_s8 = sshll.u32 %s239_s7, 3  ;;  %s190_s12 = sshll.u32 %s239_s7, 1 }
   0xf   : > { %s107_s11 = scalar_lea.vmem %s236_s0, %s189_s8  ;;  %s111_s15 = scalar_lea.vmem %s237_s1, %s190_s12 }
  0x10   : > { %v112_v0 = vld [vmem:[%s107_s11] sm:$0xff] }
  0x11   : > { %v113_v1 = vrot.slane %v112_v0, 4  ;;  %v119_v2 = vmul.f32 %v112_v0, %v112_v0 }
  0x13   : > { %v114_v3 = vadd.f32 %v113_v1, %v112_v0  ;;  %v120_v4 = vrot.slane %v119_v2, 4 }
  0x15   : > { %v115_v6 = vrot.slane %v114_v3, 2  ;;  %v121_v7 = vadd.f32 %v120_v4, %v119_v2 }
  0x17   : > { %v116_v8 = vadd.f32 %v115_v6, %v114_v3  ;;  %v122_v9 = vrot.slane %v121_v7, 2 }
  0x19   : > { %v117_v11 = vrot.slane %v116_v8, 1  ;;  %v123_v12 = vadd.f32 %v122_v9, %v121_v7 }
  0x1b   : > { %v118_v13 = vadd.f32 %v117_v11, %v116_v8  ;;  %v124_v14 = vrot.slane %v123_v12, 1 }
  0x1d   : > { %v125_v15 = vadd.f32 %v124_v14, %v123_v12 }
  0x1f   : > { %v129_v16 = vsel %vm128_vm0, %v118_v13, %v125_v15 }
  0x20   : > { %130 = vst [vmem:[%s111_s15] sm:$0x3] %v129_v16 }
  0x21 PF: > { %s11_s6 = sadd.s32 1, %s207_s6  }
  0x22   : > { %p8_p4 = scmp.ge.s32.totalorder %s11_s6, 4  }
  0x24   :  { %10 = sbr.rel (!%p8_p4) target bundleno = 1 (0x1), region = 54 }

// kernel: network_block_forward.6
= control target key start
LH: loop header
LB: loop body
LE: loop exit
PB: predicated region body
PF: predicated region fallthrough
CT: control target
= control target key end

     0   :  { %s590_s12 = smov 0   ;;  %s669_s0 = inlined_call_operand.vmem [shape: f32[128,36], index: 0, kind: input, shape index: {}]   ;;  %s670_s1 = inlined_call_operand.vmem [shape: f32[36,8], index: 1, kind: input, shape index: {}]   ;;  %s671_s2 = inlined_call_operand.vmem [shape: f32[128,8], index: 2, kind: output, shape index: {0}]   ;;  %s672_s3 = inlined_call_operand.vmem [shape: f32[2,2,8], index: 3, kind: output, shape index: {1}]  }
   0x1 LB: > { %s596_s13 = sadd.s32 4294967295, %s568_s12   ;;  %p488_p0 = scmp.ge.s32.totalorder %s568_s12, 1  ;;  %s568_s12 = sphi %s590_s12, %s14_s12  }
   0x2   : > { %p141_p1 = scmp.lt.s32.totalorder %s568_s12, 3 }
   0x4   : > { %p142_p2 = pnand %p488_p0, %p141_p1 }
   0x5   : > { %v193_v0 = vld [vmem:[%s670_s1] sm:$0xff] (!%p142_p2)  ;;  %v194_v1 = vld [vmem:[%s670_s1 + $0x8] sm:$0xff] (!%p142_p2)  ;;  %v195_v2 = vld [vmem:[%s670_s1 + $0x10] sm:$0xff] (!%p142_p2)  ;;  %s489_s20 = sshll.u32 (!%p142_p2), %s596_s13, 3  ;;  %vm198_vm0 = vcmask (!%p142_p2), 293888   ;;  %vm223_vm1 = vcmask (!%p142_p2), 1043456  }
   0x6   : > { %145 = sbr.rel (%p142_p2) target bundleno = 264 (0x108), region = 28  ;;  %v540_v3 = vpack.c.bf16 (!%p142_p2), %v194_v1, %v193_v0  ;;  %v196_v4 = vld [vmem:[%s670_s1 + $0x18] sm:$0xff] (!%p142_p2)  ;;  %p170_p3 = scmp.lt.s32.totalorder (!%p142_p2), %s489_s20, 15  ;;  %v197_v6 = vld [vmem:[%s670_s1 + $0x20] sm:$0xf] (!%p142_p2)  ;;  %vm332_vm2 = vcmask (!%p142_p2), 64512   ;;  %v391_v0 = vlaneseq (!%p142_p2) }
   0x7   : > { %v544_v5 = vpack.c.bf16 (!%p142_p2), %v196_v4, %v195_v2  ;;  %p181_p4 = scmp.lt.s32.totalorder (!%p142_p2), %s596_s13, 1  ;;  %vm395_vm4 = vcmask (!%p142_p2), 58368  }
   0x8   : > { %541 = vmatprep.subr.bf16.mxu0 (!%p142_p2), %v540_v3  ;;  %548 = vmatprep.subr.bf16.mxu1 (!%p142_p2), %v540_v3 }
   0x9   : > { %543 = vmatpush3.bf16.msra.mxu0 (!%p142_p2), %v540_v3  ;;  %551 = vmatpush3.bf16.msra.mxu1 (!%p142_p2), %v540_v3 }
   0xa   : > { %545 = vmatprep.subr.bf16.mxu0 (!%p142_p2), %v544_v5  ;;  %549 = vmatprep.subr.bf16.mxu1 (!%p142_p2), %v544_v5 }
   0xd   : > { %s674_s20 = smov (!%p170_p3, %s489_s20), 15  ;;  %547 = vmatpush3.bf16.msra.mxu0 %v544_v5  ;;  %552 = vmatpush3.bf16.msra.mxu1 %v544_v5  ;;  %s676_s13 = smov (!%p181_p4, %s596_s13), 1  ;;  %v392_v5 = vshrl.u32 %v391_v0, 7 }
   0xe   : > { %s490_s23 = sshll.u32 %s674_s20, 3  ;;  %526 = vmatprep.subr.msk.mxu0 %vm223_vm1, %v197_v6  ;;  %550 = vmatprep.subr.msk.mxu1 %vm223_vm1, %v197_v6  ;;  %s493_s5 = sshll.u32 %s676_s13, 1 }
   0xf   : > { %s173_s28 = scalar_lea.vmem %s669_s0, %s490_s23  ;;  %s179_s4 = scalar_lea.vmem %s671_s2, %s490_s23  ;;  %vm393_vm3 = vcmp.eq.s32.totalorder %v392_v5, 0 }
  0x10   : > { %v185_v7 = vld [vmem:[%s173_s28] sm:$0xff]  ;;  %v186_v9 = vld [vmem:[%s173_s28 + $0x8] sm:$0xff]  ;;  %v187_v10 = vld [vmem:[%s173_s28 + $0x10] sm:$0xff]  ;;  %s184_s8 = scalar_lea.vmem %s672_s3, %s493_s5 }
  0x11   : > { %528 = vmatprep.mubr.msk.f32.mxu0 %vm198_vm0, %v185_v7  ;;  %v189_v8 = vld [vmem:[%s173_s28 + $0x20] sm:$0xff]  ;;  %v190_v11 = vld [vmem:[%s173_s28 + $0x28] sm:$0xff]  ;;  %527 = vmatpush3.msk.msra.mxu0 %vm223_vm1, %v197_v6  ;;  %v191_v12 = vld [vmem:[%s173_s28 + $0x30] sm:$0xff] }
  0x12   : > { %534 = vmatprep.mubr.msk.f32.mxu1 %vm198_vm0, %v189_v8  ;;  %529 = vmatmul.mubr.msk.f32.vlgmr.msra.gmra.mrb[0].mxu0 %vm198_vm0, %v186_v9  ;;  %v188_v13 = vld [vmem:[%s173_s28 + $0x18] sm:$0xff] }
  0x13   : > { %553 = vmatpush3.msk.msra.mxu1 %vm223_vm1, %v197_v6  ;;  %531 = vmatprep.mubr.msk.f32.mxu0 %vm198_vm0, %v187_v10  ;;  %v192_v14 = vld [vmem:[%s173_s28 + $0x38] sm:$0xff] }
  0x14   : > { %535 = vmatmul.mubr.msk.f32.vlgmr.msra.gmra.mrb[0].mxu1 %vm198_vm0, %v190_v11 }
  0x15   : > { %537 = vmatprep.mubr.msk.f32.mxu1 %vm198_vm0, %v191_v12 }
  0x16   : > { %532 = vmatmul.mubr.msk.f32.gmra.mrb[2].mxu0 %vm198_vm0, %v188_v13 }
  0x18   : > { %538 = vmatmul.mubr.msk.f32.gmra.mrb[2].mxu1 %vm198_vm0, %v192_v14 }
  0xe5   : > { %v530_v15 = vpop.f32.mrb[0].mxu0 }
  0xe6   : > { %334 = vst.msk [vmem:[%s179_s4 + $0x8] sm:$0xff] %vm332_vm2, %v530_v15  ;;  %v342_v16 = vsel %vm332_vm2, %v530_v15, 0.0  ;;  %v363_v17 = vmul.f32 %v530_v15, %v530_v15  ;;  %v293_v18 = vpop.f32.mrb[1].mxu0 }
  0xe7   : > { %v536_v19 = vpop.f32.mrb[0].mxu1  ;;  %333 = vst.msk [vmem:[%s179_s4] sm:$0xff] %vm332_vm2, %v293_v18  ;;  %v341_v20 = vsel %vm332_vm2, %v293_v18, 0.0  ;;  %v362_v21 = vmul.f32 %v293_v18, %v293_v18 }
  0xe8   : > { %338 = vst.msk [vmem:[%s179_s4 + $0x28] sm:$0xff] %vm332_vm2, %v536_v19  ;;  %v313_v22 = vpop.f32.mrb[1].mxu1  ;;  %v371_v23 = vsel %vm332_vm2, %v363_v17, 0.0  ;;  %v343_v24 = vadd.f32 %v342_v16, %v341_v20  ;;  %v367_v42 = vmul.f32 %v536_v19, %v536_v19  ;;  %v350_v47 = vsel %vm332_vm2, %v536_v19, 0.0 }
  0xe9   : > { %337 = vst.msk [vmem:[%s179_s4 + $0x20] sm:$0xff] %vm332_vm2, %v313_v22  ;;  %v370_v25 = vsel %vm332_vm2, %v362_v21, 0.0  ;;  %v533_v26 = vpop.f32.mrb[2].mxu0  ;;  %v366_v33 = vmul.f32 %v313_v22, %v313_v22  ;;  %v348_v38 = vsel %vm332_vm2, %v313_v22, 0.0 }
  0xea   : > { %v372_v27 = vadd.f32 %v371_v23, %v370_v25  ;;  %336 = vst.msk [vmem:[%s179_s4 + $0x18] sm:$0xff] %vm332_vm2, %v533_v26  ;;  %v303_v28 = vpop.f32.mrb[3].mxu0  ;;  %v365_v30 = vmul.f32 %v533_v26, %v533_v26  ;;  %v346_v36 = vsel %vm332_vm2, %v533_v26, 0.0  ;;  %v379_v51 = vsel %vm332_vm2, %v367_v42, 0.0 }
  0xeb   : > { %v539_v29 = vpop.f32.mrb[2].mxu1  ;;  %335 = vst.msk [vmem:[%s179_s4 + $0x10] sm:$0xff] %vm332_vm2, %v303_v28  ;;  %v344_v31 = vsel %vm332_vm2, %v303_v28, 0.0  ;;  %v364_v32 = vmul.f32 %v303_v28, %v303_v28  ;;  %v377_v43 = vsel %vm332_vm2, %v366_v33, 0.0 }
  0xec   : > { %340 = vst.msk [vmem:[%s179_s4 + $0x38] sm:$0xff] %vm332_vm2, %v539_v29  ;;  %v323_v34 = vpop.f32.mrb[3].mxu1  ;;  %v345_v35 = vadd.f32 %v344_v31, %v343_v24  ;;  %v375_v41 = vsel %vm332_vm2, %v365_v30, 0.0  ;;  %v369_v52 = vmul.f32 %v539_v29, %v539_v29  ;;  %v354_v56 = vsel %vm332_vm2, %v539_v29, 0.0 }
  0xed   : > { %339 = vst.msk [vmem:[%s179_s4 + $0x30] sm:$0xff] %vm332_vm2, %v323_v34  ;;  %v373_v37 = vsel %vm332_vm2, %v364_v32, 0.0  ;;  %v368_v44 = vmul.f32 %v323_v34, %v323_v34  ;;  %v352_v48 = vsel %vm332_vm2, %v323_v34, 0.0 }
  0xee   : > { %v347_v39 = vadd.f32 %v346_v36, %v345_v35  ;;  %v374_v40 = vadd.f32 %v373_v37, %v372_v27  ;;  %v383_v59 = vsel %vm332_vm2, %v369_v52, 0.0 }
  0xef   : > { %v381_v53 = vsel %vm332_vm2, %v368_v44, 0.0 }
  0xf0   : > { %v376_v45 = vadd.f32 %v375_v41, %v374_v40  ;;  %v349_v46 = vadd.f32 %v348_v38, %v347_v39 }
  0xf2   : > { %v378_v49 = vadd.f32 %v377_v43, %v376_v45  ;;  %v351_v50 = vadd.f32 %v350_v47, %v349_v46 }
  0xf4   : > { %v353_v54 = vadd.f32 %v352_v48, %v351_v50  ;;  %v380_v55 = vadd.f32 %v379_v51, %v378_v49 }
  0xf6   : > { %v355_v57 = vadd.f32 %v354_v56, %v353_v54  ;;  %v382_v58 = vadd.f32 %v381_v53, %v380_v55 }
  0xf8   : > { %v356_v60 = vrot.slane %v355_v57, 4  ;;  %v384_v61 = vadd.f32 %v383_v59, %v382_v58 }
  0xfa   : > { %v357_v62 = vadd.f32 %v356_v60, %v355_v57  ;;  %v385_v63 = vrot.slane %v384_v61, 4 }
  0xfc   : > { %v358_v1 = vrot.slane %v357_v62, 2  ;;  %v386_v2 = vadd.f32 %v385_v63, %v384_v61 }
  0xfe   : > { %v359_v3 = vadd.f32 %v358_v1, %v357_v62  ;;  %v387_v4 = vrot.slane %v386_v2, 2 }
 0x100   : > { %v360_v6 = vrot.slane %v359_v3, 1  ;;  %v388_v7 = vadd.f32 %v387_v4, %v386_v2 }
 0x102   : > { %v389_v8 = vrot.slane %v388_v7, 1  ;;  %v361_v9 = vadd.f32 %v360_v6, %v359_v3 }
 0x104   : > { %v390_v10 = vadd.f32 %v389_v8, %v388_v7 }
 0x106   : > { %v394_v11 = vsel %vm393_vm3, %v361_v9, %v390_v10 }
 0x107   : > { %396 = vst.msk [vmem:[%s184_s8] sm:$0x3] %vm395_vm4, %v394_v11 }
 0x108 PF: > { %s14_s12 = sadd.s32 1, %s568_s12  }
 0x109   : > { %p11_p5 = scmp.ge.s32.totalorder %s14_s12, 4  }
 0x10b   :  { %13 = sbr.rel (!%p11_p5) target bundleno = 1 (0x1), region = 70 }

// kernel: network_block_forward.7
= control target key start
LH: loop header
LB: loop body
LE: loop exit
PB: predicated region body
PF: predicated region fallthrough
CT: control target
= control target key end

     0   :  { %s2650_s30 = smov 0   ;;  %s3077_s0 = inlined_call_operand.vmem [shape: f32[2,10,10,8], index: 0, kind: input, shape index: {}]   ;;  %s3078_s1 = inlined_call_operand.vmem [shape: f32[1,8], index: 1, kind: input, shape index: {}]   ;;  %s3079_s2 = inlined_call_operand.vmem [shape: f32[1,8], index: 2, kind: input, shape index: {}]   ;;  %s3080_s3 = inlined_call_operand.vmem [shape: f32[9,8,8], index: 3, kind: input, shape index: {}]   ;;  %s3081_s4 = inlined_call_operand.vmem [shape: f32[2,8,8,4], index: 4, kind: input, shape index: {}]   ;;  %s3082_s5 = inlined_call_operand.vmem [shape: f32[1,4], index: 5, kind: input, shape index: {}]   ;;  %s3083_s6 = inlined_call_operand.vmem [shape: f32[1,4], index: 6, kind: input, shape index: {}]   ;;  %s3084_s7 = inlined_call_operand.vmem [shape: f32[4,8], index: 7, kind: input, shape index: {}]   ;;  %s3085_s8 = inlined_call_operand.vmem [shape: f32[2,64,8], index: 8, kind: output, shape index: {0}]   ;;  %s3086_s9 = inlined_call_operand.vmem [shape: f32[2,2,8], index: 9, kind: output, shape index: {1}]  }
   0x1 LB: > { %s2171_s10 = sadd.s32 4294967295, %s2597_s30   ;;  %p2175_p0 = scmp.ge.s32.totalorder %s2597_s30, 1  ;;  %s2597_s30 = sphi %s2650_s30, %s20_s30  }
   0x2   : > { %p300_p1 = scmp.lt.s32.totalorder %s2597_s30, 3 }
   0x4   : > { %p301_p2 = pnand %p2175_p0, %p300_p1 }
   0x5   : > { %v2184_v0 = vld [vmem:[%s3080_s3 + $0x8] sm:$0xff] (!%p301_p2)  ;;  %vm493_vm0 = vcmask (!%p301_p2), 64512   ;;  %vm495_vm1 = vcmask (!%p301_p2), 58368   ;;  %p345_p3 = scmp.lt.s32.totalorder (!%p301_p2), %s2171_s10, 1  ;;  %v384_v2 = vlaneseq (!%p301_p2)  ;;  %v2599_v3 = vmov (!%p301_p2), 0.0   ;;  %v2671_v4 = vld [vmem:[%s3080_s3] sm:$0xff] (!%p301_p2) }
   0x6   : > { %304 = sbr.rel (%p301_p2) target bundleno = 348 (0x15c), region = 52  ;;  %v2228_v1 = vld [vmem:[%s3080_s3 + $0x28] sm:$0xff] (!%p301_p2)  ;;  %2369 = vmatprep.subr.mxu1 (!%p301_p2), %v2184_v0  ;;  %494 = vst.msk [vmem:[#allocation2] sm:$0xff] (!%p301_p2), %vm493_vm0, %v2599_v3  ;;  %513 = vst.msk [vmem:[#allocation2 + $0x90] sm:$0xff] (!%p301_p2), %vm493_vm0, %v2599_v3  ;;  %v2680_v6 = vld [vmem:[%s3080_s3 + $0x30] sm:$0xff] (!%p301_p2)  ;;  %vm1895_vm4 = vcmask (!%p301_p2), 1043456  }
   0x7   : > { %2439 = vmatprep.subr.mxu0 (!%p301_p2), %v2228_v1  ;;  %496 = vst.msk [vmem:[#allocation2 + $0x8] sm:$0x3] (!%p301_p2), %vm495_vm1, %v2599_v3  ;;  %514 = vst.msk [vmem:[#allocation2 + $0x98] sm:$0x3] (!%p301_p2), %vm495_vm1, %v2599_v3  ;;  %2370 = vmatpush3.msra.mxu1 (!%p301_p2), %v2184_v0  ;;  %v2675_v5 = vshrl.u32 (!%p301_p2), %v384_v2, 7  ;;  %vm1870_vm5 = vcmask (!%p301_p2), 31744  }
   0x8   : > { %2440 = vmatpush3.msra.mxu0 (!%p301_p2), %v2228_v1  ;;  %2383 = vmatprep.subr.mxu1 (!%p301_p2), %v2671_v4  ;;  %v2691_v8 = vld [vmem:[%s3078_s1] ss:$0 sm:$0xff] (!%p301_p2) }
   0x9   : > { %2453 = vmatprep.subr.mxu0 (!%p301_p2), %v2680_v6  ;;  %v2686_v7 = vadd.s32 (!%p301_p2), 8, %v2675_v5  ;;  %v2701_v9 = vld [vmem:[%s3079_s2] ss:$0 sm:$0xff] (!%p301_p2)  ;;  %vm387_vm2 = vcmp.ge.s32.totalorder (!%p301_p2), %v2675_v5, 1  ;;  %vm2070_vm6 = vcmp.eq.s32.totalorder (!%p301_p2), %v2675_v5, 0 }
   0xb   : > { %vm394_vm3 = vcmp.le.s32.totalorder (!%p301_p2), %v2686_v7, 8 }
   0xd   : > { %s3088_s10 = smov (!%p345_p3, %s2171_s10), 1 }
   0xe   : > { %s2581_s19 = smul.u32 160, %s3088_s10  ;;  %v524_v13 = vld [vmem:[#allocation2 + $0x1] sm:$0xff]  ;;  %s2277_s20 = sshll.u32 %s3088_s10, 6 }
   0xf   : > { %2371 = vmatprep.mubr.msk.f32.mxu1 %vm493_vm0, %v524_v13  ;;  %s2959_s23 = scalar_lea.vmem %s3081_s4, %s2277_s20  ;;  %s3034_s11 = scalar_lea.vmem %s3085_s8, %s2277_s20 }
  0x10   : > { %s2696_s24 = scalar_lea.vmem %s3077_s0, %s2581_s19  ;;  %s2181_s12 = sshll.u32 %s3088_s10, 1 }
  0x11   : > { %v366_v10 = vld [vmem:[%s2696_s24 + $0x10] sm:$0xff]  ;;  %v367_v11 = vld [vmem:[%s2696_s24 + $0x18] sm:$0x3]  ;;  %v368_v12 = vld [vmem:[%s2696_s24 + $0x20] sm:$0xff]  ;;  %s363_s15 = scalar_lea.vmem %s3086_s9, %s2181_s12 }
  0x12   : > { %v408_v14 = vmul.f32 %v2691_v8, %v366_v10  ;;  %v409_v15 = vmul.f32 %v2691_v8, %v367_v11  ;;  %v369_v16 = vld [vmem:[%s2696_s24 + $0x28] sm:$0x3]  ;;  %v410_v17 = vmul.f32 %v2691_v8, %v368_v12  ;;  %v370_v18 = vld [vmem:[%s2696_s24 + $0x30] sm:$0xff]  ;;  %v371_v20 = vld [vmem:[%s2696_s24 + $0x38] sm:$0x3] }
  0x13   : > { %v411_v19 = vmul.f32 %v2691_v8, %v369_v16  ;;  %v412_v21 = vmul.f32 %v2691_v8, %v370_v18  ;;  %v372_v22 = vld [vmem:[%s2696_s24 + $0x40] sm:$0xff]  ;;  %v373_v23 = vld [vmem:[%s2696_s24 + $0x48] sm:$0x3]  ;;  %v413_v27 = vmul.f32 %v2691_v8, %v371_v20  ;;  %v375_v36 = vld [vmem:[%s2696_s24 + $0x58] sm:$0x3] }
  0x14   : > { %v435_v24 = vadd.f32 %v2701_v9, %v408_v14  ;;  %v436_v25 = vadd.f32 %v2701_v9, %v409_v15  ;;  %v437_v26 = vadd.f32 %v2701_v9, %v410_v17  ;;  %v414_v30 = vmul.f32 %v2691_v8, %v372_v22  ;;  %v374_v41 = vld [vmem:[%s2696_s24 + $0x50] sm:$0xff]  ;;  %v376_v42 = vld [vmem:[%s2696_s24 + $0x60] sm:$0xff]  ;;  %v377_v43 = vld [vmem:[%s2696_s24 + $0x68] sm:$0x3] }
  0x15   : > { %v438_v28 = vadd.f32 %v2701_v9, %v411_v19  ;;  %v439_v29 = vadd.f32 %v2701_v9, %v412_v21  ;;  %v415_v31 = vmul.f32 %v2691_v8, %v373_v23  ;;  %v440_v35 = vadd.f32 %v2701_v9, %v413_v27  ;;  %v378_v48 = vld [vmem:[%s2696_s24 + $0x70] sm:$0xff]  ;;  %v379_v53 = vld [vmem:[%s2696_s24 + $0x78] sm:$0x3]  ;;  %v380_v58 = vld [vmem:[%s2696_s24 + $0x80] sm:$0xff] }
  0x16   : > { %v455_v32 = vmax.f32 %v435_v24, 0.0  ;;  %v456_v33 = vmax.f32 %v436_v25, 0.0  ;;  %v457_v34 = vmax.f32 %v437_v26, 0.0  ;;  %v441_v39 = vadd.f32 %v2701_v9, %v414_v30  ;;  %v381_v59 = vld [vmem:[%s2696_s24 + $0x88] sm:$0x3]  ;;  %v2781_v22 = vld [vmem:[%s3080_s3 + $0x10] sm:$0xff] }
  0x17   : > { %v458_v37 = vmax.f32 %v438_v28, 0.0  ;;  %v459_v38 = vmax.f32 %v439_v29, 0.0  ;;  %v442_v40 = vadd.f32 %v2701_v9, %v415_v31  ;;  %v460_v47 = vmax.f32 %v440_v35, 0.0 }
  0x18   : > { %v475_v44 = vsel %vm387_vm2, %v455_v32, 0.0  ;;  %v476_v45 = vsel %vm394_vm3, %v456_v33, 0.0  ;;  %v477_v46 = vsel %vm387_vm2, %v457_v34, 0.0  ;;  %v461_v51 = vmax.f32 %v441_v39, 0.0 }
  0x19   : > { %497 = vst.msk [vmem:[#allocation2 + $0x10] sm:$0xff] %vm493_vm0, %v475_v44  ;;  %v478_v49 = vsel %vm394_vm3, %v458_v37, 0.0  ;;  %499 = vst.msk [vmem:[#allocation2 + $0x20] sm:$0xff] %vm493_vm0, %v477_v46  ;;  %v479_v50 = vsel %vm387_vm2, %v459_v38, 0.0  ;;  %v462_v52 = vmax.f32 %v442_v40, 0.0  ;;  %v480_v54 = vsel %vm394_vm3, %v460_v47, 0.0 }
  0x1a   : > { %498 = vst.msk [vmem:[#allocation2 + $0x18] sm:$0x3] %vm495_vm1, %v476_v45  ;;  %500 = vst.msk [vmem:[#allocation2 + $0x28] sm:$0x3] %vm495_vm1, %v478_v49  ;;  %v416_v55 = vmul.f32 %v2691_v8, %v374_v41  ;;  %v417_v56 = vmul.f32 %v2691_v8, %v375_v36  ;;  %v418_v57 = vmul.f32 %v2691_v8, %v376_v42  ;;  %v481_v60 = vsel %vm387_vm2, %v461_v51, 0.0  ;;  %v2246_v36 = vld [vmem:[%s3080_s3 + $0x38] sm:$0xff] }
  0x1b   : > { %501 = vst.msk [vmem:[#allocation2 + $0x30] sm:$0xff] %vm493_vm0, %v479_v50  ;;  %v482_v61 = vsel %vm394_vm3, %v462_v52, 0.0  ;;  %v419_v62 = vmul.f32 %v2691_v8, %v377_v43  ;;  %v420_v63 = vmul.f32 %v2691_v8, %v378_v48  ;;  %503 = vst.msk [vmem:[#allocation2 + $0x40] sm:$0xff] %vm493_vm0, %v481_v60  ;;  %v421_v3 = vmul.f32 %v2691_v8, %v379_v53  ;;  %v515_v45 = vld [vmem:[#allocation2] sm:$0xff]  ;;  %v2210_v50 = vld [vmem:[%s3080_s3 + $0x18] sm:$0xff] }
  0x1c   : > { %502 = vst.msk [vmem:[#allocation2 + $0x38] sm:$0x3] %vm495_vm1, %v480_v54  ;;  %504 = vst.msk [vmem:[#allocation2 + $0x48] sm:$0x3] %vm495_vm1, %v482_v61  ;;  %v443_v0 = vadd.f32 %v2701_v9, %v416_v55  ;;  %v444_v1 = vadd.f32 %v2701_v9, %v417_v56  ;;  %v445_v2 = vadd.f32 %v2701_v9, %v418_v57  ;;  %v2255_v51 = vld [vmem:[%s3080_s3 + $0x40] sm:$0xff]  ;;  %v1389_v56 = vld [vmem:[#allocation2 + $0x90] sm:$0xff] }
  0x1d   : > { %v446_v10 = vadd.f32 %v2701_v9, %v419_v62  ;;  %v447_v11 = vadd.f32 %v2701_v9, %v420_v63  ;;  %v422_v12 = vmul.f32 %v2691_v8, %v380_v58  ;;  %v423_v13 = vmul.f32 %v2691_v8, %v381_v59  ;;  %v792_v57 = vld [vmem:[#allocation2 + $0x2] sm:$0xff]  ;;  %v1536_v61 = vld [vmem:[#allocation2 + $0x91] sm:$0xff]  ;;  %v2264_v63 = vld [vmem:[%s3082_s5] ss:$0 sm:$0xff] }
  0x1e   : > { %v463_v14 = vmax.f32 %v443_v0, 0.0  ;;  %v464_v15 = vmax.f32 %v444_v1, 0.0  ;;  %v465_v16 = vmax.f32 %v445_v2, 0.0  ;;  %v448_v17 = vadd.f32 %v2701_v9, %v421_v3  ;;  %v2219_v58 = vld [vmem:[%s3080_s3 + $0x20] sm:$0xff]  ;;  %v1824_v1 = vld [vmem:[%s2959_s23 + $0x8] sm:$0xff]  ;;  %v1825_v3 = vld [vmem:[%s2959_s23 + $0x10] sm:$0xff] }
  0x1f   : > { %v466_v18 = vmax.f32 %v446_v10, 0.0  ;;  %v467_v19 = vmax.f32 %v447_v11, 0.0  ;;  %v449_v20 = vadd.f32 %v2701_v9, %v422_v12  ;;  %v450_v21 = vadd.f32 %v2701_v9, %v423_v13  ;;  %v1869_v59 = vld [vmem:[%s3084_s7] sm:$0xf]  ;;  %v1826_v13 = vld [vmem:[%s2959_s23 + $0x18] sm:$0xff] }
  0x20   : > { %v483_v8 = vsel %vm387_vm2, %v463_v14, 0.0  ;;  %v484_v25 = vsel %vm394_vm3, %v464_v15, 0.0  ;;  %v485_v26 = vsel %vm387_vm2, %v465_v16, 0.0  ;;  %v468_v27 = vmax.f32 %v448_v17, 0.0  ;;  %v2869_v46 = vld [vmem:[#allocation2 + $0x20] sm:$0xff]  ;;  %v516_v47 = vld [vmem:[#allocation2 + $0x10] sm:$0xff] }
  0x21   : > { %v2783_v23 = vld [vmem:[#allocation2 + $0x11] sm:$0xff]  ;;  %v2797_v9 = vld [vmem:[#allocation2 + $0x22] sm:$0xff]  ;;  %505 = vst.msk [vmem:[#allocation2 + $0x50] sm:$0xff] %vm493_vm0, %v483_v8  ;;  %v486_v29 = vsel %vm394_vm3, %v466_v18, 0.0  ;;  %507 = vst.msk [vmem:[#allocation2 + $0x60] sm:$0xff] %vm493_vm0, %v485_v26  ;;  %v487_v30 = vsel %vm387_vm2, %v467_v19, 0.0  ;;  %v1839_v10 = vmul.f32 %v2264_v63, %v1824_v1  ;;  %v1840_v12 = vmul.f32 %v2264_v63, %v1825_v3 }
  0x22   : > { %v2785_v24 = vld [vmem:[#allocation2 + $0x12] sm:$0xff]  ;;  %2372 = vmatmul.mubr.msk.f32.vlgmr.msra.gmra.mrb[0].mxu1 %vm493_vm0, %v2783_v23  ;;  %v2799_v28 = vld [vmem:[#allocation2 + $0x21] sm:$0xff]  ;;  %506 = vst.msk [vmem:[#allocation2 + $0x58] sm:$0x3] %vm495_vm1, %v484_v25  ;;  %v469_v31 = vmax.f32 %v449_v20, 0.0  ;;  %v470_v32 = vmax.f32 %v450_v21, 0.0  ;;  %v1841_v16 = vmul.f32 %v2264_v63, %v1826_v13 }
  0x23   : > { %2441 = vmatprep.mubr.msk.f32.mxu0 %vm493_vm0, %v2785_v24  ;;  %2384 = vmatpush3.msra.mxu1 %v2671_v4  ;;  %v2811_v33 = vld [vmem:[#allocation2 + $0x31] sm:$0xff]  ;;  %508 = vst.msk [vmem:[#allocation2 + $0x68] sm:$0x3] %vm495_vm1, %v486_v29  ;;  %v488_v35 = vsel %vm394_vm3, %v468_v27, 0.0  ;;  %v2825_v4 = vld [vmem:[#allocation2 + $0x42] sm:$0xff] }
  0x24   : > { %2442 = vmatmul.mubr.msk.f32.vlgmr.msra.gmra.mrb[0].mxu0 %vm493_vm0, %v2797_v9  ;;  %v2813_v34 = vld [vmem:[#allocation2 + $0x32] sm:$0xff]  ;;  %509 = vst.msk [vmem:[#allocation2 + $0x70] sm:$0xff] %vm493_vm0, %v487_v30  ;;  %2374 = vmatprep.mubr.msk.f32.mxu1 %vm493_vm0, %v2799_v28  ;;  %v2827_v37 = vld [vmem:[#allocation2 + $0x41] sm:$0xff]  ;;  %v489_v38 = vsel %vm387_vm2, %v469_v31, 0.0  ;;  %v490_v39 = vsel %vm394_vm3, %v470_v32, 0.0 }
  0x25   : > { %2454 = vmatpush3.msra.mxu0 %v2680_v6  ;;  %510 = vst.msk [vmem:[#allocation2 + $0x78] sm:$0x3] %vm495_vm1, %v488_v35  ;;  %2444 = vmatprep.mubr.msk.f32.mxu0 %vm493_vm0, %v2813_v34  ;;  %512 = vst.msk [vmem:[#allocation2 + $0x88] sm:$0x3] %vm495_vm1, %v490_v39  ;;  %v2878_v48 = vld [vmem:[#allocation2 + $0x30] sm:$0xff]  ;;  %v2881_v49 = vld [vmem:[#allocation2 + $0x40] sm:$0xff] }
  0x26   : > { %511 = vst.msk [vmem:[#allocation2 + $0x80] sm:$0xff] %vm493_vm0, %v489_v38  ;;  %2397 = vmatprep.subr.mxu1 %v2781_v22  ;;  %2375 = vmatmul.mubr.msk.f32.gmra.mrb[2].mxu1 %vm493_vm0, %v2811_v33  ;;  %v1823_v62 = vld [vmem:[%s2959_s23] sm:$0xff]  ;;  %v1683_v17 = vld [vmem:[#allocation2 + $0x92] sm:$0xff]  ;;  %v1828_v21 = vld [vmem:[%s2959_s23 + $0x28] sm:$0xff] }
  0x27   : > { %2467 = vmatprep.subr.mxu0 %v2246_v36  ;;  %2377 = vmatprep.mubr.msk.f32.mxu1 %vm493_vm0, %v2827_v37  ;;  %v1838_v0 = vmul.f32 %v2264_v63, %v1823_v62  ;;  %v2265_v2 = vld [vmem:[%s3083_s6] ss:$0 sm:$0xff]  ;;  %v1843_v25 = vmul.f32 %v2264_v63, %v1828_v21  ;;  %v1830_v29 = vld [vmem:[%s2959_s23 + $0x38] sm:$0xff] }
  0x28   : > { %2445 = vmatmul.mubr.msk.f32.gmra.mrb[2].mxu0 %vm493_vm0, %v2825_v4  ;;  %v1385_v52 = vld [vmem:[#allocation2 + $0x50] sm:$0xff]  ;;  %v2896_v53 = vld [vmem:[#allocation2 + $0x60] sm:$0xff]  ;;  %v1854_v15 = vadd.f32 %v2265_v2, %v1839_v10  ;;  %v1855_v19 = vadd.f32 %v2265_v2, %v1840_v12  ;;  %v1856_v8 = vadd.f32 %v2265_v2, %v1841_v16 }
  0x29   : > { %v2845_v6 = vld [vmem:[#allocation2 + $0x51] sm:$0xff]  ;;  %v1853_v11 = vadd.f32 %v2265_v2, %v1838_v0  ;;  %v1827_v14 = vld [vmem:[%s2959_s23 + $0x20] sm:$0xff]  ;;  %v1858_v31 = vadd.f32 %v2265_v2, %v1843_v25 }
  0x2a   : > { %v2847_v7 = vld [vmem:[#allocation2 + $0x52] sm:$0xff]  ;;  %2378 = vmatmul.mubr.msk.f32.gmra.mrb[4].mxu1 %vm493_vm0, %v2845_v6  ;;  %v2853_v40 = vld [vmem:[#allocation2 + $0x62] sm:$0xff]  ;;  %v1842_v20 = vmul.f32 %v2264_v63, %v1827_v14  ;;  %v1863_v26 = vmax.f32 %v1855_v19, 0.0  ;;  %v1864_v30 = vmax.f32 %v1856_v8, 0.0 }
  0x2b   : > { %2447 = vmatprep.mubr.msk.f32.mxu0 %vm493_vm0, %v2847_v7  ;;  %v2855_v41 = vld [vmem:[#allocation2 + $0x61] sm:$0xff]  ;;  %v1387_v54 = vld [vmem:[#allocation2 + $0x70] sm:$0xff]  ;;  %v1861_v18 = vmax.f32 %v1853_v11, 0.0 }
  0x2c   : > { %2448 = vmatmul.mubr.msk.f32.gmra.mrb[4].mxu0 %vm493_vm0, %v2853_v40  ;;  %2380 = vmatprep.mubr.msk.f32.mxu1 %vm493_vm0, %v2855_v41  ;;  %v2861_v42 = vld [vmem:[#allocation2 + $0x71] sm:$0xff]  ;;  %v1857_v27 = vadd.f32 %v2265_v2, %v1842_v20 }
  0x2d   : > { %v2863_v43 = vld [vmem:[#allocation2 + $0x72] sm:$0xff]  ;;  %v2867_v44 = vld [vmem:[#allocation2 + $0x82] sm:$0xff] }
  0x2e   : > { %2450 = vmatprep.mubr.msk.f32.mxu0 %vm493_vm0, %v2863_v43  ;;  %2381 = vmatmul.mubr.msk.f32.gmra.mrb[6].mxu1 %vm493_vm0, %v2861_v42  ;;  %v2905_v55 = vld [vmem:[#allocation2 + $0x80] sm:$0xff]  ;;  %v1865_v32 = vmax.f32 %v1857_v27, 0.0 }
  0x2f   : > { %2385 = vmatprep.mubr.msk.f32.mxu1 %vm493_vm0, %v515_v45  ;;  %v2941_v60 = vld [vmem:[#allocation2 + $0x81] sm:$0xff] }
  0x30   : > { %2451 = vmatmul.mubr.msk.f32.gmra.mrb[6].mxu0 %vm493_vm0, %v2867_v44 }
  0x31   : > { %2455 = vmatprep.mubr.msk.f32.mxu0 %vm493_vm0, %v2869_v46 }
  0x32   : > { %2386 = vmatmul.mubr.msk.f32.vlgmr.msra.gmra.mrb[0].mxu1 %vm493_vm0, %v516_v47 }
  0x33   : > { %2398 = vmatpush3.msra.mxu1 %v2781_v22  ;;  %2388 = vmatprep.mubr.msk.f32.mxu1 %vm493_vm0, %v2869_v46  ;;  %v1829_v22 = vld [vmem:[%s2959_s23 + $0x30] sm:$0xff] }
  0x34   : > { %2456 = vmatmul.mubr.msk.f32.vlgmr.msra.gmra.mrb[0].mxu0 %vm493_vm0, %v2878_v48  ;;  %2411 = vmatprep.subr.mxu1 %v2210_v50 }
  0x35   : > { %2468 = vmatpush3.msra.mxu0 %v2246_v36  ;;  %2458 = vmatprep.mubr.msk.f32.mxu0 %vm493_vm0, %v2881_v49 }
  0x36   : > { %2389 = vmatmul.mubr.msk.f32.gmra.mrb[2].mxu1 %vm493_vm0, %v2878_v48  ;;  %2481 = vmatprep.subr.mxu0 %v2255_v51 }
  0x37   : > { %2391 = vmatprep.mubr.msk.f32.mxu1 %vm493_vm0, %v2881_v49 }
  0x38   : > { %2459 = vmatmul.mubr.msk.f32.gmra.mrb[2].mxu0 %vm493_vm0, %v1385_v52 }
  0x39   : > { %2461 = vmatprep.mubr.msk.f32.mxu0 %vm493_vm0, %v2896_v53 }
  0x3a   : > { %2392 = vmatmul.mubr.msk.f32.gmra.mrb[4].mxu1 %vm493_vm0, %v1385_v52 }
  0x3b   : > { %2394 = vmatprep.mubr.msk.f32.mxu1 %vm493_vm0, %v2896_v53 }
  0x3c   : > { %2462 = vmatmul.mubr.msk.f32.gmra.mrb[4].mxu0 %vm493_vm0, %v1387_v54 }
  0x3d   : > { %2464 = vmatprep.mubr.msk.f32.mxu0 %vm493_vm0, %v2905_v55 }
  0x3e   : > { %2395 = vmatmul.mubr.msk.f32.gmra.mrb[6].mxu1 %vm493_vm0, %v1387_v54 }
  0x3f   : > { %2399 = vmatprep.mubr.msk.f32.mxu1 %vm493_vm0, %v792_v57 }
  0x40   : > { %2465 = vmatmul.mubr.msk.f32.gmra.mrb[6].mxu0 %vm493_vm0, %v1389_v56 }
  0x41   : > { %2469 = vmatprep.mubr.msk.f32.mxu0 %vm493_vm0, %v2799_v28 }
  0x42   : > { %2400 = vmatmul.mubr.msk.f32.vlgmr.msra.gmra.mrb[0].mxu1 %vm493_vm0, %v2785_v24  ;;  %v1862_v24 = vmax.f32 %v1854_v15, 0.0 }
  0x43   : > { %2412 = vmatpush3.msra.mxu1 %v2210_v50  ;;  %2402 = vmatprep.mubr.msk.f32.mxu1 %vm493_vm0, %v2797_v9 }
  0x44   : > { %2470 = vmatmul.mubr.msk.f32.vlgmr.msra.gmra.mrb[0].mxu0 %vm493_vm0, %v2811_v33  ;;  %2425 = vmatprep.subr.mxu1 %v2219_v58 }
  0x45   : > { %2482 = vmatpush3.msra.mxu0 %v2255_v51  ;;  %2472 = vmatprep.mubr.msk.f32.mxu0 %vm493_vm0, %v2827_v37 }
  0x46   : > { %2403 = vmatmul.mubr.msk.f32.gmra.mrb[2].mxu1 %vm493_vm0, %v2813_v34  ;;  %2495 = vmatprep.subr.msk.mxu0 %vm1895_vm4, %v1869_v59 }
  0x47   : > { %2405 = vmatprep.mubr.msk.f32.mxu1 %vm493_vm0, %v2825_v4 }
  0x48   : > { %2473 = vmatmul.mubr.msk.f32.gmra.mrb[2].mxu0 %vm493_vm0, %v2845_v6 }
  0x49   : > { %2475 = vmatprep.mubr.msk.f32.mxu0 %vm493_vm0, %v2855_v41 }
  0x4a   : > { %2406 = vmatmul.mubr.msk.f32.gmra.mrb[4].mxu1 %vm493_vm0, %v2847_v7 }
  0x4b   : > { %2408 = vmatprep.mubr.msk.f32.mxu1 %vm493_vm0, %v2853_v40 }
  0x4c   : > { %2476 = vmatmul.mubr.msk.f32.gmra.mrb[4].mxu0 %vm493_vm0, %v2861_v42 }
  0x4d   : > { %2478 = vmatprep.mubr.msk.f32.mxu0 %vm493_vm0, %v2941_v60 }
  0x4e   : > { %2409 = vmatmul.mubr.msk.f32.gmra.mrb[6].mxu1 %vm493_vm0, %v2863_v43 }
  0x4f   : > { %2413 = vmatprep.mubr.msk.f32.mxu1 %vm493_vm0, %v516_v47 }
  0x50   : > { %2479 = vmatmul.mubr.msk.f32.gmra.mrb[6].mxu0 %vm493_vm0, %v1536_v61 }
  0x51   : > { %2483 = vmatprep.mubr.msk.f32.mxu0 %vm493_vm0, %v2797_v9  ;;  %v1844_v9 = vmul.f32 %v2264_v63, %v1829_v22 }
  0x52   : > { %2414 = vmatmul.mubr.msk.f32.vlgmr.msra.gmra.mrb[0].mxu1 %vm493_vm0, %v2869_v46 }
  0x53   : > { %2426 = vmatpush3.msra.mxu1 %v2219_v58  ;;  %2416 = vmatprep.mubr.msk.f32.mxu1 %vm493_vm0, %v2878_v48 }
  0x54   : > { %2484 = vmatmul.mubr.msk.f32.vlgmr.msra.gmra.mrb[0].mxu0 %vm493_vm0, %v2813_v34  ;;  %v1859_v34 = vadd.f32 %v2265_v2, %v1844_v9 }
  0x55   : > { %2496 = vmatpush3.msk.msra.mxu0 %vm1895_vm4, %v1869_v59  ;;  %2486 = vmatprep.mubr.msk.f32.mxu0 %vm493_vm0, %v2825_v4 }
  0x56   : > { %2417 = vmatmul.mubr.msk.f32.gmra.mrb[2].mxu1 %vm493_vm0, %v2881_v49 }
  0x57   : > { %2419 = vmatprep.mubr.msk.f32.mxu1 %vm493_vm0, %v1385_v52 }
  0x58   : > { %2487 = vmatmul.mubr.msk.f32.gmra.mrb[2].mxu0 %vm493_vm0, %v2847_v7 }
  0x59   : > { %2489 = vmatprep.mubr.msk.f32.mxu0 %vm493_vm0, %v2853_v40 }
  0x5a   : > { %2420 = vmatmul.mubr.msk.f32.gmra.mrb[4].mxu1 %vm493_vm0, %v2896_v53 }
  0x5b   : > { %2422 = vmatprep.mubr.msk.f32.mxu1 %vm493_vm0, %v1387_v54 }
  0x5c   : > { %2490 = vmatmul.mubr.msk.f32.gmra.mrb[4].mxu0 %vm493_vm0, %v2863_v43 }
  0x5d   : > { %2492 = vmatprep.mubr.msk.f32.mxu0 %vm493_vm0, %v2867_v44 }
  0x5e   : > { %2423 = vmatmul.mubr.msk.f32.gmra.mrb[6].mxu1 %vm493_vm0, %v2905_v55 }
  0x5f   : > { %2427 = vmatprep.mubr.msk.f32.mxu1 %vm493_vm0, %v2783_v23  ;;  %v1845_v23 = vmul.f32 %v2264_v63, %v1830_v29 }
  0x60   : > { %2493 = vmatmul.mubr.msk.f32.gmra.mrb[6].mxu0 %vm493_vm0, %v1683_v17 }
  0x61   : > { %2497 = vmatprep.mubr.msk.f32.mxu0 %vm1870_vm5, %v1861_v18  ;;  %v1860_v35 = vadd.f32 %v2265_v2, %v1845_v23 }
  0x62   : > { %2428 = vmatmul.mubr.msk.f32.vlgmr.msra.gmra.mrb[0].mxu1 %vm493_vm0, %v2799_v28  ;;  %v1866_v28 = vmax.f32 %v1858_v31, 0.0 }
  0x63   : > { %2430 = vmatprep.mubr.msk.f32.mxu1 %vm493_vm0, %v2811_v33  ;;  %v1867_v33 = vmax.f32 %v1859_v34, 0.0  ;;  %v1868_v36 = vmax.f32 %v1860_v35, 0.0 }
  0x64   : > { %2498 = vmatmul.mubr.msk.f32.vlgmr.msra.gmra.mrb[0].mxu0 %vm1870_vm5, %v1862_v24 }
  0x65   : > { %2500 = vmatprep.mubr.msk.f32.mxu0 %vm1870_vm5, %v1863_v26 }
  0x66   : > { %2431 = vmatmul.mubr.msk.f32.gmra.mrb[2].mxu1 %vm493_vm0, %v2827_v37 }
  0x67   : > { %2433 = vmatprep.mubr.msk.f32.mxu1 %vm493_vm0, %v2845_v6 }
  0x68   : > { %2501 = vmatmul.mubr.msk.f32.gmra.mrb[2].mxu0 %vm1870_vm5, %v1864_v30 }
  0x69   : > { %2503 = vmatprep.mubr.msk.f32.mxu0 %vm1870_vm5, %v1865_v32 }
  0x6a   : > { %2434 = vmatmul.mubr.msk.f32.gmra.mrb[4].mxu1 %vm493_vm0, %v2855_v41 }
  0x6b   : > { %2436 = vmatprep.mubr.msk.f32.mxu1 %vm493_vm0, %v2861_v42 }
  0x6c   : > { %2504 = vmatmul.mubr.msk.f32.gmra.mrb[4].mxu0 %vm1870_vm5, %v1866_v28 }
  0x6d   : > { %2506 = vmatprep.mubr.msk.f32.mxu0 %vm1870_vm5, %v1867_v33 }
  0x6e   : > { %2437 = vmatmul.mubr.msk.f32.gmra.mrb[6].mxu1 %vm493_vm0, %v2941_v60 }
  0x70   : > { %2507 = vmatmul.mubr.msk.f32.gmra.mrb[6].mxu0 %vm1870_vm5, %v1868_v36 }
 0x135   : > { %v2429_v4 = vpop.f32.mrb[0].mxu1 }
 0x136   : > { %v1187_v37 = vpop.f32.mrb[1].mxu1 }
 0x137   : > { %v2499_v38 = vpop.f32.mrb[0].mxu0 }
 0x138   : > { %v2509_v39 = vadd.f32 %v2499_v38, %v2429_v4  ;;  %v1965_v6 = vpop.f32.mrb[1].mxu0 }
 0x139   : > { %v2510_v7 = vadd.f32 %v1965_v6, %v1187_v37  ;;  %v2432_v42 = vpop.f32.mrb[2].mxu1 }
 0x13a   : > { %2013 = vst.msk [vmem:[%s3034_s11 + $0x8] sm:$0xff] %vm493_vm0, %v2509_v39  ;;  %v2021_v40 = vsel %vm493_vm0, %v2509_v39, 0.0  ;;  %v2042_v41 = vmul.f32 %v2509_v39, %v2509_v39  ;;  %v1197_v45 = vpop.f32.mrb[3].mxu1 }
 0x13b   : > { %2012 = vst.msk [vmem:[%s3034_s11] sm:$0xff] %vm493_vm0, %v2510_v7  ;;  %v2020_v43 = vsel %vm493_vm0, %v2510_v7, 0.0  ;;  %v2041_v44 = vmul.f32 %v2510_v7, %v2510_v7  ;;  %v2502_v46 = vpop.f32.mrb[2].mxu0 }
 0x13c   : > { %v2050_v47 = vsel %vm493_vm0, %v2042_v41, 0.0  ;;  %v2022_v48 = vadd.f32 %v2021_v40, %v2020_v43  ;;  %v2511_v49 = vadd.f32 %v2502_v46, %v2432_v42  ;;  %v1975_v50 = vpop.f32.mrb[3].mxu0 }
 0x13d   : > { %v2049_v51 = vsel %vm493_vm0, %v2041_v44, 0.0  ;;  %v2512_v52 = vadd.f32 %v1975_v50, %v1197_v45  ;;  %v2435_v54 = vpop.f32.mrb[4].mxu1 }
 0x13e   : > { %v2051_v53 = vadd.f32 %v2050_v47, %v2049_v51  ;;  %2015 = vst.msk [vmem:[%s3034_s11 + $0x18] sm:$0xff] %vm493_vm0, %v2511_v49  ;;  %v2044_v55 = vmul.f32 %v2511_v49, %v2511_v49  ;;  %v1207_v58 = vpop.f32.mrb[5].mxu1  ;;  %v2025_v63 = vsel %vm493_vm0, %v2511_v49, 0.0 }
 0x13f   : > { %2014 = vst.msk [vmem:[%s3034_s11 + $0x10] sm:$0xff] %vm493_vm0, %v2512_v52  ;;  %v2023_v56 = vsel %vm493_vm0, %v2512_v52, 0.0  ;;  %v2043_v57 = vmul.f32 %v2512_v52, %v2512_v52  ;;  %v2505_v59 = vpop.f32.mrb[4].mxu0 }
 0x140   : > { %v2024_v60 = vadd.f32 %v2023_v56, %v2022_v48  ;;  %v2513_v61 = vadd.f32 %v2505_v59, %v2435_v54  ;;  %v1985_v62 = vpop.f32.mrb[5].mxu0  ;;  %v2054_v11 = vsel %vm493_vm0, %v2044_v55, 0.0 }
 0x141   : > { %v2052_v0 = vsel %vm493_vm0, %v2043_v57, 0.0  ;;  %v2514_v1 = vadd.f32 %v1985_v62, %v1207_v58  ;;  %v2438_v10 = vpop.f32.mrb[6].mxu1 }
 0x142   : > { %v2053_v2 = vadd.f32 %v2052_v0, %v2051_v53  ;;  %2017 = vst.msk [vmem:[%s3034_s11 + $0x28] sm:$0xff] %vm493_vm0, %v2513_v61  ;;  %v2026_v3 = vadd.f32 %v2025_v63, %v2024_v60  ;;  %v2046_v12 = vmul.f32 %v2513_v61, %v2513_v61  ;;  %v1217_v15 = vpop.f32.mrb[7].mxu1  ;;  %v2029_v21 = vsel %vm493_vm0, %v2513_v61, 0.0 }
 0x143   : > { %2016 = vst.msk [vmem:[%s3034_s11 + $0x20] sm:$0xff] %vm493_vm0, %v2514_v1  ;;  %v2027_v13 = vsel %vm493_vm0, %v2514_v1, 0.0  ;;  %v2045_v14 = vmul.f32 %v2514_v1, %v2514_v1  ;;  %v2508_v16 = vpop.f32.mrb[6].mxu0 }
 0x144   : > { %v2028_v17 = vadd.f32 %v2027_v13, %v2026_v3  ;;  %v2055_v18 = vadd.f32 %v2054_v11, %v2053_v2  ;;  %v2515_v19 = vadd.f32 %v2508_v16, %v2438_v10  ;;  %v1995_v20 = vpop.f32.mrb[7].mxu0  ;;  %v2058_v26 = vsel %vm493_vm0, %v2046_v12, 0.0 }
 0x145   : > { %v2056_v22 = vsel %vm493_vm0, %v2045_v14, 0.0  ;;  %v2516_v24 = vadd.f32 %v1995_v20, %v1217_v15 }
 0x146   : > { %v2057_v8 = vadd.f32 %v2056_v22, %v2055_v18  ;;  %2019 = vst.msk [vmem:[%s3034_s11 + $0x38] sm:$0xff] %vm493_vm0, %v2515_v19  ;;  %v2030_v25 = vadd.f32 %v2029_v21, %v2028_v17  ;;  %v2048_v27 = vmul.f32 %v2515_v19, %v2515_v19  ;;  %v2033_v23 = vsel %vm493_vm0, %v2515_v19, 0.0 }
 0x147   : > { %2018 = vst.msk [vmem:[%s3034_s11 + $0x30] sm:$0xff] %vm493_vm0, %v2516_v24  ;;  %v2031_v9 = vsel %vm493_vm0, %v2516_v24, 0.0  ;;  %v2047_v29 = vmul.f32 %v2516_v24, %v2516_v24 }
 0x148   : > { %v2032_v30 = vadd.f32 %v2031_v9, %v2030_v25  ;;  %v2059_v31 = vadd.f32 %v2058_v26, %v2057_v8  ;;  %v2062_v35 = vsel %vm493_vm0, %v2048_v27, 0.0 }
 0x149   : > { %v2060_v32 = vsel %vm493_vm0, %v2047_v29, 0.0 }
 0x14a   : > { %v2034_v34 = vadd.f32 %v2033_v23, %v2032_v30  ;;  %v2061_v28 = vadd.f32 %v2060_v32, %v2059_v31 }
 0x14c   : > { %v2035_v33 = vrot.slane %v2034_v34, 4  ;;  %v2063_v36 = vadd.f32 %v2062_v35, %v2061_v28 }
 0x14e   : > { %v2036_v4 = vadd.f32 %v2035_v33, %v2034_v34  ;;  %v2064_v37 = vrot.slane %v2063_v36, 4 }
 0x150   : > { %v2037_v38 = vrot.slane %v2036_v4, 2  ;;  %v2065_v39 = vadd.f32 %v2064_v37, %v2063_v36 }
 0x152   : > { %v2038_v6 = vadd.f32 %v2037_v38, %v2036_v4  ;;  %v2066_v7 = vrot.slane %v2065_v39, 2 }
 0x154   : > { %v2039_v40 = vrot.slane %v2038_v6, 1  ;;  %v2067_v41 = vadd.f32 %v2066_v7, %v2065_v39 }
 0x156   : > { %v2068_v42 = vrot.slane %v2067_v41, 1  ;;  %v2040_v43 = vadd.f32 %v2039_v40, %v2038_v6 }
 0x158   : > { %v2069_v44 = vadd.f32 %v2068_v42, %v2067_v41 }
 0x15a   : > { %v2071_v45 = vsel %vm2070_vm6, %v2040_v43, %v2069_v44 }
 0x15b   : > { %2072 = vst.msk [vmem:[%s363_s15] sm:$0x3] %vm495_vm1, %v2071_v45 }
 0x15c PF: > { %s20_s30 = sadd.s32 1, %s2597_s30  }
 0x15d   : > { %p17_p4 = scmp.ge.s32.totalorder %s20_s30, 4  }
 0x15f   :  { %19 = sbr.rel (!%p17_p4) target bundleno = 1 (0x1), region = 107 }

// kernel: network_block_forward.8
= control target key start
LH: loop header
LB: loop body
LE: loop exit
PB: predicated region body
PF: predicated region fallthrough
CT: control target
= control target key end

     0   :  { %s2258_s18 = smov 0   ;;  %s2619_s0 = inlined_call_operand.vmem [shape: f32[2,10,10,8], index: 0, kind: input, shape index: {}]   ;;  %s2620_s1 = inlined_call_operand.vmem [shape: f32[1,8], index: 1, kind: input, shape index: {}]   ;;  %s2621_s2 = inlined_call_operand.vmem [shape: f32[1,8], index: 2, kind: input, shape index: {}]   ;;  %s2622_s3 = inlined_call_operand.vmem [shape: f32[9,8,8], index: 3, kind: input, shape index: {}]   ;;  %s2623_s4 = inlined_call_operand.vmem [shape: f32[2,64,8], index: 4, kind: output, shape index: {0}]   ;;  %s2624_s5 = inlined_call_operand.vmem [shape: f32[2,2,8], index: 5, kind: output, shape index: {1}]  }
   0x1 LB: > { %s1842_s19 = sadd.s32 4294967295, %s2225_s18   ;;  %p1846_p0 = scmp.ge.s32.totalorder %s2225_s18, 1  ;;  %s2225_s18 = sphi %s2258_s18, %s16_s18  }
   0x2   : > { %p190_p1 = scmp.lt.s32.totalorder %s2225_s18, 3 }
   0x4   : > { %p191_p2 = pnand %p1846_p0, %p190_p1 }
   0x5   : > { %v1853_v0 = vld [vmem:[%s2622_s3 + $0x8] sm:$0xff] (!%p191_p2)  ;;  %v2272_v1 = vld [vmem:[%s2622_s3 + $0x20] sm:$0xff] (!%p191_p2)  ;;  %vm365_vm0 = vcmask (!%p191_p2), 64512   ;;  %vm367_vm1 = vcmask (!%p191_p2), 58368   ;;  %p222_p3 = scmp.lt.s32.totalorder (!%p191_p2), %s1842_s19, 1  ;;  %v256_v2 = vlaneseq (!%p191_p2)  ;;  %v2227_v3 = vmov (!%p191_p2), 0.0  }
   0x6   : > { %194 = sbr.rel (%p191_p2) target bundleno = 339 (0x153), region = 36  ;;  %2017 = vmatprep.subr.mxu1 (!%p191_p2), %v1853_v0  ;;  %2073 = vmatprep.subr.mxu0 (!%p191_p2), %v2272_v1  ;;  %366 = vst.msk [vmem:[#allocation2] sm:$0xff] (!%p191_p2), %vm365_vm0, %v2227_v3  ;;  %385 = vst.msk [vmem:[#allocation2 + $0x90] sm:$0xff] (!%p191_p2), %vm365_vm0, %v2227_v3  ;;  %v2282_v4 = vld [vmem:[%s2622_s3] sm:$0xff] (!%p191_p2)  ;;  %v2292_v6 = vld [vmem:[%s2622_s3 + $0x28] sm:$0xff] (!%p191_p2) }
   0x7   : > { %368 = vst.msk [vmem:[#allocation2 + $0x8] sm:$0x3] (!%p191_p2), %vm367_vm1, %v2227_v3  ;;  %386 = vst.msk [vmem:[#allocation2 + $0x98] sm:$0x3] (!%p191_p2), %vm367_vm1, %v2227_v3  ;;  %2018 = vmatpush3.msra.mxu1 (!%p191_p2), %v1853_v0  ;;  %2074 = vmatpush3.msra.mxu0 (!%p191_p2), %v2272_v1  ;;  %v2287_v5 = vshrl.u32 (!%p191_p2), %v256_v2, 7 }
   0x8   : > { %2031 = vmatprep.subr.mxu1 (!%p191_p2), %v2282_v4  ;;  %2087 = vmatprep.subr.mxu0 (!%p191_p2), %v2292_v6  ;;  %v2303_v8 = vld [vmem:[%s2620_s1] ss:$0 sm:$0xff] (!%p191_p2) }
   0x9   : > { %v2298_v7 = vadd.s32 (!%p191_p2), 8, %v2287_v5  ;;  %v2313_v9 = vld [vmem:[%s2621_s2] ss:$0 sm:$0xff] (!%p191_p2)  ;;  %vm259_vm2 = vcmp.ge.s32.totalorder (!%p191_p2), %v2287_v5, 1  ;;  %vm1753_vm4 = vcmp.eq.s32.totalorder (!%p191_p2), %v2287_v5, 0 }
   0xb   : > { %vm266_vm3 = vcmp.le.s32.totalorder (!%p191_p2), %v2298_v7, 8 }
   0xd   : > { %s2626_s19 = smov (!%p222_p3, %s1842_s19), 1 }
   0xe   : > { %s2209_s28 = smul.u32 160, %s2626_s19  ;;  %v396_v13 = vld [vmem:[#allocation2 + $0x1] sm:$0xff]  ;;  %s1935_s23 = sshll.u32 %s2626_s19, 6 }
   0xf   : > { %2019 = vmatprep.mubr.msk.f32.mxu1 %vm365_vm0, %v396_v13  ;;  %s2576_s26 = scalar_lea.vmem %s2623_s4, %s1935_s23  ;;  %s1850_s27 = sshll.u32 %s2626_s19, 1 }
  0x10   : > { %s2308_s8 = scalar_lea.vmem %s2619_s0, %s2209_s28  ;;  %s235_s30 = scalar_lea.vmem %s2624_s5, %s1850_s27 }
  0x11   : > { %v238_v10 = vld [vmem:[%s2308_s8 + $0x10] sm:$0xff]  ;;  %v239_v11 = vld [vmem:[%s2308_s8 + $0x18] sm:$0x3]  ;;  %v240_v12 = vld [vmem:[%s2308_s8 + $0x20] sm:$0xff] }
  0x12   : > { %v280_v14 = vmul.f32 %v2303_v8, %v238_v10  ;;  %v281_v15 = vmul.f32 %v2303_v8, %v239_v11  ;;  %v241_v16 = vld [vmem:[%s2308_s8 + $0x28] sm:$0x3]  ;;  %v282_v17 = vmul.f32 %v2303_v8, %v240_v12  ;;  %v242_v18 = vld [vmem:[%s2308_s8 + $0x30] sm:$0xff]  ;;  %v243_v20 = vld [vmem:[%s2308_s8 + $0x38] sm:$0x3] }
  0x13   : > { %v283_v19 = vmul.f32 %v2303_v8, %v241_v16  ;;  %v284_v21 = vmul.f32 %v2303_v8, %v242_v18  ;;  %v244_v22 = vld [vmem:[%s2308_s8 + $0x40] sm:$0xff]  ;;  %v245_v23 = vld [vmem:[%s2308_s8 + $0x48] sm:$0x3]  ;;  %v285_v27 = vmul.f32 %v2303_v8, %v243_v20  ;;  %v247_v36 = vld [vmem:[%s2308_s8 + $0x58] sm:$0x3] }
  0x14   : > { %v307_v24 = vadd.f32 %v2313_v9, %v280_v14  ;;  %v308_v25 = vadd.f32 %v2313_v9, %v281_v15  ;;  %v309_v26 = vadd.f32 %v2313_v9, %v282_v17  ;;  %v286_v30 = vmul.f32 %v2303_v8, %v244_v22  ;;  %v246_v41 = vld [vmem:[%s2308_s8 + $0x50] sm:$0xff]  ;;  %v248_v42 = vld [vmem:[%s2308_s8 + $0x60] sm:$0xff]  ;;  %v249_v43 = vld [vmem:[%s2308_s8 + $0x68] sm:$0x3] }
  0x15   : > { %v310_v28 = vadd.f32 %v2313_v9, %v283_v19  ;;  %v311_v29 = vadd.f32 %v2313_v9, %v284_v21  ;;  %v287_v31 = vmul.f32 %v2303_v8, %v245_v23  ;;  %v312_v35 = vadd.f32 %v2313_v9, %v285_v27  ;;  %v250_v48 = vld [vmem:[%s2308_s8 + $0x70] sm:$0xff]  ;;  %v251_v53 = vld [vmem:[%s2308_s8 + $0x78] sm:$0x3]  ;;  %v252_v58 = vld [vmem:[%s2308_s8 + $0x80] sm:$0xff] }
  0x16   : > { %v327_v32 = vmax.f32 %v307_v24, 0.0  ;;  %v328_v33 = vmax.f32 %v308_v25, 0.0  ;;  %v329_v34 = vmax.f32 %v309_v26, 0.0  ;;  %v313_v39 = vadd.f32 %v2313_v9, %v286_v30  ;;  %v253_v59 = vld [vmem:[%s2308_s8 + $0x88] sm:$0x3] }
  0x17   : > { %v330_v37 = vmax.f32 %v310_v28, 0.0  ;;  %v331_v38 = vmax.f32 %v311_v29, 0.0  ;;  %v314_v40 = vadd.f32 %v2313_v9, %v287_v31  ;;  %v332_v47 = vmax.f32 %v312_v35, 0.0 }
  0x18   : > { %v347_v44 = vsel %vm259_vm2, %v327_v32, 0.0  ;;  %v348_v45 = vsel %vm266_vm3, %v328_v33, 0.0  ;;  %v349_v46 = vsel %vm259_vm2, %v329_v34, 0.0  ;;  %v333_v51 = vmax.f32 %v313_v39, 0.0  ;;  %v1870_v33 = vld [vmem:[%s2622_s3 + $0x10] sm:$0xff] }
  0x19   : > { %369 = vst.msk [vmem:[#allocation2 + $0x10] sm:$0xff] %vm365_vm0, %v347_v44  ;;  %v350_v49 = vsel %vm266_vm3, %v330_v37, 0.0  ;;  %371 = vst.msk [vmem:[#allocation2 + $0x20] sm:$0xff] %vm365_vm0, %v349_v46  ;;  %v351_v50 = vsel %vm259_vm2, %v331_v38, 0.0  ;;  %v334_v52 = vmax.f32 %v314_v40, 0.0  ;;  %v352_v54 = vsel %vm266_vm3, %v332_v47, 0.0 }
  0x1a   : > { %370 = vst.msk [vmem:[#allocation2 + $0x18] sm:$0x3] %vm367_vm1, %v348_v45  ;;  %372 = vst.msk [vmem:[#allocation2 + $0x28] sm:$0x3] %vm367_vm1, %v350_v49  ;;  %v288_v55 = vmul.f32 %v2303_v8, %v246_v41  ;;  %v289_v56 = vmul.f32 %v2303_v8, %v247_v36  ;;  %v290_v57 = vmul.f32 %v2303_v8, %v248_v42  ;;  %v353_v60 = vsel %vm259_vm2, %v333_v51, 0.0  ;;  %v1915_v40 = vld [vmem:[%s2622_s3 + $0x38] sm:$0xff] }
  0x1b   : > { %373 = vst.msk [vmem:[#allocation2 + $0x30] sm:$0xff] %vm365_vm0, %v351_v50  ;;  %v354_v61 = vsel %vm266_vm3, %v334_v52, 0.0  ;;  %v291_v62 = vmul.f32 %v2303_v8, %v249_v43  ;;  %v292_v63 = vmul.f32 %v2303_v8, %v250_v48  ;;  %375 = vst.msk [vmem:[#allocation2 + $0x40] sm:$0xff] %vm365_vm0, %v353_v60  ;;  %v293_v10 = vmul.f32 %v2303_v8, %v251_v53  ;;  %v387_v43 = vld [vmem:[#allocation2] sm:$0xff]  ;;  %v1879_v49 = vld [vmem:[%s2622_s3 + $0x18] sm:$0xff] }
  0x1c   : > { %374 = vst.msk [vmem:[#allocation2 + $0x38] sm:$0x3] %vm367_vm1, %v352_v54  ;;  %376 = vst.msk [vmem:[#allocation2 + $0x48] sm:$0x3] %vm367_vm1, %v354_v61  ;;  %v315_v0 = vadd.f32 %v2313_v9, %v288_v55  ;;  %v316_v2 = vadd.f32 %v2313_v9, %v289_v56  ;;  %v317_v3 = vadd.f32 %v2313_v9, %v290_v57  ;;  %v1924_v55 = vld [vmem:[%s2622_s3 + $0x40] sm:$0xff]  ;;  %v1408_v61 = vld [vmem:[#allocation2 + $0x91] sm:$0xff] }
  0x1d   : > { %v318_v11 = vadd.f32 %v2313_v9, %v291_v62  ;;  %v319_v12 = vadd.f32 %v2313_v9, %v292_v63  ;;  %v294_v13 = vmul.f32 %v2303_v8, %v252_v58  ;;  %v295_v14 = vmul.f32 %v2303_v8, %v253_v59  ;;  %v664_v57 = vld [vmem:[#allocation2 + $0x2] sm:$0xff]  ;;  %v1261_v59 = vld [vmem:[#allocation2 + $0x90] sm:$0xff] }
  0x1e   : > { %v335_v15 = vmax.f32 %v315_v0, 0.0  ;;  %v336_v16 = vmax.f32 %v316_v2, 0.0  ;;  %v337_v17 = vmax.f32 %v317_v3, 0.0  ;;  %v320_v18 = vadd.f32 %v2313_v9, %v293_v10 }
  0x1f   : > { %v338_v19 = vmax.f32 %v318_v11, 0.0  ;;  %v339_v20 = vmax.f32 %v319_v12, 0.0  ;;  %v321_v21 = vadd.f32 %v2313_v9, %v294_v13  ;;  %v322_v22 = vadd.f32 %v2313_v9, %v295_v14  ;;  %v1906_v9 = vld [vmem:[%s2622_s3 + $0x30] sm:$0xff] }
  0x20   : > { %v355_v24 = vsel %vm259_vm2, %v335_v15, 0.0  ;;  %v356_v25 = vsel %vm266_vm3, %v336_v16, 0.0  ;;  %v357_v8 = vsel %vm259_vm2, %v337_v17, 0.0  ;;  %v340_v26 = vmax.f32 %v320_v18, 0.0  ;;  %v388_v45 = vld [vmem:[#allocation2 + $0x10] sm:$0xff]  ;;  %v389_v47 = vld [vmem:[#allocation2 + $0x20] sm:$0xff] }
  0x21   : > { %v397_v23 = vld [vmem:[#allocation2 + $0x11] sm:$0xff]  ;;  %v2398_v27 = vld [vmem:[#allocation2 + $0x21] sm:$0xff]  ;;  %377 = vst.msk [vmem:[#allocation2 + $0x50] sm:$0xff] %vm365_vm0, %v355_v24  ;;  %v358_v28 = vsel %vm266_vm3, %v338_v19, 0.0  ;;  %379 = vst.msk [vmem:[#allocation2 + $0x60] sm:$0xff] %vm365_vm0, %v357_v8  ;;  %v359_v29 = vsel %vm259_vm2, %v339_v20, 0.0 }
  0x22   : > { %2020 = vmatmul.mubr.msk.f32.vlgmr.msra.gmra.mrb[0].mxu1 %vm365_vm0, %v397_v23  ;;  %2075 = vmatprep.mubr.msk.f32.mxu0 %vm365_vm0, %v397_v23  ;;  %378 = vst.msk [vmem:[#allocation2 + $0x58] sm:$0x3] %vm367_vm1, %v356_v25  ;;  %v341_v30 = vmax.f32 %v321_v21, 0.0  ;;  %380 = vst.msk [vmem:[#allocation2 + $0x68] sm:$0x3] %vm367_vm1, %v358_v28  ;;  %v360_v32 = vsel %vm266_vm3, %v340_v26, 0.0 }
  0x23   : > { %2032 = vmatpush3.msra.mxu1 %v2282_v4  ;;  %2076 = vmatmul.mubr.msk.f32.vlgmr.msra.gmra.mrb[0].mxu0 %vm365_vm0, %v2398_v27  ;;  %v2413_v31 = vld [vmem:[#allocation2 + $0x31] sm:$0xff]  ;;  %381 = vst.msk [vmem:[#allocation2 + $0x70] sm:$0xff] %vm365_vm0, %v359_v29  ;;  %v342_v34 = vmax.f32 %v322_v22, 0.0  ;;  %v2425_v4 = vld [vmem:[#allocation2 + $0x41] sm:$0xff] }
  0x24   : > { %2088 = vmatpush3.msra.mxu0 %v2292_v6  ;;  %2022 = vmatprep.mubr.msk.f32.mxu1 %vm365_vm0, %v2398_v27  ;;  %382 = vst.msk [vmem:[#allocation2 + $0x78] sm:$0x3] %vm367_vm1, %v360_v32  ;;  %v361_v35 = vsel %vm259_vm2, %v341_v30, 0.0  ;;  %v2432_v36 = vld [vmem:[#allocation2 + $0x12] sm:$0xff]  ;;  %v2446_v6 = vld [vmem:[#allocation2 + $0x22] sm:$0xff] }
  0x25   : > { %2078 = vmatprep.mubr.msk.f32.mxu0 %vm365_vm0, %v2413_v31  ;;  %2101 = vmatprep.subr.mxu0 %v1906_v9  ;;  %v362_v37 = vsel %vm266_vm3, %v342_v34, 0.0  ;;  %383 = vst.msk [vmem:[#allocation2 + $0x80] sm:$0xff] %vm365_vm0, %v361_v35  ;;  %v2450_v38 = vld [vmem:[#allocation2 + $0x32] sm:$0xff]  ;;  %v2467_v42 = vld [vmem:[#allocation2 + $0x42] sm:$0xff] }
  0x26   : > { %2023 = vmatmul.mubr.msk.f32.gmra.mrb[2].mxu1 %vm365_vm0, %v2413_v31  ;;  %2045 = vmatprep.subr.mxu1 %v1870_v33  ;;  %384 = vst.msk [vmem:[#allocation2 + $0x88] sm:$0x3] %vm367_vm1, %v362_v37  ;;  %v390_v50 = vld [vmem:[#allocation2 + $0x30] sm:$0xff]  ;;  %v391_v52 = vld [vmem:[#allocation2 + $0x40] sm:$0xff] }
  0x27   : > { %2079 = vmatmul.mubr.msk.f32.gmra.mrb[2].mxu0 %vm365_vm0, %v2425_v4  ;;  %2025 = vmatprep.mubr.msk.f32.mxu1 %vm365_vm0, %v2425_v4 }
  0x28   : > { %2089 = vmatprep.mubr.msk.f32.mxu0 %vm365_vm0, %v2432_v36  ;;  %v392_v53 = vld [vmem:[#allocation2 + $0x50] sm:$0xff]  ;;  %v393_v54 = vld [vmem:[#allocation2 + $0x60] sm:$0xff] }
  0x29   : > { %v2448_v7 = vld [vmem:[#allocation2 + $0x51] sm:$0xff]  ;;  %v2454_v39 = vld [vmem:[#allocation2 + $0x61] sm:$0xff] }
  0x2a   : > { %2026 = vmatmul.mubr.msk.f32.gmra.mrb[4].mxu1 %vm365_vm0, %v2448_v7  ;;  %v2469_v44 = vld [vmem:[#allocation2 + $0x52] sm:$0xff]  ;;  %v2478_v46 = vld [vmem:[#allocation2 + $0x62] sm:$0xff] }
  0x2b   : > { %2090 = vmatmul.mubr.msk.f32.vlgmr.msra.gmra.mrb[0].mxu0 %vm365_vm0, %v2446_v6  ;;  %2028 = vmatprep.mubr.msk.f32.mxu1 %vm365_vm0, %v2454_v39  ;;  %v2463_v41 = vld [vmem:[#allocation2 + $0x71] sm:$0xff] }
  0x2c   : > { %2102 = vmatpush3.msra.mxu0 %v1906_v9  ;;  %2092 = vmatprep.mubr.msk.f32.mxu0 %vm365_vm0, %v2450_v38  ;;  %v2480_v48 = vld [vmem:[#allocation2 + $0x72] sm:$0xff]  ;;  %v1260_v58 = vld [vmem:[#allocation2 + $0x80] sm:$0xff] }
  0x2d   : > { %2115 = vmatprep.subr.mxu0 %v1915_v40  ;;  %v2491_v51 = vld [vmem:[#allocation2 + $0x82] sm:$0xff]  ;;  %v394_v56 = vld [vmem:[#allocation2 + $0x70] sm:$0xff] }
  0x2e   : > { %2029 = vmatmul.mubr.msk.f32.gmra.mrb[6].mxu1 %vm365_vm0, %v2463_v41  ;;  %v1407_v60 = vld [vmem:[#allocation2 + $0x81] sm:$0xff] }
  0x2f   : > { %2093 = vmatmul.mubr.msk.f32.gmra.mrb[2].mxu0 %vm365_vm0, %v2467_v42  ;;  %2033 = vmatprep.mubr.msk.f32.mxu1 %vm365_vm0, %v387_v43 }
  0x30   : > { %2095 = vmatprep.mubr.msk.f32.mxu0 %vm365_vm0, %v2469_v44 }
  0x32   : > { %2034 = vmatmul.mubr.msk.f32.vlgmr.msra.gmra.mrb[0].mxu1 %vm365_vm0, %v388_v45 }
  0x33   : > { %2046 = vmatpush3.msra.mxu1 %v1870_v33  ;;  %2096 = vmatmul.mubr.msk.f32.gmra.mrb[4].mxu0 %vm365_vm0, %v2478_v46 }
  0x34   : > { %2036 = vmatprep.mubr.msk.f32.mxu1 %vm365_vm0, %v389_v47  ;;  %2098 = vmatprep.mubr.msk.f32.mxu0 %vm365_vm0, %v2480_v48 }
  0x35   : > { %2059 = vmatprep.subr.mxu1 %v1879_v49 }
  0x36   : > { %2037 = vmatmul.mubr.msk.f32.gmra.mrb[2].mxu1 %vm365_vm0, %v390_v50 }
  0x37   : > { %2099 = vmatmul.mubr.msk.f32.gmra.mrb[6].mxu0 %vm365_vm0, %v2491_v51  ;;  %2039 = vmatprep.mubr.msk.f32.mxu1 %vm365_vm0, %v391_v52 }
  0x38   : > { %2103 = vmatprep.mubr.msk.f32.mxu0 %vm365_vm0, %v389_v47 }
  0x3a   : > { %2040 = vmatmul.mubr.msk.f32.gmra.mrb[4].mxu1 %vm365_vm0, %v392_v53 }
  0x3b   : > { %2104 = vmatmul.mubr.msk.f32.vlgmr.msra.gmra.mrb[0].mxu0 %vm365_vm0, %v390_v50  ;;  %2042 = vmatprep.mubr.msk.f32.mxu1 %vm365_vm0, %v393_v54 }
  0x3c   : > { %2116 = vmatpush3.msra.mxu0 %v1915_v40  ;;  %2106 = vmatprep.mubr.msk.f32.mxu0 %vm365_vm0, %v391_v52 }
  0x3d   : > { %2129 = vmatprep.subr.mxu0 %v1924_v55 }
  0x3e   : > { %2043 = vmatmul.mubr.msk.f32.gmra.mrb[6].mxu1 %vm365_vm0, %v394_v56 }
  0x3f   : > { %2107 = vmatmul.mubr.msk.f32.gmra.mrb[2].mxu0 %vm365_vm0, %v392_v53  ;;  %2047 = vmatprep.mubr.msk.f32.mxu1 %vm365_vm0, %v664_v57 }
  0x40   : > { %2109 = vmatprep.mubr.msk.f32.mxu0 %vm365_vm0, %v393_v54 }
  0x42   : > { %2048 = vmatmul.mubr.msk.f32.vlgmr.msra.gmra.mrb[0].mxu1 %vm365_vm0, %v2432_v36 }
  0x43   : > { %2060 = vmatpush3.msra.mxu1 %v1879_v49  ;;  %2110 = vmatmul.mubr.msk.f32.gmra.mrb[4].mxu0 %vm365_vm0, %v394_v56 }
  0x44   : > { %2050 = vmatprep.mubr.msk.f32.mxu1 %vm365_vm0, %v2446_v6  ;;  %2112 = vmatprep.mubr.msk.f32.mxu0 %vm365_vm0, %v1260_v58 }
  0x45   : > { %2143 = vmatprep.subr.mxu1 %v2272_v1 }
  0x46   : > { %2051 = vmatmul.mubr.msk.f32.gmra.mrb[2].mxu1 %vm365_vm0, %v2450_v38 }
  0x47   : > { %2113 = vmatmul.mubr.msk.f32.gmra.mrb[6].mxu0 %vm365_vm0, %v1261_v59  ;;  %2053 = vmatprep.mubr.msk.f32.mxu1 %vm365_vm0, %v2467_v42 }
  0x48   : > { %2117 = vmatprep.mubr.msk.f32.mxu0 %vm365_vm0, %v2398_v27 }
  0x4a   : > { %2054 = vmatmul.mubr.msk.f32.gmra.mrb[4].mxu1 %vm365_vm0, %v2469_v44 }
  0x4b   : > { %2118 = vmatmul.mubr.msk.f32.vlgmr.msra.gmra.mrb[0].mxu0 %vm365_vm0, %v2413_v31  ;;  %2056 = vmatprep.mubr.msk.f32.mxu1 %vm365_vm0, %v2478_v46 }
  0x4c   : > { %2130 = vmatpush3.msra.mxu0 %v1924_v55  ;;  %2120 = vmatprep.mubr.msk.f32.mxu0 %vm365_vm0, %v2425_v4 }
  0x4e   : > { %2057 = vmatmul.mubr.msk.f32.gmra.mrb[6].mxu1 %vm365_vm0, %v2480_v48 }
  0x4f   : > { %2121 = vmatmul.mubr.msk.f32.gmra.mrb[2].mxu0 %vm365_vm0, %v2448_v7  ;;  %2061 = vmatprep.mubr.msk.f32.mxu1 %vm365_vm0, %v388_v45 }
  0x50   : > { %2123 = vmatprep.mubr.msk.f32.mxu0 %vm365_vm0, %v2454_v39 }
  0x52   : > { %2062 = vmatmul.mubr.msk.f32.vlgmr.msra.gmra.mrb[0].mxu1 %vm365_vm0, %v389_v47 }
  0x53   : > { %2144 = vmatpush3.msra.mxu1 %v2272_v1  ;;  %2124 = vmatmul.mubr.msk.f32.gmra.mrb[4].mxu0 %vm365_vm0, %v2463_v41  ;;  %v1555_v1 = vld [vmem:[#allocation2 + $0x92] sm:$0xff] }
  0x54   : > { %2064 = vmatprep.mubr.msk.f32.mxu1 %vm365_vm0, %v390_v50  ;;  %2126 = vmatprep.mubr.msk.f32.mxu0 %vm365_vm0, %v1407_v60 }
  0x56   : > { %2065 = vmatmul.mubr.msk.f32.gmra.mrb[2].mxu1 %vm365_vm0, %v391_v52 }
  0x57   : > { %2127 = vmatmul.mubr.msk.f32.gmra.mrb[6].mxu0 %vm365_vm0, %v1408_v61  ;;  %2067 = vmatprep.mubr.msk.f32.mxu1 %vm365_vm0, %v392_v53 }
  0x58   : > { %2131 = vmatprep.mubr.msk.f32.mxu0 %vm365_vm0, %v2446_v6 }
  0x5a   : > { %2068 = vmatmul.mubr.msk.f32.gmra.mrb[4].mxu1 %vm365_vm0, %v393_v54 }
  0x5b   : > { %2132 = vmatmul.mubr.msk.f32.vlgmr.msra.gmra.mrb[0].mxu0 %vm365_vm0, %v2450_v38  ;;  %2070 = vmatprep.mubr.msk.f32.mxu1 %vm365_vm0, %v394_v56 }
  0x5c   : > { %2134 = vmatprep.mubr.msk.f32.mxu0 %vm365_vm0, %v2467_v42 }
  0x5e   : > { %2071 = vmatmul.mubr.msk.f32.gmra.mrb[6].mxu1 %vm365_vm0, %v1260_v58 }
  0x5f   : > { %2135 = vmatmul.mubr.msk.f32.gmra.mrb[2].mxu0 %vm365_vm0, %v2469_v44  ;;  %2081 = vmatprep.mubr.msk.f32.mxu1 %vm365_vm0, %v2448_v7 }
  0x60   : > { %2137 = vmatprep.mubr.msk.f32.mxu0 %vm365_vm0, %v2478_v46 }
  0x62   : > { %2082 = vmatmul.mubr.msk.f32.vlgmr.msra.gmra.mrb[4].mxu1 %vm365_vm0, %v2454_v39 }
  0x63   : > { %2138 = vmatmul.mubr.msk.f32.gmra.mrb[4].mxu0 %vm365_vm0, %v2480_v48  ;;  %2084 = vmatprep.mubr.msk.f32.mxu1 %vm365_vm0, %v2463_v41 }
  0x64   : > { %2140 = vmatprep.mubr.msk.f32.mxu0 %vm365_vm0, %v2491_v51 }
  0x66   : > { %2085 = vmatmul.mubr.msk.f32.gmra.mrb[6].mxu1 %vm365_vm0, %v1407_v60 }
  0x67   : > { %2141 = vmatmul.mubr.msk.f32.gmra.mrb[6].mxu0 %vm365_vm0, %v1555_v1 }
 0x125   : > { %v2063_v62 = vpop.f32.mrb[0].mxu1 }
 0x126   : > { %v912_v63 = vpop.f32.mrb[1].mxu1 }
 0x129   : > { %v2066_v0 = vpop.f32.mrb[2].mxu1 }
 0x12a   : > { %v922_v2 = vpop.f32.mrb[3].mxu1 }
 0x12e   : > { %v2133_v3 = vpop.f32.mrb[0].mxu0 }
 0x12f   : > { %v2145_v10 = vadd.f32 %v2133_v3, %v2063_v62  ;;  %v1648_v11 = vpop.f32.mrb[1].mxu0 }
 0x130   : > { %v2146_v12 = vadd.f32 %v1648_v11, %v912_v63 }
 0x131   : > { %1696 = vst.msk [vmem:[%s2576_s26 + $0x8] sm:$0xff] %vm365_vm0, %v2145_v10  ;;  %v1704_v13 = vsel %vm365_vm0, %v2145_v10, 0.0  ;;  %v1725_v14 = vmul.f32 %v2145_v10, %v2145_v10 }
 0x132   : > { %1695 = vst.msk [vmem:[%s2576_s26] sm:$0xff] %vm365_vm0, %v2146_v12  ;;  %v1703_v15 = vsel %vm365_vm0, %v2146_v12, 0.0  ;;  %v1724_v16 = vmul.f32 %v2146_v12, %v2146_v12  ;;  %v2136_v17 = vpop.f32.mrb[2].mxu0 }
 0x133   : > { %v1733_v18 = vsel %vm365_vm0, %v1725_v14, 0.0  ;;  %v1705_v19 = vadd.f32 %v1704_v13, %v1703_v15  ;;  %v2147_v20 = vadd.f32 %v2136_v17, %v2066_v0  ;;  %v1658_v21 = vpop.f32.mrb[3].mxu0 }
 0x134   : > { %v1732_v22 = vsel %vm365_vm0, %v1724_v16, 0.0  ;;  %v2148_v23 = vadd.f32 %v1658_v21, %v922_v2 }
 0x135   : > { %v1734_v24 = vadd.f32 %v1733_v18, %v1732_v22  ;;  %1698 = vst.msk [vmem:[%s2576_s26 + $0x18] sm:$0xff] %vm365_vm0, %v2147_v20  ;;  %v2083_v25 = vpop.f32.mrb[4].mxu1  ;;  %v1727_v8 = vmul.f32 %v2147_v20, %v2147_v20  ;;  %v1708_v32 = vsel %vm365_vm0, %v2147_v20, 0.0 }
 0x136   : > { %1697 = vst.msk [vmem:[%s2576_s26 + $0x10] sm:$0xff] %vm365_vm0, %v2148_v23  ;;  %v1706_v26 = vsel %vm365_vm0, %v2148_v23, 0.0  ;;  %v1726_v27 = vmul.f32 %v2148_v23, %v2148_v23  ;;  %v1079_v9 = vpop.f32.mrb[5].mxu1  ;;  %v2139_v28 = vpop.f32.mrb[4].mxu0 }
 0x137   : > { %v1707_v29 = vadd.f32 %v1706_v26, %v1705_v19  ;;  %v2149_v30 = vadd.f32 %v2139_v28, %v2083_v25  ;;  %v1668_v31 = vpop.f32.mrb[5].mxu0  ;;  %v1737_v37 = vsel %vm365_vm0, %v1727_v8, 0.0 }
 0x138   : > { %v1735_v33 = vsel %vm365_vm0, %v1726_v27, 0.0  ;;  %v2150_v34 = vadd.f32 %v1668_v31, %v1079_v9 }
 0x139   : > { %v1736_v4 = vadd.f32 %v1735_v33, %v1734_v24  ;;  %1700 = vst.msk [vmem:[%s2576_s26 + $0x28] sm:$0xff] %vm365_vm0, %v2149_v30  ;;  %v1709_v35 = vadd.f32 %v1708_v32, %v1707_v29  ;;  %v2086_v36 = vpop.f32.mrb[6].mxu1  ;;  %v1729_v6 = vmul.f32 %v2149_v30, %v2149_v30  ;;  %v1712_v45 = vsel %vm365_vm0, %v2149_v30, 0.0 }
 0x13a   : > { %1699 = vst.msk [vmem:[%s2576_s26 + $0x20] sm:$0xff] %vm365_vm0, %v2150_v34  ;;  %v1710_v7 = vsel %vm365_vm0, %v2150_v34, 0.0  ;;  %v1728_v38 = vmul.f32 %v2150_v34, %v2150_v34  ;;  %v1089_v39 = vpop.f32.mrb[7].mxu1  ;;  %v2142_v40 = vpop.f32.mrb[6].mxu0 }
 0x13b   : > { %v1711_v41 = vadd.f32 %v1710_v7, %v1709_v35  ;;  %v1738_v42 = vadd.f32 %v1737_v37, %v1736_v4  ;;  %v2151_v43 = vadd.f32 %v2142_v40, %v2086_v36  ;;  %v1678_v44 = vpop.f32.mrb[7].mxu0  ;;  %v1741_v50 = vsel %vm365_vm0, %v1729_v6, 0.0 }
 0x13c   : > { %v1739_v46 = vsel %vm365_vm0, %v1728_v38, 0.0  ;;  %v2152_v47 = vadd.f32 %v1678_v44, %v1089_v39 }
 0x13d   : > { %v1740_v48 = vadd.f32 %v1739_v46, %v1738_v42  ;;  %1702 = vst.msk [vmem:[%s2576_s26 + $0x38] sm:$0xff] %vm365_vm0, %v2151_v43  ;;  %v1713_v49 = vadd.f32 %v1712_v45, %v1711_v41  ;;  %v1731_v51 = vmul.f32 %v2151_v43, %v2151_v43  ;;  %v1716_v56 = vsel %vm365_vm0, %v2151_v43, 0.0 }
 0x13e   : > { %1701 = vst.msk [vmem:[%s2576_s26 + $0x30] sm:$0xff] %vm365_vm0, %v2152_v47  ;;  %v1714_v52 = vsel %vm365_vm0, %v2152_v47, 0.0  ;;  %v1730_v53 = vmul.f32 %v2152_v47, %v2152_v47 }
 0x13f   : > { %v1715_v54 = vadd.f32 %v1714_v52, %v1713_v49  ;;  %v1742_v55 = vadd.f32 %v1741_v50, %v1740_v48  ;;  %v1745_v60 = vsel %vm365_vm0, %v1731_v51, 0.0 }
 0x140   : > { %v1743_v57 = vsel %vm365_vm0, %v1730_v53, 0.0 }
 0x141   : > { %v1717_v58 = vadd.f32 %v1716_v56, %v1715_v54  ;;  %v1744_v59 = vadd.f32 %v1743_v57, %v1742_v55 }
 0x143   : > { %v1718_v61 = vrot.slane %v1717_v58, 4  ;;  %v1746_v1 = vadd.f32 %v1745_v60, %v1744_v59 }
 0x145   : > { %v1719_v62 = vadd.f32 %v1718_v61, %v1717_v58  ;;  %v1747_v63 = vrot.slane %v1746_v1, 4 }
 0x147   : > { %v1720_v0 = vrot.slane %v1719_v62, 2  ;;  %v1748_v2 = vadd.f32 %v1747_v63, %v1746_v1 }
 0x149   : > { %v1721_v3 = vadd.f32 %v1720_v0, %v1719_v62  ;;  %v1749_v10 = vrot.slane %v1748_v2, 2 }
 0x14b   : > { %v1722_v11 = vrot.slane %v1721_v3, 1  ;;  %v1750_v12 = vadd.f32 %v1749_v10, %v1748_v2 }
 0x14d   : > { %v1751_v13 = vrot.slane %v1750_v12, 1  ;;  %v1723_v14 = vadd.f32 %v1722_v11, %v1721_v3 }
 0x14f   : > { %v1752_v15 = vadd.f32 %v1751_v13, %v1750_v12 }
 0x151   : > { %v1754_v16 = vsel %vm1753_vm4, %v1723_v14, %v1752_v15 }
 0x152   : > { %1755 = vst.msk [vmem:[%s235_s30] sm:$0x3] %vm367_vm1, %v1754_v16 }
 0x153 PF: > { %s16_s18 = sadd.s32 1, %s2225_s18  }
 0x154   : > { %p13_p4 = scmp.ge.s32.totalorder %s16_s18, 4  }
 0x156   :  { %15 = sbr.rel (!%p13_p4) target bundleno = 1 (0x1), region = 88 }

// kernel: network_block_forward.9
= control target key start
LH: loop header
LB: loop body
LE: loop exit
PB: predicated region body
PF: predicated region fallthrough
CT: control target
= control target key end

     0   :  { %12 = vsyncpa [#allocation4], 0  ;;  %s2906_s0 = inlined_call_operand.vmem [shape: f32[2,10,10,8], index: 0, kind: input, shape index: {}]   ;;  %s2907_s1 = inlined_call_operand.vmem [shape: f32[1,8], index: 1, kind: input, shape index: {}]   ;;  %s2908_s2 = inlined_call_operand.vmem [shape: f32[1,8], index: 2, kind: input, shape index: {}]   ;;  %s2909_s3 = inlined_call_operand.vmem [shape: f32[9,8,8], index: 3, kind: input, shape index: {}]   ;;  %s2910_s4 = inlined_call_operand.vmem [shape: f32[2,8,8,8], index: 4, kind: input, shape index: {}]   ;;  %s2911_s5 = inlined_call_operand.vmem [shape: f32[2,64,8], index: 5, kind: output, shape index: {0}]   ;;  %s2912_s6 = inlined_call_operand.hbm [shape: f32[2,2,8], index: 6, kind: output, shape index: {1}]  }
   0x1   :  { %14 = vsyncpa [#allocation4 + $0x1], 0  ;;  %s2450_s21 = smov 0   ;;  %s2452_s22 = smov 0  }
   0x2   :  { %s2454_s23 = smov 0   ;;  %s2456_s24 = smov 0  }
   0x3 LB: > { %s2471_s25 = sadd.s32 4294967295, %s2411_s24   ;;  %s1937_s26 = sadd.s32 4294967294, %s2411_s24   ;;  %s2411_s24 = sphi %s2456_s24, %s2918_s24   ;;  %s2407_s23 = sphi %s2454_s23, %s2917_s23   ;;  %s2403_s22 = sphi %s2452_s22, %s2916_s22   ;;  %s2399_s21 = sphi %s2450_s21, %s2915_s21  }
   0x4   : > { %s2475_s27 = sadd.s32 1, %s2411_s24   ;;  %s168_s28 = sadd.s32 1, %s2407_s23 }
   0x5   : > { %s165_s29 = ssub.s32 %s2411_s24, %s2475_s27  ;;  %p178_p0 = scmp.ne.s32.totalorder %s2407_s23, %s2403_s22 }
   0x6   : > { %p166_p1 = scmp.eq.s32.totalorder %s165_s29, 0  ;;  %p179_p2 = scmp.eq.s32.totalorder %s2471_s25, 1 }
   0x7   : > { %p184_p3 = scmp.ne.s32.totalorder %s2403_s22, %s2399_s21  ;;  %p185_p4 = scmp.eq.s32.totalorder %s1937_s26, 1 }
   0x8   : > { %s2486_s30 = scalar_select %p166_p1, %s2407_s23, %s168_s28  }
   0x9   : > { %p2488_p5 = por %p179_p2, %p178_p0  ;;  %p2492_p6 = por %p185_p4, %p184_p3 }
   0xa   : > { %p1940_p7 = scmp.ge.s32.totalorder %s2411_s24, 1  ;;  %p228_p8 = scmp.lt.s32.totalorder %s2411_s24, 3 }
   0xc   : > { %p229_p9 = pnand %p1940_p7, %p228_p8 }
   0xd   : > { %v1949_v0 = vld [vmem:[%s2909_s3 + $0x8] sm:$0xff] (!%p229_p9)  ;;  %v2504_v1 = vld [vmem:[%s2909_s3 + $0x20] sm:$0xff] (!%p229_p9)  ;;  %vm412_vm0 = vcmask (!%p229_p9), 64512   ;;  %vm414_vm1 = vcmask (!%p229_p9), 58368   ;;  %p268_p10 = scmp.lt.s32.totalorder (!%p229_p9), %s2471_s25, 1  ;;  %v303_v2 = vlaneseq (!%p229_p9)  ;;  %v2413_v3 = vmov (!%p229_p9), 0.0  }
   0xe   : > { %232 = sbr.rel (%p229_p9) target bundleno = 363 (0x16b), region = 40  ;;  %2116 = vmatprep.subr.mxu1 (!%p229_p9), %v1949_v0  ;;  %2172 = vmatprep.subr.mxu0 (!%p229_p9), %v2504_v1  ;;  %413 = vst.msk [vmem:[#allocation2] sm:$0xff] (!%p229_p9), %vm412_vm0, %v2413_v3  ;;  %432 = vst.msk [vmem:[#allocation2 + $0x90] sm:$0xff] (!%p229_p9), %vm412_vm0, %v2413_v3  ;;  %v2515_v4 = vld [vmem:[%s2909_s3] sm:$0xff] (!%p229_p9)  ;;  %v2526_v6 = vld [vmem:[%s2909_s3 + $0x28] sm:$0xff] (!%p229_p9)  ;;  %s265_s13 = sand.u32 (!%p229_p9), 1, %s2403_s22  }
   0xf   : > { %415 = vst.msk [vmem:[#allocation2 + $0x8] sm:$0x3] (!%p229_p9), %vm414_vm1, %v2413_v3  ;;  %433 = vst.msk [vmem:[#allocation2 + $0x98] sm:$0x3] (!%p229_p9), %vm414_vm1, %v2413_v3  ;;  %2117 = vmatpush3.msra.mxu1 (!%p229_p9), %v1949_v0  ;;  %2173 = vmatpush3.msra.mxu0 (!%p229_p9), %v2504_v1  ;;  %v2521_v5 = vshrl.u32 (!%p229_p9), %v303_v2, 7  ;;  %s1941_s14 = sshll.u32 (!%p229_p9), %s265_s13, 1 }
  0x10   : > { %2130 = vmatprep.subr.mxu1 (!%p229_p9), %v2515_v4  ;;  %2186 = vmatprep.subr.mxu0 (!%p229_p9), %v2526_v6  ;;  %v2537_v8 = vld [vmem:[%s2907_s1] ss:$0 sm:$0xff] (!%p229_p9)  ;;  %s2030_s16 = sshll.u32 (!%p229_p9), %s2471_s25, 5  ;;  %s267_s17 = scalar_lea.vmem (!%p229_p9), [#allocation3], %s1941_s14 }
  0x11   : > { %v2532_v7 = vadd.s32 (!%p229_p9), 8, %v2521_v5  ;;  %v2547_v9 = vld [vmem:[%s2908_s2] ss:$0 sm:$0xff] (!%p229_p9)  ;;  %vm306_vm2 = vcmp.ge.s32.totalorder (!%p229_p9), %v2521_v5, 1  ;;  %vm1816_vm4 = vcmp.eq.s32.totalorder (!%p229_p9), %v2521_v5, 0  ;;  %s2863_s26 = scalar_lea.hbm (!%p229_p9), %s2912_s6, %s2030_s16 }
  0x13   : > { %vm313_vm3 = vcmp.le.s32.totalorder (!%p229_p9), %v2532_v7, 8 }
  0x15   : > { %s2519_s15 = scalar_select %p268_p10, %s2471_s25, 1 }
  0x16   : > { %v443_v13 = vld [vmem:[#allocation2 + $0x1] sm:$0xff]  ;;  %s1825_s25 = scalar_lea.sflag [#allocation4], %s265_s13 }
  0x17   : > { %s2308_s18 = smul.u32 160, %s2519_s15  ;;  %2118 = vmatprep.mubr.msk.f32.mxu1 %vm412_vm0, %v443_v13  ;;  %s2033_s28 = sshll.u32 %s2519_s15, 6 }
  0x18   : > { %s2810_s10 = scalar_lea.vmem %s2910_s4, %s2033_s28  ;;  %s2817_s15 = scalar_lea.vmem %s2911_s5, %s2033_s28 }
  0x19   : > { %s2542_s29 = scalar_lea.vmem %s2906_s0, %s2308_s18  ;;  %s1841_s18 = sshll.u32 %s267_s17, 4  ;;  %s2865_s18 = int_to_ptr.vmem [resolvable:$true] %s1841_s18 }
  0x1a   : > { %v285_v10 = vld [vmem:[%s2542_s29 + $0x10] sm:$0xff]  ;;  %v286_v11 = vld [vmem:[%s2542_s29 + $0x18] sm:$0x3]  ;;  %v287_v12 = vld [vmem:[%s2542_s29 + $0x20] sm:$0xff]  ;;  %s2349_s28 = scalar_lea.vmem %s2865_s18, 32 }
  0x1b   : > { %v327_v14 = vmul.f32 %v2537_v8, %v285_v10  ;;  %v328_v15 = vmul.f32 %v2537_v8, %v286_v11  ;;  %v288_v16 = vld [vmem:[%s2542_s29 + $0x28] sm:$0x3]  ;;  %v329_v17 = vmul.f32 %v2537_v8, %v287_v12  ;;  %v289_v18 = vld [vmem:[%s2542_s29 + $0x30] sm:$0xff]  ;;  %v290_v20 = vld [vmem:[%s2542_s29 + $0x38] sm:$0x3]  ;;  %p2350_p11 = scmp.ne.s32.totalorder %s2865_s18, %s2349_s28 }
  0x1c   : > { %v330_v19 = vmul.f32 %v2537_v8, %v288_v16  ;;  %v331_v21 = vmul.f32 %v2537_v8, %v289_v18  ;;  %v291_v22 = vld [vmem:[%s2542_s29 + $0x40] sm:$0xff]  ;;  %v292_v23 = vld [vmem:[%s2542_s29 + $0x48] sm:$0x3]  ;;  %v332_v27 = vmul.f32 %v2537_v8, %v290_v20  ;;  %v294_v36 = vld [vmem:[%s2542_s29 + $0x58] sm:$0x3] }
  0x1d   : > { %v354_v24 = vadd.f32 %v2547_v9, %v327_v14  ;;  %v355_v25 = vadd.f32 %v2547_v9, %v328_v15  ;;  %v356_v26 = vadd.f32 %v2547_v9, %v329_v17  ;;  %v333_v30 = vmul.f32 %v2537_v8, %v291_v22  ;;  %v293_v41 = vld [vmem:[%s2542_s29 + $0x50] sm:$0xff]  ;;  %v295_v42 = vld [vmem:[%s2542_s29 + $0x60] sm:$0xff]  ;;  %v296_v43 = vld [vmem:[%s2542_s29 + $0x68] sm:$0x3]  ;;  %p2351_p12 = pnand %p2350_p11, %p2488_p5 }
  0x1e   : > { %v357_v28 = vadd.f32 %v2547_v9, %v330_v19  ;;  %v358_v29 = vadd.f32 %v2547_v9, %v331_v21  ;;  %v334_v31 = vmul.f32 %v2537_v8, %v292_v23  ;;  %v359_v35 = vadd.f32 %v2547_v9, %v332_v27  ;;  %v297_v48 = vld [vmem:[%s2542_s29 + $0x70] sm:$0xff]  ;;  %v298_v53 = vld [vmem:[%s2542_s29 + $0x78] sm:$0x3]  ;;  %v299_v58 = vld [vmem:[%s2542_s29 + $0x80] sm:$0xff] }
  0x1f   : > { %v374_v32 = vmax.f32 %v354_v24, 0.0  ;;  %v375_v33 = vmax.f32 %v355_v25, 0.0  ;;  %v376_v34 = vmax.f32 %v356_v26, 0.0  ;;  %v360_v39 = vadd.f32 %v2547_v9, %v333_v30  ;;  %v300_v59 = vld [vmem:[%s2542_s29 + $0x88] sm:$0x3]  ;;  %p2352_p13 = pneg %p2351_p12  ;;  %s2414_s29 = smov [#allocation3]  }
  0x20   : > { %v377_v37 = vmax.f32 %v357_v28, 0.0  ;;  %v378_v38 = vmax.f32 %v358_v29, 0.0  ;;  %v361_v40 = vadd.f32 %v2547_v9, %v334_v31  ;;  %v379_v47 = vmax.f32 %v359_v35, 0.0  ;;  %s2353_s9 = sshll.u32 %s2414_s29, 4  ;;  %s2354_s9 = int_to_ptr.vmem [resolvable:$false] %s2353_s9 }
  0x21   : > { %v394_v44 = vsel %vm306_vm2, %v374_v32, 0.0  ;;  %v395_v45 = vsel %vm313_vm3, %v375_v33, 0.0  ;;  %v396_v46 = vsel %vm306_vm2, %v376_v34, 0.0  ;;  %v380_v51 = vmax.f32 %v360_v39, 0.0  ;;  %v1966_v33 = vld [vmem:[%s2909_s3 + $0x10] sm:$0xff]  ;;  %p2356_p0 = scmp.lt.s32.totalorder %s2865_s18, %s2354_s9 }
  0x22   : > { %416 = vst.msk [vmem:[#allocation2 + $0x10] sm:$0xff] %vm412_vm0, %v394_v44  ;;  %v397_v49 = vsel %vm313_vm3, %v377_v37, 0.0  ;;  %418 = vst.msk [vmem:[#allocation2 + $0x20] sm:$0xff] %vm412_vm0, %v396_v46  ;;  %v398_v50 = vsel %vm306_vm2, %v378_v38, 0.0  ;;  %v381_v52 = vmax.f32 %v361_v40, 0.0  ;;  %v399_v54 = vsel %vm313_vm3, %v379_v47, 0.0 }
  0x23   : > { %417 = vst.msk [vmem:[#allocation2 + $0x18] sm:$0x3] %vm414_vm1, %v395_v45  ;;  %419 = vst.msk [vmem:[#allocation2 + $0x28] sm:$0x3] %vm414_vm1, %v397_v49  ;;  %v335_v55 = vmul.f32 %v2537_v8, %v293_v41  ;;  %v336_v56 = vmul.f32 %v2537_v8, %v294_v36  ;;  %v337_v57 = vmul.f32 %v2537_v8, %v295_v42  ;;  %v400_v60 = vsel %vm306_vm2, %v380_v51, 0.0  ;;  %v2011_v40 = vld [vmem:[%s2909_s3 + $0x38] sm:$0xff] }
  0x24   : > { %420 = vst.msk [vmem:[#allocation2 + $0x30] sm:$0xff] %vm412_vm0, %v398_v50  ;;  %v401_v61 = vsel %vm313_vm3, %v381_v52, 0.0  ;;  %v338_v62 = vmul.f32 %v2537_v8, %v296_v43  ;;  %v339_v63 = vmul.f32 %v2537_v8, %v297_v48  ;;  %422 = vst.msk [vmem:[#allocation2 + $0x40] sm:$0xff] %vm412_vm0, %v400_v60  ;;  %v340_v10 = vmul.f32 %v2537_v8, %v298_v53  ;;  %v434_v43 = vld [vmem:[#allocation2] sm:$0xff]  ;;  %v1975_v49 = vld [vmem:[%s2909_s3 + $0x18] sm:$0xff] }
  0x25   : > { %421 = vst.msk [vmem:[#allocation2 + $0x38] sm:$0x3] %vm414_vm1, %v399_v54  ;;  %423 = vst.msk [vmem:[#allocation2 + $0x48] sm:$0x3] %vm414_vm1, %v401_v61  ;;  %v362_v0 = vadd.f32 %v2547_v9, %v335_v55  ;;  %v363_v2 = vadd.f32 %v2547_v9, %v336_v56  ;;  %v364_v3 = vadd.f32 %v2547_v9, %v337_v57  ;;  %v2020_v55 = vld [vmem:[%s2909_s3 + $0x40] sm:$0xff]  ;;  %v1455_v61 = vld [vmem:[#allocation2 + $0x91] sm:$0xff] }
  0x26   : > { %v365_v11 = vadd.f32 %v2547_v9, %v338_v62  ;;  %v366_v12 = vadd.f32 %v2547_v9, %v339_v63  ;;  %v341_v13 = vmul.f32 %v2537_v8, %v299_v58  ;;  %v342_v14 = vmul.f32 %v2537_v8, %v300_v59  ;;  %v711_v57 = vld [vmem:[#allocation2 + $0x2] sm:$0xff]  ;;  %v1308_v59 = vld [vmem:[#allocation2 + $0x90] sm:$0xff] }
  0x27   : > { %v382_v15 = vmax.f32 %v362_v0, 0.0  ;;  %v383_v16 = vmax.f32 %v363_v2, 0.0  ;;  %v384_v17 = vmax.f32 %v364_v3, 0.0  ;;  %v367_v18 = vadd.f32 %v2547_v9, %v340_v10  ;;  %v1743_v10 = vld [vmem:[%s2810_s10 + $0x8] sm:$0xff] }
  0x28   : > { %v385_v19 = vmax.f32 %v365_v11, 0.0  ;;  %v386_v20 = vmax.f32 %v366_v12, 0.0  ;;  %v368_v21 = vadd.f32 %v2547_v9, %v341_v13  ;;  %v369_v22 = vadd.f32 %v2547_v9, %v342_v14  ;;  %v2002_v9 = vld [vmem:[%s2909_s3 + $0x30] sm:$0xff]  ;;  %v1742_v13 = vld [vmem:[%s2810_s10] sm:$0xff] }
  0x29   : > { %v402_v24 = vsel %vm306_vm2, %v382_v15, 0.0  ;;  %v403_v25 = vsel %vm313_vm3, %v383_v16, 0.0  ;;  %v404_v8 = vsel %vm306_vm2, %v384_v17, 0.0  ;;  %v387_v26 = vmax.f32 %v367_v18, 0.0  ;;  %v435_v45 = vld [vmem:[#allocation2 + $0x10] sm:$0xff]  ;;  %v436_v47 = vld [vmem:[#allocation2 + $0x20] sm:$0xff] }
  0x2a   : > { %v444_v23 = vld [vmem:[#allocation2 + $0x11] sm:$0xff]  ;;  %v2632_v27 = vld [vmem:[#allocation2 + $0x21] sm:$0xff]  ;;  %424 = vst.msk [vmem:[#allocation2 + $0x50] sm:$0xff] %vm412_vm0, %v402_v24  ;;  %v405_v28 = vsel %vm313_vm3, %v385_v19, 0.0  ;;  %426 = vst.msk [vmem:[#allocation2 + $0x60] sm:$0xff] %vm412_vm0, %v404_v8  ;;  %v406_v29 = vsel %vm306_vm2, %v386_v20, 0.0 }
  0x2b   : > { %2119 = vmatmul.mubr.msk.f32.vlgmr.msra.gmra.mrb[0].mxu1 %vm412_vm0, %v444_v23  ;;  %2174 = vmatprep.mubr.msk.f32.mxu0 %vm412_vm0, %v444_v23  ;;  %425 = vst.msk [vmem:[#allocation2 + $0x58] sm:$0x3] %vm414_vm1, %v403_v25  ;;  %v388_v30 = vmax.f32 %v368_v21, 0.0  ;;  %427 = vst.msk [vmem:[#allocation2 + $0x68] sm:$0x3] %vm414_vm1, %v405_v28  ;;  %v407_v32 = vsel %vm313_vm3, %v387_v26, 0.0 }
  0x2c   : > { %2131 = vmatpush3.msra.mxu1 %v2515_v4  ;;  %2175 = vmatmul.mubr.msk.f32.vlgmr.msra.gmra.mrb[0].mxu0 %vm412_vm0, %v2632_v27  ;;  %v2647_v31 = vld [vmem:[#allocation2 + $0x31] sm:$0xff]  ;;  %428 = vst.msk [vmem:[#allocation2 + $0x70] sm:$0xff] %vm412_vm0, %v406_v29  ;;  %v389_v34 = vmax.f32 %v369_v22, 0.0  ;;  %v2659_v4 = vld [vmem:[#allocation2 + $0x41] sm:$0xff] }
  0x2d   : > { %2187 = vmatpush3.msra.mxu0 %v2526_v6  ;;  %2121 = vmatprep.mubr.msk.f32.mxu1 %vm412_vm0, %v2632_v27  ;;  %429 = vst.msk [vmem:[#allocation2 + $0x78] sm:$0x3] %vm414_vm1, %v407_v32  ;;  %v408_v35 = vsel %vm306_vm2, %v388_v30, 0.0  ;;  %v2666_v36 = vld [vmem:[#allocation2 + $0x12] sm:$0xff]  ;;  %v2680_v6 = vld [vmem:[#allocation2 + $0x22] sm:$0xff] }
  0x2e   : > { %2177 = vmatprep.mubr.msk.f32.mxu0 %vm412_vm0, %v2647_v31  ;;  %2200 = vmatprep.subr.mxu0 %v2002_v9  ;;  %v409_v37 = vsel %vm313_vm3, %v389_v34, 0.0  ;;  %430 = vst.msk [vmem:[#allocation2 + $0x80] sm:$0xff] %vm412_vm0, %v408_v35  ;;  %v2684_v38 = vld [vmem:[#allocation2 + $0x32] sm:$0xff]  ;;  %v2701_v42 = vld [vmem:[#allocation2 + $0x42] sm:$0xff] }
  0x2f   : > { %2122 = vmatmul.mubr.msk.f32.gmra.mrb[2].mxu1 %vm412_vm0, %v2647_v31  ;;  %2144 = vmatprep.subr.mxu1 %v1966_v33  ;;  %431 = vst.msk [vmem:[#allocation2 + $0x88] sm:$0x3] %vm414_vm1, %v409_v37  ;;  %v437_v50 = vld [vmem:[#allocation2 + $0x30] sm:$0xff]  ;;  %v438_v52 = vld [vmem:[#allocation2 + $0x40] sm:$0xff]  ;;  %v1745_v18 = vld [vmem:[%s2810_s10 + $0x18] sm:$0xff] }
  0x30   : > { %2178 = vmatmul.mubr.msk.f32.gmra.mrb[2].mxu0 %vm412_vm0, %v2659_v4  ;;  %2124 = vmatprep.mubr.msk.f32.mxu1 %vm412_vm0, %v2659_v4  ;;  %v1744_v23 = vld [vmem:[%s2810_s10 + $0x10] sm:$0xff]  ;;  %v1746_v37 = vld [vmem:[%s2810_s10 + $0x20] sm:$0xff] }
  0x31   : > { %2188 = vmatprep.mubr.msk.f32.mxu0 %vm412_vm0, %v2666_v36  ;;  %v439_v53 = vld [vmem:[#allocation2 + $0x50] sm:$0xff]  ;;  %v440_v54 = vld [vmem:[#allocation2 + $0x60] sm:$0xff] }
  0x32   : > { %v2682_v7 = vld [vmem:[#allocation2 + $0x51] sm:$0xff]  ;;  %v2688_v39 = vld [vmem:[#allocation2 + $0x61] sm:$0xff] }
  0x33   : > { %2125 = vmatmul.mubr.msk.f32.gmra.mrb[4].mxu1 %vm412_vm0, %v2682_v7  ;;  %v2703_v44 = vld [vmem:[#allocation2 + $0x52] sm:$0xff]  ;;  %v2712_v46 = vld [vmem:[#allocation2 + $0x62] sm:$0xff] }
  0x34   : > { %2189 = vmatmul.mubr.msk.f32.vlgmr.msra.gmra.mrb[0].mxu0 %vm412_vm0, %v2680_v6  ;;  %2127 = vmatprep.mubr.msk.f32.mxu1 %vm412_vm0, %v2688_v39  ;;  %v2697_v41 = vld [vmem:[#allocation2 + $0x71] sm:$0xff] }
  0x35   : > { %2201 = vmatpush3.msra.mxu0 %v2002_v9  ;;  %2191 = vmatprep.mubr.msk.f32.mxu0 %vm412_vm0, %v2684_v38  ;;  %v2714_v48 = vld [vmem:[#allocation2 + $0x72] sm:$0xff]  ;;  %v1307_v58 = vld [vmem:[#allocation2 + $0x80] sm:$0xff] }
  0x36   : > { %2214 = vmatprep.subr.mxu0 %v2011_v40  ;;  %v2725_v51 = vld [vmem:[#allocation2 + $0x82] sm:$0xff]  ;;  %v441_v56 = vld [vmem:[#allocation2 + $0x70] sm:$0xff] }
  0x37   : > { %2128 = vmatmul.mubr.msk.f32.gmra.mrb[6].mxu1 %vm412_vm0, %v2697_v41  ;;  %v1454_v60 = vld [vmem:[#allocation2 + $0x81] sm:$0xff] }
  0x38   : > { %2192 = vmatmul.mubr.msk.f32.gmra.mrb[2].mxu0 %vm412_vm0, %v2701_v42  ;;  %2132 = vmatprep.mubr.msk.f32.mxu1 %vm412_vm0, %v434_v43 }
  0x39   : > { %2194 = vmatprep.mubr.msk.f32.mxu0 %vm412_vm0, %v2703_v44 }
  0x3b   : > { %2133 = vmatmul.mubr.msk.f32.vlgmr.msra.gmra.mrb[0].mxu1 %vm412_vm0, %v435_v45 }
  0x3c   : > { %2145 = vmatpush3.msra.mxu1 %v1966_v33  ;;  %2195 = vmatmul.mubr.msk.f32.gmra.mrb[4].mxu0 %vm412_vm0, %v2712_v46  ;;  %v1747_v33 = vld [vmem:[%s2810_s10 + $0x28] sm:$0xff] }
  0x3d   : > { %2135 = vmatprep.mubr.msk.f32.mxu1 %vm412_vm0, %v436_v47  ;;  %2197 = vmatprep.mubr.msk.f32.mxu0 %vm412_vm0, %v2714_v48 }
  0x3e   : > { %2158 = vmatprep.subr.mxu1 %v1975_v49 }
  0x3f   : > { %2136 = vmatmul.mubr.msk.f32.gmra.mrb[2].mxu1 %vm412_vm0, %v437_v50 }
  0x40   : > { %2198 = vmatmul.mubr.msk.f32.gmra.mrb[6].mxu0 %vm412_vm0, %v2725_v51  ;;  %2138 = vmatprep.mubr.msk.f32.mxu1 %vm412_vm0, %v438_v52 }
  0x41   : > { %2202 = vmatprep.mubr.msk.f32.mxu0 %vm412_vm0, %v436_v47 }
  0x43   : > { %2139 = vmatmul.mubr.msk.f32.gmra.mrb[4].mxu1 %vm412_vm0, %v439_v53 }
  0x44   : > { %2203 = vmatmul.mubr.msk.f32.vlgmr.msra.gmra.mrb[0].mxu0 %vm412_vm0, %v437_v50  ;;  %2141 = vmatprep.mubr.msk.f32.mxu1 %vm412_vm0, %v440_v54 }
  0x45   : > { %2215 = vmatpush3.msra.mxu0 %v2011_v40  ;;  %2205 = vmatprep.mubr.msk.f32.mxu0 %vm412_vm0, %v438_v52 }
  0x46   : > { %2228 = vmatprep.subr.mxu0 %v2020_v55 }
  0x47   : > { %2142 = vmatmul.mubr.msk.f32.gmra.mrb[6].mxu1 %vm412_vm0, %v441_v56 }
  0x48   : > { %2206 = vmatmul.mubr.msk.f32.gmra.mrb[2].mxu0 %vm412_vm0, %v439_v53  ;;  %2146 = vmatprep.mubr.msk.f32.mxu1 %vm412_vm0, %v711_v57 }
  0x49   : > { %2208 = vmatprep.mubr.msk.f32.mxu0 %vm412_vm0, %v440_v54 }
  0x4b   : > { %2147 = vmatmul.mubr.msk.f32.vlgmr.msra.gmra.mrb[0].mxu1 %vm412_vm0, %v2666_v36 }
  0x4c   : > { %2159 = vmatpush3.msra.mxu1 %v1975_v49  ;;  %2209 = vmatmul.mubr.msk.f32.gmra.mrb[4].mxu0 %vm412_vm0, %v441_v56 }
  0x4d   : > { %2149 = vmatprep.mubr.msk.f32.mxu1 %vm412_vm0, %v2680_v6  ;;  %2211 = vmatprep.mubr.msk.f32.mxu0 %vm412_vm0, %v1307_v58 }
  0x4e   : > { %2242 = vmatprep.subr.mxu1 %v2504_v1 }
  0x4f   : > { %2150 = vmatmul.mubr.msk.f32.gmra.mrb[2].mxu1 %vm412_vm0, %v2684_v38 }
  0x50   : > { %2212 = vmatmul.mubr.msk.f32.gmra.mrb[6].mxu0 %vm412_vm0, %v1308_v59  ;;  %2152 = vmatprep.mubr.msk.f32.mxu1 %vm412_vm0, %v2701_v42 }
  0x51   : > { %2216 = vmatprep.mubr.msk.f32.mxu0 %vm412_vm0, %v2632_v27 }
  0x53   : > { %2153 = vmatmul.mubr.msk.f32.gmra.mrb[4].mxu1 %vm412_vm0, %v2703_v44 }
  0x54   : > { %2217 = vmatmul.mubr.msk.f32.vlgmr.msra.gmra.mrb[0].mxu0 %vm412_vm0, %v2647_v31  ;;  %2155 = vmatprep.mubr.msk.f32.mxu1 %vm412_vm0, %v2712_v46 }
  0x55   : > { %2229 = vmatpush3.msra.mxu0 %v2020_v55  ;;  %2219 = vmatprep.mubr.msk.f32.mxu0 %vm412_vm0, %v2659_v4 }
  0x57   : > { %2156 = vmatmul.mubr.msk.f32.gmra.mrb[6].mxu1 %vm412_vm0, %v2714_v48 }
  0x58   : > { %2220 = vmatmul.mubr.msk.f32.gmra.mrb[2].mxu0 %vm412_vm0, %v2682_v7  ;;  %2160 = vmatprep.mubr.msk.f32.mxu1 %vm412_vm0, %v435_v45 }
  0x59   : > { %2222 = vmatprep.mubr.msk.f32.mxu0 %vm412_vm0, %v2688_v39 }
  0x5b   : > { %2161 = vmatmul.mubr.msk.f32.vlgmr.msra.gmra.mrb[0].mxu1 %vm412_vm0, %v436_v47 }
  0x5c   : > { %2243 = vmatpush3.msra.mxu1 %v2504_v1  ;;  %2223 = vmatmul.mubr.msk.f32.gmra.mrb[4].mxu0 %vm412_vm0, %v2697_v41  ;;  %v1602_v1 = vld [vmem:[#allocation2 + $0x92] sm:$0xff] }
  0x5d   : > { %2163 = vmatprep.mubr.msk.f32.mxu1 %vm412_vm0, %v437_v50  ;;  %2225 = vmatprep.mubr.msk.f32.mxu0 %vm412_vm0, %v1454_v60 }
  0x5f   : > { %2164 = vmatmul.mubr.msk.f32.gmra.mrb[2].mxu1 %vm412_vm0, %v438_v52 }
  0x60   : > { %2226 = vmatmul.mubr.msk.f32.gmra.mrb[6].mxu0 %vm412_vm0, %v1455_v61  ;;  %2166 = vmatprep.mubr.msk.f32.mxu1 %vm412_vm0, %v439_v53  ;;  %v1748_v53 = vld [vmem:[%s2810_s10 + $0x30] sm:$0xff] }
  0x61   : > { %2230 = vmatprep.mubr.msk.f32.mxu0 %vm412_vm0, %v2680_v6 }
  0x63   : > { %2167 = vmatmul.mubr.msk.f32.gmra.mrb[4].mxu1 %vm412_vm0, %v440_v54 }
  0x64   : > { %2231 = vmatmul.mubr.msk.f32.vlgmr.msra.gmra.mrb[0].mxu0 %vm412_vm0, %v2684_v38  ;;  %2169 = vmatprep.mubr.msk.f32.mxu1 %vm412_vm0, %v441_v56 }
  0x65   : > { %2233 = vmatprep.mubr.msk.f32.mxu0 %vm412_vm0, %v2701_v42 }
  0x67   : > { %2170 = vmatmul.mubr.msk.f32.gmra.mrb[6].mxu1 %vm412_vm0, %v1307_v58 }
  0x68   : > { %2234 = vmatmul.mubr.msk.f32.gmra.mrb[2].mxu0 %vm412_vm0, %v2703_v44  ;;  %2180 = vmatprep.mubr.msk.f32.mxu1 %vm412_vm0, %v2682_v7 }
  0x69   : > { %2236 = vmatprep.mubr.msk.f32.mxu0 %vm412_vm0, %v2712_v46 }
  0x6b   : > { %2181 = vmatmul.mubr.msk.f32.vlgmr.msra.gmra.mrb[4].mxu1 %vm412_vm0, %v2688_v39 }
  0x6c   : > { %2237 = vmatmul.mubr.msk.f32.gmra.mrb[4].mxu0 %vm412_vm0, %v2714_v48  ;;  %2183 = vmatprep.mubr.msk.f32.mxu1 %vm412_vm0, %v2697_v41 }
  0x6d   : > { %2239 = vmatprep.mubr.msk.f32.mxu0 %vm412_vm0, %v2725_v51  ;;  %v1749_v51 = vld [vmem:[%s2810_s10 + $0x38] sm:$0xff]  ;;  %s2355_s10 = scalar_lea.vmem %s2354_s9, 64 }
  0x6e   : > { %p2357_p1 = scmp.lt.s32.totalorder %s2355_s10, %s2349_s28 }
  0x6f   : > { %2184 = vmatmul.mubr.msk.f32.gmra.mrb[6].mxu1 %vm412_vm0, %v1454_v60 }
  0x70   : > { %2240 = vmatmul.mubr.msk.f32.gmra.mrb[6].mxu0 %vm412_vm0, %v1602_v1  ;;  %p2358_p2 = por %p2357_p1, %p2356_p0 }
  0x72   : > { %p2359_p3 = pnand %p2358_p2, %p2352_p13 }
 0x12e   : > { %v2162_v62 = vpop.f32.mrb[0].mxu1 }
 0x12f   : > { %v959_v63 = vpop.f32.mrb[1].mxu1 }
 0x132   : > { %v2165_v0 = vpop.f32.mrb[2].mxu1 }
 0x133   : > { %v969_v2 = vpop.f32.mrb[3].mxu1 }
 0x137   : > { %v2232_v3 = vpop.f32.mrb[0].mxu0 }
 0x138   : > { %v2244_v11 = vadd.f32 %v2232_v3, %v2162_v62  ;;  %v1695_v12 = vpop.f32.mrb[1].mxu0 }
 0x139   : > { %v2245_v14 = vadd.f32 %v1695_v12, %v959_v63 }
 0x13a   : > { %v1751_v15 = vadd.f32 %v2244_v11, %v1743_v10 }
 0x13b   : > { %v1750_v16 = vadd.f32 %v2245_v14, %v1742_v13  ;;  %v2235_v17 = vpop.f32.mrb[2].mxu0 }
 0x13c   : > { %1759 = vst.msk [vmem:[%s2817_s15 + $0x8] sm:$0xff] %vm412_vm0, %v1751_v15  ;;  %v1767_v19 = vsel %vm412_vm0, %v1751_v15, 0.0  ;;  %v1788_v20 = vmul.f32 %v1751_v15, %v1751_v15  ;;  %v2246_v21 = vadd.f32 %v2235_v17, %v2165_v0  ;;  %v1705_v22 = vpop.f32.mrb[3].mxu0 }
 0x13d   : > { %1758 = vst.msk [vmem:[%s2817_s15] sm:$0xff] %vm412_vm0, %v1750_v16  ;;  %v1766_v24 = vsel %vm412_vm0, %v1750_v16, 0.0  ;;  %v1787_v25 = vmul.f32 %v1750_v16, %v1750_v16  ;;  %v2247_v8 = vadd.f32 %v1705_v22, %v969_v2 }
 0x13e   : > { %v1796_v26 = vsel %vm412_vm0, %v1788_v20, 0.0  ;;  %v1768_v27 = vadd.f32 %v1767_v19, %v1766_v24  ;;  %v1753_v9 = vadd.f32 %v2246_v21, %v1745_v18  ;;  %v2182_v28 = vpop.f32.mrb[4].mxu1 }
 0x13f   : > { %v1795_v29 = vsel %vm412_vm0, %v1787_v25, 0.0  ;;  %v1752_v30 = vadd.f32 %v2247_v8, %v1744_v23  ;;  %v1126_v31 = vpop.f32.mrb[5].mxu1  ;;  %v2238_v32 = vpop.f32.mrb[4].mxu0 }
 0x140   : > { %v1797_v34 = vadd.f32 %v1796_v26, %v1795_v29  ;;  %1761 = vst.msk [vmem:[%s2817_s15 + $0x18] sm:$0xff] %vm412_vm0, %v1753_v9  ;;  %v1790_v4 = vmul.f32 %v1753_v9, %v1753_v9  ;;  %v2248_v35 = vadd.f32 %v2238_v32, %v2182_v28  ;;  %v1715_v36 = vpop.f32.mrb[5].mxu0  ;;  %v1771_v42 = vsel %vm412_vm0, %v1753_v9, 0.0 }
 0x141   : > { %1760 = vst.msk [vmem:[%s2817_s15 + $0x10] sm:$0xff] %vm412_vm0, %v1752_v30  ;;  %v1769_v6 = vsel %vm412_vm0, %v1752_v30, 0.0  ;;  %v1789_v7 = vmul.f32 %v1752_v30, %v1752_v30  ;;  %v2249_v38 = vadd.f32 %v1715_v36, %v1126_v31 }
 0x142   : > { %v1770_v39 = vadd.f32 %v1769_v6, %v1768_v27  ;;  %v1755_v40 = vadd.f32 %v2248_v35, %v1747_v33  ;;  %v2185_v41 = vpop.f32.mrb[6].mxu1  ;;  %v1800_v47 = vsel %vm412_vm0, %v1790_v4, 0.0 }
 0x143   : > { %v1798_v43 = vsel %vm412_vm0, %v1789_v7, 0.0  ;;  %v1754_v44 = vadd.f32 %v2249_v38, %v1746_v37  ;;  %v1136_v45 = vpop.f32.mrb[7].mxu1  ;;  %v2241_v46 = vpop.f32.mrb[6].mxu0 }
 0x144   : > { %v1799_v48 = vadd.f32 %v1798_v43, %v1797_v34  ;;  %1763 = vst.msk [vmem:[%s2817_s15 + $0x28] sm:$0xff] %vm412_vm0, %v1755_v40  ;;  %v1792_v49 = vmul.f32 %v1755_v40, %v1755_v40  ;;  %v1772_v50 = vadd.f32 %v1771_v42, %v1770_v39  ;;  %v1725_v52 = vpop.f32.mrb[7].mxu0  ;;  %v2250_v56 = vadd.f32 %v2241_v46, %v2185_v41 }
 0x145   : > { %1762 = vst.msk [vmem:[%s2817_s15 + $0x20] sm:$0xff] %vm412_vm0, %v1754_v44  ;;  %v1773_v54 = vsel %vm412_vm0, %v1754_v44, 0.0  ;;  %v1791_v55 = vmul.f32 %v1754_v44, %v1754_v44  ;;  %v2251_v57 = vadd.f32 %v1725_v52, %v1136_v45  ;;  %v1775_v60 = vsel %vm412_vm0, %v1755_v40, 0.0 }
 0x146   : > { %v1774_v58 = vadd.f32 %v1773_v54, %v1772_v50  ;;  %v1801_v59 = vadd.f32 %v1800_v47, %v1799_v48  ;;  %v1757_v1 = vadd.f32 %v2250_v56, %v1749_v51  ;;  %v1804_v2 = vsel %vm412_vm0, %v1792_v49, 0.0 }
 0x147   : > { %v1802_v61 = vsel %vm412_vm0, %v1791_v55, 0.0  ;;  %v1756_v62 = vadd.f32 %v2251_v57, %v1748_v53 }
 0x148   : > { %v1803_v63 = vadd.f32 %v1802_v61, %v1801_v59  ;;  %v1776_v0 = vadd.f32 %v1775_v60, %v1774_v58  ;;  %1765 = vst.msk [vmem:[%s2817_s15 + $0x38] sm:$0xff] %vm412_vm0, %v1757_v1  ;;  %v1794_v3 = vmul.f32 %v1757_v1, %v1757_v1  ;;  %v1779_v14 = vsel %vm412_vm0, %v1757_v1, 0.0 }
 0x149   : > { %1764 = vst.msk [vmem:[%s2817_s15 + $0x30] sm:$0xff] %vm412_vm0, %v1756_v62  ;;  %v1777_v10 = vsel %vm412_vm0, %v1756_v62, 0.0  ;;  %v1793_v11 = vmul.f32 %v1756_v62, %v1756_v62 }
 0x14a   : > { %v1778_v12 = vadd.f32 %v1777_v10, %v1776_v0  ;;  %v1805_v13 = vadd.f32 %v1804_v2, %v1803_v63  ;;  %v1808_v18 = vsel %vm412_vm0, %v1794_v3, 0.0 }
 0x14b   : > { %v1806_v15 = vsel %vm412_vm0, %v1793_v11, 0.0 }
 0x14c   : > { %v1780_v16 = vadd.f32 %v1779_v14, %v1778_v12  ;;  %v1807_v17 = vadd.f32 %v1806_v15, %v1805_v13 }
 0x14e   : > { %v1781_v19 = vrot.slane %v1780_v16, 4  ;;  %v1809_v20 = vadd.f32 %v1808_v18, %v1807_v17 }
 0x150   : > { %v1782_v21 = vadd.f32 %v1781_v19, %v1780_v16  ;;  %v1810_v22 = vrot.slane %v1809_v20, 4 }
 0x152   : > { %v1783_v23 = vrot.slane %v1782_v21, 2  ;;  %v1811_v24 = vadd.f32 %v1810_v22, %v1809_v20 }
 0x154   : > { %v1784_v25 = vadd.f32 %v1783_v23, %v1782_v21  ;;  %v1812_v8 = vrot.slane %v1811_v24, 2 }
 0x156   : > { %v1785_v26 = vrot.slane %v1784_v25, 1  ;;  %v1813_v27 = vadd.f32 %v1812_v8, %v1811_v24 }
 0x158   : > { %v1814_v9 = vrot.slane %v1813_v27, 1  ;;  %v1786_v28 = vadd.f32 %v1785_v26, %v1784_v25 }
 0x15a   : > { %v1815_v29 = vadd.f32 %v1814_v9, %v1813_v27 }
 0x15c   : > { %v1817_v30 = vsel %vm1816_vm4, %v1786_v28, %v1815_v29 }
 0x15d   : > { %1818 = vst.msk [vmem:[%s267_s17] sm:$0x3] %vm414_vm1, %v1817_v30 }
 0x15e   : > { %2362 = shalt.err (!%p2359_p3)
}
 0x15f   : > { %s2363_s11 = scalar_lea.hbm %s2863_s26, 32  ;;  %s2367_s13 = scalar_lea.hbm %s2912_s6, 64 }
 0x160   : > { %p2364_p4 = scmp.ne.s32.totalorder %s2863_s26, %s2363_s11  ;;  %p2368_p9 = scmp.lt.u32.totalorder %s2863_s26, %s2912_s6 }
 0x161   : > { %p2369_p10 = scmp.lt.u32.totalorder %s2367_s13, %s2363_s11  ;;  %p2371_p12 = scmp.lt.u32.totalorder %s2363_s11, %s2863_s26 }
 0x162   : > { %p2365_p7 = pnand %p2364_p4, %p2488_p5 }
 0x163   : > { %p2370_p11 = por %p2369_p10, %p2368_p9 }
 0x164   : > { %p2366_p8 = pneg %p2365_p7 }
 0x165   : > { %p2372_p13 = por %p2371_p12, %p2370_p11 }
 0x167   : > { %p2373_p0 = pnand %p2372_p13, %p2366_p8 }
 0x169   : > { %2376 = shalt.err (!%p2373_p0)
}
 0x16a   : > { %2309 = dma.vmem_to_hbm [thread:$0]  (%p2488_p5), %s2865_s18, 32, %s2863_s26, %s1825_s25  }
 0x16b PF: > { %p2315_p1 = scmp.ge.s32.totalorder %s2411_s24, 2  ;;  %s1861_s17 = sand.u32 1, %s2399_s21  }
 0x16c   : > { %s1862_s19 = scalar_lea.sflag [#allocation4], %s1861_s17 }
 0x16d   : > { %p2312_p2 = pnand %p2315_p1, %p2492_p6 }
 0x16f   : > { %2394 = dma.done.wait (!%p2312_p2), %s1862_s19, 32  }
 0x170   : > { %2396 = vsyncadd (!%p2312_p2), %s1862_s19, 4294967264  ;;  %p17_p3 = scmp.ge.s32.totalorder %s2475_s27, 4   ;;  %s2915_s21 = smov %s2403_s22 }
 0x171   : > { %s2916_s22 = smov %s2407_s23  ;;  %s2917_s23 = smov %s2486_s30 }
 0x172   : > { %s2918_s24 = smov %s2475_s27  ;;  %19 = sbr.rel (!%p17_p3) target bundleno = 3 (0x3), region = 100 }
 0x179   :  { %1867 = vsyncpa [#allocation4], 1 }
 0x17a   :  { %1869 = vsyncpa [#allocation4 + $0x1], 1 }

</bundles_post_ra>
